<compile_context>
chip_gen: v7x
topology: tpu7x:2x2x1
jax: 0.10.0
libtpu: 0.0.40
codegen_flags: <defaults>
</compile_context>

<pallas_src>
import math

import jax
import jax.numpy as jnp
from jax.experimental import pallas as pl
from jax.experimental.pallas import tpu as pltpu


def _layer_norm(x, g, b, eps=1e-5):
    mu = jnp.mean(x, axis=-1, keepdims=True)
    var = jnp.mean((x - mu) ** 2, axis=-1, keepdims=True)
    return (x - mu) * jax.lax.rsqrt(var + eps) * g + b


def _make_kernel(n_heads, tb, seq_len, d_model):
    H, TB, L, D = n_heads, tb, seq_len, d_model
    hd = D // H
    scale = 1.0 / math.sqrt(hd)
    M = TB * L                                    # batch folded into matmul M dim

    def kernel(id_ref, kvalid_ref,
               wtqkv_ref, btqkv_ref,
               wo_ref, bo_ref,
               g1_ref, be1_ref,
               w1_ref, b1_ref, w2_ref, b2_ref,
               g2_ref, be2_ref,
               wm1a_ref, wm1b_ref, bm1_ref,
               wdiff_ref, bdiff_ref,
               out_ref):
        x3 = id_ref[...]                          # (TB, L, D) f32
        x2 = x3.reshape(M, D)
        xb = x2.astype(jnp.bfloat16)

        def mm(a, w):                             # bf16 MXU matmul, f32 accumulate
            return jnp.dot(a.astype(jnp.bfloat16), w,
                           preferred_element_type=jnp.float32)

        # ---- fused trans + Q/K/V projection: one (M,D)@(D,4D) MXU call -------
        tqkv = mm(xb, wtqkv_ref[...]) + btqkv_ref[...]        # (M, 4D) f32
        item = tqkv[:, 0 * D:1 * D]                           # == self.trans(id_embd)
        q = tqkv[:, 1 * D:2 * D].reshape(TB, L, D)
        k = tqkv[:, 2 * D:3 * D].reshape(TB, L, D)
        v = tqkv[:, 3 * D:4 * D].reshape(TB, L, D)

        # ---- padding + causal additive bias, built in-kernel, shared by heads -
        kvalid = kvalid_ref[...] > 0.5                        # (TB, 1, L) bool
        rows = jax.lax.broadcasted_iota(jnp.int32, (L, L), 0)
        cols = jax.lax.broadcasted_iota(jnp.int32, (L, L), 1)
        causal = cols <= rows                                 # (L, L)
        bias = jnp.where(jnp.logical_and(kvalid, causal[None, :, :]),
                         0.0, -1e9)                           # (TB, L, L) f32

        # ---- multi-head self-attention (output proj accumulated per head) ----
        attn = jnp.zeros((M, D), dtype=jnp.float32)
        for h in range(H):
            sl = slice(h * hd, (h + 1) * hd)
            qh = q[:, :, sl].astype(jnp.bfloat16)             # (TB, L, hd)
            kh = k[:, :, sl].astype(jnp.bfloat16)
            vh = v[:, :, sl].astype(jnp.bfloat16)
            # contract last dims directly (no explicit kh.T / XLU transpose)
            s = jnp.einsum('bld,bmd->blm', qh, kh,
                           preferred_element_type=jnp.float32) * scale + bias
            s = s - jnp.max(s, axis=-1, keepdims=True)
            e = jnp.exp(s)
            p = e * pl.reciprocal(jnp.sum(e, axis=-1, keepdims=True), approx=True)
            oh = jnp.einsum('blm,bmd->bld', p.astype(jnp.bfloat16), vh,
                            preferred_element_type=jnp.float32)   # (TB, L, hd)
            # per-head slice of the output projection (no lane-dim concat)
            attn = attn + mm(oh.reshape(M, hd), wo_ref[h])        # (M, D)
        attn = attn + bo_ref[...]

        # ---- sublayer 1: residual + LayerNorm (post-LN) -----------------------
        h1 = _layer_norm(x2 + attn, g1_ref[...], be1_ref[...])

        # ---- point-wise feed-forward + sublayer 2 -----------------------------
        ff = jax.nn.gelu(mm(h1, w1_ref[...]) + b1_ref[...], approximate=True)
        ff = mm(ff, w2_ref[...]) + b2_ref[...]
        h2 = _layer_norm(h1 + ff, g2_ref[...], be2_ref[...])

        # ---- classifier Linear(2D->D) split into h2/item halves (no concat) ---
        m = jax.nn.relu(mm(h2, wm1a_ref[...]) + mm(item, wm1b_ref[...])
                        + bm1_ref[...])                        # (M, D)

        # softmax([l0, l1]/tau)[..., 0] == sigmoid((l0-l1)/tau); tau is folded
        # into wdiff/bdiff in the wrapper. Exact sigmoid keeps output in [0, 1].
        z = jnp.sum(m.reshape(TB, L, D) * wdiff_ref[...][None, :, :], axis=-1)
        z = z + bdiff_ref[...]                                 # (TB, L)
        out_ref[0] = 1.0 / (1.0 + jnp.exp(-z))                 # lane-dense slab

    return kernel


def init_params(key, d_model, d_ffn):
    """Deterministic init mirroring sampler_trm._init_weights:
    xavier_normal on all Linear weights, bias = 0.1, LayerNorm gamma=1/beta=0.
    Linear weights are stored pre-transposed to (in, out)."""
    def xavier_t(k, out_f, in_f):
        std = math.sqrt(2.0 / (in_f + out_f))
        w = std * jax.random.normal(k, (out_f, in_f), dtype=jnp.float32)
        return w.T                                  # (in, out)

    ks = jax.random.split(key, 9)
    D, F = d_model, d_ffn
    return {
        "wt":  xavier_t(ks[0], D, D), "bt":  jnp.full((1, D), 0.1, jnp.float32),
        "wq":  xavier_t(ks[1], D, D), "bq":  jnp.full((1, D), 0.1, jnp.float32),
        "wk":  xavier_t(ks[2], D, D), "bk":  jnp.full((1, D), 0.1, jnp.float32),
        "wv":  xavier_t(ks[3], D, D), "bv":  jnp.full((1, D), 0.1, jnp.float32),
        "wo":  xavier_t(ks[4], D, D), "bo":  jnp.full((1, D), 0.1, jnp.float32),
        "g1":  jnp.ones((1, D), jnp.float32), "be1": jnp.zeros((1, D), jnp.float32),
        "w1":  xavier_t(ks[5], F, D), "b1":  jnp.full((1, F), 0.1, jnp.float32),
        "w2":  xavier_t(ks[6], D, F), "b2":  jnp.full((1, D), 0.1, jnp.float32),
        "g2":  jnp.ones((1, D), jnp.float32), "be2": jnp.zeros((1, D), jnp.float32),
        "wm1": xavier_t(ks[7], D, 2 * D), "bm1": jnp.full((1, D), 0.1, jnp.float32),
        "wm2": xavier_t(ks[8], 2, D),     "bm2": jnp.full((1, 2), 0.1, jnp.float32),
    }


def sampler_trm_forward(params, id_embd, x_ids, tau, n_heads, batch_block=None):
    B, L, D = id_embd.shape
    TB = B if batch_block is None else batch_block
    assert B % TB == 0, "batch must be divisible by the batch block"
    nb = B // TB
    hd = D // n_heads
    bf16 = jnp.bfloat16

    # --- wrapper-side weight plumbing (fusion / split / fold tau / bf16 cast) ---
    w_tqkv = jnp.concatenate(
        [params["wt"], params["wq"], params["wk"], params["wv"]], axis=1).astype(bf16)
    b_tqkv = jnp.concatenate(
        [params["bt"], params["bq"], params["bk"], params["bv"]], axis=1)
    wo_h = params["wo"].reshape(n_heads, hd, D).astype(bf16)   # per-head out proj
    wm1a = params["wm1"][:D].astype(bf16)                      # acts on h2
    wm1b = params["wm1"][D:].astype(bf16)                      # acts on item
    w_diff = ((params["wm2"][:, 0] - params["wm2"][:, 1]) / tau).reshape(1, D)
    b_diff = ((params["bm2"][0, 0] - params["bm2"][0, 1]) / tau).reshape(1, 1)

    weights = [
        w_tqkv, b_tqkv,
        wo_h, params["bo"],
        params["g1"], params["be1"],
        params["w1"].astype(bf16), params["b1"],
        params["w2"].astype(bf16), params["b2"],
        params["g2"], params["be2"],
        wm1a, wm1b, params["bm1"],
        w_diff, b_diff,
    ]

    # key-valid padding mask only (B, 1, L); causal half is built in-kernel.
    kvalid = (x_ids > 0).astype(jnp.float32).reshape(B, 1, L)

    kernel = _make_kernel(n_heads, TB, L, D)

    def run(buffer_weights):
        def wspec(arr):
            nd = arr.ndim
            idx = lambda i, _nd=nd: (0,) * _nd
            if buffer_weights:
                # grid-invariant weights: single-buffer to halve VMEM footprint
                return pl.BlockSpec(arr.shape, idx, pipeline_mode=pl.Buffered(1))
            return pl.BlockSpec(arr.shape, idx)

        in_specs = (
            [pl.BlockSpec((TB, L, D), lambda i: (i, 0, 0)),    # id_embd slab
             pl.BlockSpec((TB, 1, L), lambda i: (i, 0, 0))]    # key-valid rows
            + [wspec(w) for w in weights]
        )
        out_spec = pl.BlockSpec((1, TB, L), lambda i: (i, 0, 0))

        out = pl.pallas_call(
            kernel,
            out_shape=jax.ShapeDtypeStruct((nb, TB, L), jnp.float32),
            grid=(nb,),
            in_specs=in_specs,
            out_specs=out_spec,
            compiler_params=pltpu.CompilerParams(
                dimension_semantics=("parallel",),
                vmem_limit_bytes=48 * 1024 * 1024,
            ),
        )(id_embd, kvalid, *weights)
        return jax.block_until_ready(out)

    try:
        out = run(True)            # preferred: single-buffered weights
    except Exception:
        out = run(False)           # fallback if Buffered(1) is unsupported
    return out.reshape(B, L)       # == p[:, :, 0]


if __name__ == "__main__":
    # NOTE: demo shapes are intentionally tiny; real deployments should use
    # L, D (and ideally hd) as multiples of 128 for full vreg/MXU utilization.
    B, L, D, H, F = 4, 8, 32, 4, 64   # batch, max_len, d_model, attn_heads, d_ffn
    TB = 2                            # sequences per grid step (grid length 2)
    tau = 0.5

    key = jax.random.PRNGKey(0)
    k_param, k_embd = jax.random.split(key)

    params = init_params(k_param, D, F)
    id_embd = jax.random.normal(k_embd, (B, L, D), dtype=jnp.float32)
    # item-id sequences with padding zeros (exercises both mask branches)
    x_ids = jnp.array([[3, 5, 0, 2, 7, 0, 1, 4],
                       [0, 0, 6, 2, 9, 8, 0, 5],
                       [1, 2, 3, 4, 5, 6, 7, 8],
                       [0, 4, 0, 4, 0, 4, 0, 4]], dtype=jnp.int32)

    out = sampler_trm_forward(params, id_embd, x_ids, tau, H, batch_block=TB)
    out = jax.block_until_ready(out)

    assert out.shape == (B, L)
    assert bool(jnp.all(jnp.isfinite(out)))
    assert bool(jnp.all((out >= 0.0) & (out <= 1.0)))
    print("KERNEL_OK")
</pallas_src>

<mosaic_0001>
module attributes {stable_mosaic.version = 11 : i64} {
  func.func @kernel(%arg0: i32, %arg1: memref<2x8x32xf32, #tpu.memory_space<vmem>>, %arg2: memref<2x1x8xf32, #tpu.memory_space<vmem>>, %arg3: memref<32x128xbf16, #tpu.memory_space<vmem>>, %arg4: memref<1x128xf32, #tpu.memory_space<vmem>>, %arg5: memref<4x8x32xbf16, #tpu.memory_space<vmem>>, %arg6: memref<1x32xf32, #tpu.memory_space<vmem>>, %arg7: memref<1x32xf32, #tpu.memory_space<vmem>>, %arg8: memref<1x32xf32, #tpu.memory_space<vmem>>, %arg9: memref<32x64xbf16, #tpu.memory_space<vmem>>, %arg10: memref<1x64xf32, #tpu.memory_space<vmem>>, %arg11: memref<64x32xbf16, #tpu.memory_space<vmem>>, %arg12: memref<1x32xf32, #tpu.memory_space<vmem>>, %arg13: memref<1x32xf32, #tpu.memory_space<vmem>>, %arg14: memref<1x32xf32, #tpu.memory_space<vmem>>, %arg15: memref<32x32xbf16, #tpu.memory_space<vmem>>, %arg16: memref<32x32xbf16, #tpu.memory_space<vmem>>, %arg17: memref<1x32xf32, #tpu.memory_space<vmem>>, %arg18: memref<1x32xf32, #tpu.memory_space<vmem>>, %arg19: memref<1x1xf32, #tpu.memory_space<vmem>>, %arg20: memref<1x2x8xf32, #tpu.memory_space<vmem>>) attributes {dimension_semantics = [#tpu.dimension_semantics<parallel>], iteration_bounds = array<i64: 2>, scalar_prefetch = 0 : i64, scratch_operands = 0 : i64, tpu.core_type = #tpu.core_type<tc>, window_params = [{transform_indices = @transform_0, window_bounds = array<i64: 2, 8, 32>}, {transform_indices = @transform_1, window_bounds = array<i64: 2, 1, 8>}, {pipeline_mode = #tpu.pipeline_mode<synchronous>, transform_indices = @transform_2, window_bounds = array<i64: 32, 128>}, {pipeline_mode = #tpu.pipeline_mode<synchronous>, transform_indices = @transform_3, window_bounds = array<i64: 1, 128>}, {pipeline_mode = #tpu.pipeline_mode<synchronous>, transform_indices = @transform_4, window_bounds = array<i64: 4, 8, 32>}, {pipeline_mode = #tpu.pipeline_mode<synchronous>, transform_indices = @transform_5, window_bounds = array<i64: 1, 32>}, {pipeline_mode = #tpu.pipeline_mode<synchronous>, transform_indices = @transform_6, window_bounds = array<i64: 1, 32>}, {pipeline_mode = #tpu.pipeline_mode<synchronous>, transform_indices = @transform_7, window_bounds = array<i64: 1, 32>}, {pipeline_mode = #tpu.pipeline_mode<synchronous>, transform_indices = @transform_8, window_bounds = array<i64: 32, 64>}, {pipeline_mode = #tpu.pipeline_mode<synchronous>, transform_indices = @transform_9, window_bounds = array<i64: 1, 64>}, {pipeline_mode = #tpu.pipeline_mode<synchronous>, transform_indices = @transform_10, window_bounds = array<i64: 64, 32>}, {pipeline_mode = #tpu.pipeline_mode<synchronous>, transform_indices = @transform_11, window_bounds = array<i64: 1, 32>}, {pipeline_mode = #tpu.pipeline_mode<synchronous>, transform_indices = @transform_12, window_bounds = array<i64: 1, 32>}, {pipeline_mode = #tpu.pipeline_mode<synchronous>, transform_indices = @transform_13, window_bounds = array<i64: 1, 32>}, {pipeline_mode = #tpu.pipeline_mode<synchronous>, transform_indices = @transform_14, window_bounds = array<i64: 32, 32>}, {pipeline_mode = #tpu.pipeline_mode<synchronous>, transform_indices = @transform_15, window_bounds = array<i64: 32, 32>}, {pipeline_mode = #tpu.pipeline_mode<synchronous>, transform_indices = @transform_16, window_bounds = array<i64: 1, 32>}, {pipeline_mode = #tpu.pipeline_mode<synchronous>, transform_indices = @transform_17, window_bounds = array<i64: 1, 32>}, {pipeline_mode = #tpu.pipeline_mode<synchronous>, transform_indices = @transform_18, window_bounds = array<i64: 1, 1>}, {transform_indices = @transform_19, window_bounds = array<i64: 1, 2, 8>}]} {
    %c0 = arith.constant 0 : index
    %c0_0 = arith.constant 0 : index
    %c0_1 = arith.constant 0 : index
    %0 = vector.load %arg1[%c0, %c0_0, %c0_1] : memref<2x8x32xf32, #tpu.memory_space<vmem>>, vector<2x8x32xf32>
    %1 = vector.shape_cast %0 : vector<2x8x32xf32> to vector<16x32xf32>
    %2 = arith.truncf %1 : vector<16x32xf32> to vector<16x32xbf16>
    %c0_2 = arith.constant 0 : index
    %c0_3 = arith.constant 0 : index
    %3 = vector.load %arg3[%c0_2, %c0_3] : memref<32x128xbf16, #tpu.memory_space<vmem>>, vector<32x128xbf16>
    %cst = arith.constant dense<0.000000e+00> : vector<16x128xf32>
    %4 = tpu.matmul %2, %3, %cst {dimension_numbers = #tpu.dot_dimension_numbers<[1], [0], [0], [1], [0, 0, 1, 1], [], []>} : vector<16x32xbf16>, vector<32x128xbf16>, vector<16x128xf32> -> vector<16x128xf32>
    %c0_4 = arith.constant 0 : index
    %c0_5 = arith.constant 0 : index
    %5 = vector.load %arg4[%c0_4, %c0_5] : memref<1x128xf32, #tpu.memory_space<vmem>>, vector<1x128xf32>
    %6 = vector.broadcast %5 : vector<1x128xf32> to vector<16x128xf32>
    %7 = arith.addf %4, %6 : vector<16x128xf32>
    %8 = vector.extract_strided_slice %7 {offsets = [0, 0], sizes = [16, 32], strides = [1, 1]} : vector<16x128xf32> to vector<16x32xf32>
    %9 = vector.extract_strided_slice %7 {offsets = [0, 32], sizes = [16, 32], strides = [1, 1]} : vector<16x128xf32> to vector<16x32xf32>
    %10 = vector.shape_cast %9 : vector<16x32xf32> to vector<2x8x32xf32>
    %11 = vector.extract_strided_slice %7 {offsets = [0, 64], sizes = [16, 32], strides = [1, 1]} : vector<16x128xf32> to vector<16x32xf32>
    %12 = vector.shape_cast %11 : vector<16x32xf32> to vector<2x8x32xf32>
    %13 = vector.extract_strided_slice %7 {offsets = [0, 96], sizes = [16, 32], strides = [1, 1]} : vector<16x128xf32> to vector<16x32xf32>
    %14 = vector.shape_cast %13 : vector<16x32xf32> to vector<2x8x32xf32>
    %c0_6 = arith.constant 0 : index
    %c0_7 = arith.constant 0 : index
    %c0_8 = arith.constant 0 : index
    %15 = vector.load %arg2[%c0_6, %c0_7, %c0_8] : memref<2x1x8xf32, #tpu.memory_space<vmem>>, vector<2x1x8xf32>
    %cst_9 = arith.constant 5.000000e-01 : f32
    %16 = vector.broadcast %cst_9 : f32 to vector<2x1x8xf32>
    %17 = arith.cmpf ogt, %15, %16 : vector<2x1x8xf32>
    %18 = tpu.iota {dimensions = array<i32: 0>} : vector<8x8xi32>
    %19 = tpu.iota {dimensions = array<i32: 1>} : vector<8x8xi32>
    %20 = arith.cmpi sle, %19, %18 : vector<8x8xi32>
    %21 = vector.shape_cast %20 : vector<8x8xi1> to vector<1x8x8xi1>
    %22 = vector.broadcast %17 : vector<2x1x8xi1> to vector<2x8x8xi1>
    %23 = vector.broadcast %21 : vector<1x8x8xi1> to vector<2x8x8xi1>
    %24 = arith.andi %22, %23 : vector<2x8x8xi1>
    %cst_10 = arith.constant 0.000000e+00 : f32
    %cst_11 = arith.constant -1.000000e+09 : f32
    %25 = vector.broadcast %cst_10 : f32 to vector<2x8x8xf32>
    %26 = vector.broadcast %cst_11 : f32 to vector<2x8x8xf32>
    %27 = arith.select %24, %25, %26 : vector<2x8x8xi1>, vector<2x8x8xf32>
    %cst_12 = arith.constant 0.000000e+00 : f32
    %28 = vector.broadcast %cst_12 : f32 to vector<16x32xf32>
    %29 = vector.extract_strided_slice %10 {offsets = [0, 0, 0], sizes = [2, 8, 8], strides = [1, 1, 1]} : vector<2x8x32xf32> to vector<2x8x8xf32>
    %30 = arith.truncf %29 : vector<2x8x8xf32> to vector<2x8x8xbf16>
    %31 = vector.extract_strided_slice %12 {offsets = [0, 0, 0], sizes = [2, 8, 8], strides = [1, 1, 1]} : vector<2x8x32xf32> to vector<2x8x8xf32>
    %32 = arith.truncf %31 : vector<2x8x8xf32> to vector<2x8x8xbf16>
    %33 = vector.extract_strided_slice %14 {offsets = [0, 0, 0], sizes = [2, 8, 8], strides = [1, 1, 1]} : vector<2x8x32xf32> to vector<2x8x8xf32>
    %34 = arith.truncf %33 : vector<2x8x8xf32> to vector<2x8x8xbf16>
    "tpu.trace_start"() <{level = 10 : i32, message = "bld,bmd->blm"}> : () -> ()
    %cst_13 = arith.constant dense<0.000000e+00> : vector<2x8x8xf32>
    %35 = tpu.matmul %30, %32, %cst_13 {dimension_numbers = #tpu.dot_dimension_numbers<[2], [2], [1], [1], [0, 0, 0, 1, 1, 1], [0], [0]>} : vector<2x8x8xbf16>, vector<2x8x8xbf16>, vector<2x8x8xf32> -> vector<2x8x8xf32>
    "tpu.trace_stop"() : () -> ()
    %cst_14 = arith.constant 0.353553385 : f32
    %36 = vector.broadcast %cst_14 : f32 to vector<2x8x8xf32>
    %37 = arith.mulf %35, %36 : vector<2x8x8xf32>
    %38 = arith.addf %37, %27 : vector<2x8x8xf32>
    %cst_15 = arith.constant dense<0xFF800000> : vector<2x8xf32>
    %39 = vector.multi_reduction <maximumf>, %38, %cst_15 [2] : vector<2x8x8xf32> to vector<2x8xf32>
    %40 = vector.shape_cast %39 : vector<2x8xf32> to vector<2x8x1xf32>
    %41 = vector.broadcast %40 : vector<2x8x1xf32> to vector<2x8x8xf32>
    %42 = arith.subf %38, %41 : vector<2x8x8xf32>
    %43 = math.exp %42 : vector<2x8x8xf32>
    %cst_16 = arith.constant dense<0.000000e+00> : vector<2x8xf32>
    %44 = vector.multi_reduction <add>, %43, %cst_16 [2] : vector<2x8x8xf32> to vector<2x8xf32>
    %45 = vector.shape_cast %44 : vector<2x8xf32> to vector<2x8x1xf32>
    %46 = tpu.reciprocal %45 {approx = true} : vector<2x8x1xf32> -> vector<2x8x1xf32>
    %47 = vector.broadcast %46 : vector<2x8x1xf32> to vector<2x8x8xf32>
    %48 = arith.mulf %43, %47 : vector<2x8x8xf32>
    %49 = arith.truncf %48 : vector<2x8x8xf32> to vector<2x8x8xbf16>
    "tpu.trace_start"() <{level = 10 : i32, message = "blm,bmd->bld"}> : () -> ()
    %cst_17 = arith.constant dense<0.000000e+00> : vector<2x8x8xf32>
    %50 = tpu.matmul %49, %34, %cst_17 {dimension_numbers = #tpu.dot_dimension_numbers<[2], [1], [1], [2], [0, 0, 0, 1, 1, 2], [0], [0]>} : vector<2x8x8xbf16>, vector<2x8x8xbf16>, vector<2x8x8xf32> -> vector<2x8x8xf32>
    "tpu.trace_stop"() : () -> ()
    %51 = vector.shape_cast %50 : vector<2x8x8xf32> to vector<16x8xf32>
    %c0_18 = arith.constant 0 : index
    %c0_19 = arith.constant 0 : index
    %c0_20 = arith.constant 0 : index
    %52 = vector.load %arg5[%c0_18, %c0_19, %c0_20] : memref<4x8x32xbf16, #tpu.memory_space<vmem>>, vector<1x8x32xbf16>
    %53 = vector.shape_cast %52 : vector<1x8x32xbf16> to vector<8x32xbf16>
    %54 = arith.truncf %51 : vector<16x8xf32> to vector<16x8xbf16>
    %cst_21 = arith.constant dense<0.000000e+00> : vector<16x32xf32>
    %55 = tpu.matmul %54, %53, %cst_21 {dimension_numbers = #tpu.dot_dimension_numbers<[1], [0], [0], [1], [0, 0, 1, 1], [], []>} : vector<16x8xbf16>, vector<8x32xbf16>, vector<16x32xf32> -> vector<16x32xf32>
    %56 = arith.addf %28, %55 : vector<16x32xf32>
    %57 = vector.extract_strided_slice %10 {offsets = [0, 0, 8], sizes = [2, 8, 8], strides = [1, 1, 1]} : vector<2x8x32xf32> to vector<2x8x8xf32>
    %58 = arith.truncf %57 : vector<2x8x8xf32> to vector<2x8x8xbf16>
    %59 = vector.extract_strided_slice %12 {offsets = [0, 0, 8], sizes = [2, 8, 8], strides = [1, 1, 1]} : vector<2x8x32xf32> to vector<2x8x8xf32>
    %60 = arith.truncf %59 : vector<2x8x8xf32> to vector<2x8x8xbf16>
    %61 = vector.extract_strided_slice %14 {offsets = [0, 0, 8], sizes = [2, 8, 8], strides = [1, 1, 1]} : vector<2x8x32xf32> to vector<2x8x8xf32>
    %62 = arith.truncf %61 : vector<2x8x8xf32> to vector<2x8x8xbf16>
    "tpu.trace_start"() <{level = 10 : i32, message = "bld,bmd->blm"}> : () -> ()
    %cst_22 = arith.constant dense<0.000000e+00> : vector<2x8x8xf32>
    %63 = tpu.matmul %58, %60, %cst_22 {dimension_numbers = #tpu.dot_dimension_numbers<[2], [2], [1], [1], [0, 0, 0, 1, 1, 1], [0], [0]>} : vector<2x8x8xbf16>, vector<2x8x8xbf16>, vector<2x8x8xf32> -> vector<2x8x8xf32>
    "tpu.trace_stop"() : () -> ()
    %cst_23 = arith.constant 0.353553385 : f32
    %64 = vector.broadcast %cst_23 : f32 to vector<2x8x8xf32>
    %65 = arith.mulf %63, %64 : vector<2x8x8xf32>
    %66 = arith.addf %65, %27 : vector<2x8x8xf32>
    %cst_24 = arith.constant dense<0xFF800000> : vector<2x8xf32>
    %67 = vector.multi_reduction <maximumf>, %66, %cst_24 [2] : vector<2x8x8xf32> to vector<2x8xf32>
    %68 = vector.shape_cast %67 : vector<2x8xf32> to vector<2x8x1xf32>
    %69 = vector.broadcast %68 : vector<2x8x1xf32> to vector<2x8x8xf32>
    %70 = arith.subf %66, %69 : vector<2x8x8xf32>
    %71 = math.exp %70 : vector<2x8x8xf32>
    %cst_25 = arith.constant dense<0.000000e+00> : vector<2x8xf32>
    %72 = vector.multi_reduction <add>, %71, %cst_25 [2] : vector<2x8x8xf32> to vector<2x8xf32>
    %73 = vector.shape_cast %72 : vector<2x8xf32> to vector<2x8x1xf32>
    %74 = tpu.reciprocal %73 {approx = true} : vector<2x8x1xf32> -> vector<2x8x1xf32>
    %75 = vector.broadcast %74 : vector<2x8x1xf32> to vector<2x8x8xf32>
    %76 = arith.mulf %71, %75 : vector<2x8x8xf32>
    %77 = arith.truncf %76 : vector<2x8x8xf32> to vector<2x8x8xbf16>
    "tpu.trace_start"() <{level = 10 : i32, message = "blm,bmd->bld"}> : () -> ()
    %cst_26 = arith.constant dense<0.000000e+00> : vector<2x8x8xf32>
    %78 = tpu.matmul %77, %62, %cst_26 {dimension_numbers = #tpu.dot_dimension_numbers<[2], [1], [1], [2], [0, 0, 0, 1, 1, 2], [0], [0]>} : vector<2x8x8xbf16>, vector<2x8x8xbf16>, vector<2x8x8xf32> -> vector<2x8x8xf32>
    "tpu.trace_stop"() : () -> ()
    %79 = vector.shape_cast %78 : vector<2x8x8xf32> to vector<16x8xf32>
    %c1 = arith.constant 1 : index
    %c0_27 = arith.constant 0 : index
    %c0_28 = arith.constant 0 : index
    %80 = vector.load %arg5[%c1, %c0_27, %c0_28] : memref<4x8x32xbf16, #tpu.memory_space<vmem>>, vector<1x8x32xbf16>
    %81 = vector.shape_cast %80 : vector<1x8x32xbf16> to vector<8x32xbf16>
    %82 = arith.truncf %79 : vector<16x8xf32> to vector<16x8xbf16>
    %cst_29 = arith.constant dense<0.000000e+00> : vector<16x32xf32>
    %83 = tpu.matmul %82, %81, %cst_29 {dimension_numbers = #tpu.dot_dimension_numbers<[1], [0], [0], [1], [0, 0, 1, 1], [], []>} : vector<16x8xbf16>, vector<8x32xbf16>, vector<16x32xf32> -> vector<16x32xf32>
    %84 = arith.addf %56, %83 : vector<16x32xf32>
    %85 = vector.extract_strided_slice %10 {offsets = [0, 0, 16], sizes = [2, 8, 8], strides = [1, 1, 1]} : vector<2x8x32xf32> to vector<2x8x8xf32>
    %86 = arith.truncf %85 : vector<2x8x8xf32> to vector<2x8x8xbf16>
    %87 = vector.extract_strided_slice %12 {offsets = [0, 0, 16], sizes = [2, 8, 8], strides = [1, 1, 1]} : vector<2x8x32xf32> to vector<2x8x8xf32>
    %88 = arith.truncf %87 : vector<2x8x8xf32> to vector<2x8x8xbf16>
    %89 = vector.extract_strided_slice %14 {offsets = [0, 0, 16], sizes = [2, 8, 8], strides = [1, 1, 1]} : vector<2x8x32xf32> to vector<2x8x8xf32>
    %90 = arith.truncf %89 : vector<2x8x8xf32> to vector<2x8x8xbf16>
    "tpu.trace_start"() <{level = 10 : i32, message = "bld,bmd->blm"}> : () -> ()
    %cst_30 = arith.constant dense<0.000000e+00> : vector<2x8x8xf32>
    %91 = tpu.matmul %86, %88, %cst_30 {dimension_numbers = #tpu.dot_dimension_numbers<[2], [2], [1], [1], [0, 0, 0, 1, 1, 1], [0], [0]>} : vector<2x8x8xbf16>, vector<2x8x8xbf16>, vector<2x8x8xf32> -> vector<2x8x8xf32>
    "tpu.trace_stop"() : () -> ()
    %cst_31 = arith.constant 0.353553385 : f32
    %92 = vector.broadcast %cst_31 : f32 to vector<2x8x8xf32>
    %93 = arith.mulf %91, %92 : vector<2x8x8xf32>
    %94 = arith.addf %93, %27 : vector<2x8x8xf32>
    %cst_32 = arith.constant dense<0xFF800000> : vector<2x8xf32>
    %95 = vector.multi_reduction <maximumf>, %94, %cst_32 [2] : vector<2x8x8xf32> to vector<2x8xf32>
    %96 = vector.shape_cast %95 : vector<2x8xf32> to vector<2x8x1xf32>
    %97 = vector.broadcast %96 : vector<2x8x1xf32> to vector<2x8x8xf32>
    %98 = arith.subf %94, %97 : vector<2x8x8xf32>
    %99 = math.exp %98 : vector<2x8x8xf32>
    %cst_33 = arith.constant dense<0.000000e+00> : vector<2x8xf32>
    %100 = vector.multi_reduction <add>, %99, %cst_33 [2] : vector<2x8x8xf32> to vector<2x8xf32>
    %101 = vector.shape_cast %100 : vector<2x8xf32> to vector<2x8x1xf32>
    %102 = tpu.reciprocal %101 {approx = true} : vector<2x8x1xf32> -> vector<2x8x1xf32>
    %103 = vector.broadcast %102 : vector<2x8x1xf32> to vector<2x8x8xf32>
    %104 = arith.mulf %99, %103 : vector<2x8x8xf32>
    %105 = arith.truncf %104 : vector<2x8x8xf32> to vector<2x8x8xbf16>
    "tpu.trace_start"() <{level = 10 : i32, message = "blm,bmd->bld"}> : () -> ()
    %cst_34 = arith.constant dense<0.000000e+00> : vector<2x8x8xf32>
    %106 = tpu.matmul %105, %90, %cst_34 {dimension_numbers = #tpu.dot_dimension_numbers<[2], [1], [1], [2], [0, 0, 0, 1, 1, 2], [0], [0]>} : vector<2x8x8xbf16>, vector<2x8x8xbf16>, vector<2x8x8xf32> -> vector<2x8x8xf32>
    "tpu.trace_stop"() : () -> ()
    %107 = vector.shape_cast %106 : vector<2x8x8xf32> to vector<16x8xf32>
    %c2 = arith.constant 2 : index
    %c0_35 = arith.constant 0 : index
    %c0_36 = arith.constant 0 : index
    %108 = vector.load %arg5[%c2, %c0_35, %c0_36] : memref<4x8x32xbf16, #tpu.memory_space<vmem>>, vector<1x8x32xbf16>
    %109 = vector.shape_cast %108 : vector<1x8x32xbf16> to vector<8x32xbf16>
    %110 = arith.truncf %107 : vector<16x8xf32> to vector<16x8xbf16>
    %cst_37 = arith.constant dense<0.000000e+00> : vector<16x32xf32>
    %111 = tpu.matmul %110, %109, %cst_37 {dimension_numbers = #tpu.dot_dimension_numbers<[1], [0], [0], [1], [0, 0, 1, 1], [], []>} : vector<16x8xbf16>, vector<8x32xbf16>, vector<16x32xf32> -> vector<16x32xf32>
    %112 = arith.addf %84, %111 : vector<16x32xf32>
    %113 = vector.extract_strided_slice %10 {offsets = [0, 0, 24], sizes = [2, 8, 8], strides = [1, 1, 1]} : vector<2x8x32xf32> to vector<2x8x8xf32>
    %114 = arith.truncf %113 : vector<2x8x8xf32> to vector<2x8x8xbf16>
    %115 = vector.extract_strided_slice %12 {offsets = [0, 0, 24], sizes = [2, 8, 8], strides = [1, 1, 1]} : vector<2x8x32xf32> to vector<2x8x8xf32>
    %116 = arith.truncf %115 : vector<2x8x8xf32> to vector<2x8x8xbf16>
    %117 = vector.extract_strided_slice %14 {offsets = [0, 0, 24], sizes = [2, 8, 8], strides = [1, 1, 1]} : vector<2x8x32xf32> to vector<2x8x8xf32>
    %118 = arith.truncf %117 : vector<2x8x8xf32> to vector<2x8x8xbf16>
    "tpu.trace_start"() <{level = 10 : i32, message = "bld,bmd->blm"}> : () -> ()
    %cst_38 = arith.constant dense<0.000000e+00> : vector<2x8x8xf32>
    %119 = tpu.matmul %114, %116, %cst_38 {dimension_numbers = #tpu.dot_dimension_numbers<[2], [2], [1], [1], [0, 0, 0, 1, 1, 1], [0], [0]>} : vector<2x8x8xbf16>, vector<2x8x8xbf16>, vector<2x8x8xf32> -> vector<2x8x8xf32>
    "tpu.trace_stop"() : () -> ()
    %cst_39 = arith.constant 0.353553385 : f32
    %120 = vector.broadcast %cst_39 : f32 to vector<2x8x8xf32>
    %121 = arith.mulf %119, %120 : vector<2x8x8xf32>
    %122 = arith.addf %121, %27 : vector<2x8x8xf32>
    %cst_40 = arith.constant dense<0xFF800000> : vector<2x8xf32>
    %123 = vector.multi_reduction <maximumf>, %122, %cst_40 [2] : vector<2x8x8xf32> to vector<2x8xf32>
    %124 = vector.shape_cast %123 : vector<2x8xf32> to vector<2x8x1xf32>
    %125 = vector.broadcast %124 : vector<2x8x1xf32> to vector<2x8x8xf32>
    %126 = arith.subf %122, %125 : vector<2x8x8xf32>
    %127 = math.exp %126 : vector<2x8x8xf32>
    %cst_41 = arith.constant dense<0.000000e+00> : vector<2x8xf32>
    %128 = vector.multi_reduction <add>, %127, %cst_41 [2] : vector<2x8x8xf32> to vector<2x8xf32>
    %129 = vector.shape_cast %128 : vector<2x8xf32> to vector<2x8x1xf32>
    %130 = tpu.reciprocal %129 {approx = true} : vector<2x8x1xf32> -> vector<2x8x1xf32>
    %131 = vector.broadcast %130 : vector<2x8x1xf32> to vector<2x8x8xf32>
    %132 = arith.mulf %127, %131 : vector<2x8x8xf32>
    %133 = arith.truncf %132 : vector<2x8x8xf32> to vector<2x8x8xbf16>
    "tpu.trace_start"() <{level = 10 : i32, message = "blm,bmd->bld"}> : () -> ()
    %cst_42 = arith.constant dense<0.000000e+00> : vector<2x8x8xf32>
    %134 = tpu.matmul %133, %118, %cst_42 {dimension_numbers = #tpu.dot_dimension_numbers<[2], [1], [1], [2], [0, 0, 0, 1, 1, 2], [0], [0]>} : vector<2x8x8xbf16>, vector<2x8x8xbf16>, vector<2x8x8xf32> -> vector<2x8x8xf32>
    "tpu.trace_stop"() : () -> ()
    %135 = vector.shape_cast %134 : vector<2x8x8xf32> to vector<16x8xf32>
    %c3 = arith.constant 3 : index
    %c0_43 = arith.constant 0 : index
    %c0_44 = arith.constant 0 : index
    %136 = vector.load %arg5[%c3, %c0_43, %c0_44] : memref<4x8x32xbf16, #tpu.memory_space<vmem>>, vector<1x8x32xbf16>
    %137 = vector.shape_cast %136 : vector<1x8x32xbf16> to vector<8x32xbf16>
    %138 = arith.truncf %135 : vector<16x8xf32> to vector<16x8xbf16>
    %cst_45 = arith.constant dense<0.000000e+00> : vector<16x32xf32>
    %139 = tpu.matmul %138, %137, %cst_45 {dimension_numbers = #tpu.dot_dimension_numbers<[1], [0], [0], [1], [0, 0, 1, 1], [], []>} : vector<16x8xbf16>, vector<8x32xbf16>, vector<16x32xf32> -> vector<16x32xf32>
    %140 = arith.addf %112, %139 : vector<16x32xf32>
    %c0_46 = arith.constant 0 : index
    %c0_47 = arith.constant 0 : index
    %141 = vector.load %arg6[%c0_46, %c0_47] : memref<1x32xf32, #tpu.memory_space<vmem>>, vector<1x32xf32>
    %142 = vector.broadcast %141 : vector<1x32xf32> to vector<16x32xf32>
    %143 = arith.addf %140, %142 : vector<16x32xf32>
    %144 = arith.addf %1, %143 : vector<16x32xf32>
    %c0_48 = arith.constant 0 : index
    %c0_49 = arith.constant 0 : index
    %145 = vector.load %arg7[%c0_48, %c0_49] : memref<1x32xf32, #tpu.memory_space<vmem>>, vector<1x32xf32>
    %c0_50 = arith.constant 0 : index
    %c0_51 = arith.constant 0 : index
    %146 = vector.load %arg8[%c0_50, %c0_51] : memref<1x32xf32, #tpu.memory_space<vmem>>, vector<1x32xf32>
    %cst_52 = arith.constant dense<0.000000e+00> : vector<16xf32>
    %147 = vector.multi_reduction <add>, %144, %cst_52 [1] : vector<16x32xf32> to vector<16xf32>
    %148 = vector.shape_cast %147 : vector<16xf32> to vector<16x1xf32>
    %cst_53 = arith.constant 3.200000e+01 : f32
    %149 = vector.broadcast %cst_53 : f32 to vector<16x1xf32>
    %150 = arith.divf %148, %149 : vector<16x1xf32>
    %151 = vector.broadcast %150 : vector<16x1xf32> to vector<16x32xf32>
    %152 = arith.subf %144, %151 : vector<16x32xf32>
    %153 = arith.mulf %152, %152 : vector<16x32xf32>
    %cst_54 = arith.constant dense<0.000000e+00> : vector<16xf32>
    %154 = vector.multi_reduction <add>, %153, %cst_54 [1] : vector<16x32xf32> to vector<16xf32>
    %155 = vector.shape_cast %154 : vector<16xf32> to vector<16x1xf32>
    %cst_55 = arith.constant 3.200000e+01 : f32
    %156 = vector.broadcast %cst_55 : f32 to vector<16x1xf32>
    %157 = arith.divf %155, %156 : vector<16x1xf32>
    %158 = vector.broadcast %150 : vector<16x1xf32> to vector<16x32xf32>
    %159 = arith.subf %144, %158 : vector<16x32xf32>
    %cst_56 = arith.constant 9.99999974E-6 : f32
    %160 = vector.broadcast %cst_56 : f32 to vector<16x1xf32>
    %161 = arith.addf %157, %160 : vector<16x1xf32>
    %162 = math.rsqrt %161 : vector<16x1xf32>
    %163 = vector.broadcast %162 : vector<16x1xf32> to vector<16x32xf32>
    %164 = arith.mulf %159, %163 : vector<16x32xf32>
    %165 = vector.broadcast %145 : vector<1x32xf32> to vector<16x32xf32>
    %166 = arith.mulf %164, %165 : vector<16x32xf32>
    %167 = vector.broadcast %146 : vector<1x32xf32> to vector<16x32xf32>
    %168 = arith.addf %166, %167 : vector<16x32xf32>
    %c0_57 = arith.constant 0 : index
    %c0_58 = arith.constant 0 : index
    %169 = vector.load %arg9[%c0_57, %c0_58] : memref<32x64xbf16, #tpu.memory_space<vmem>>, vector<32x64xbf16>
    %170 = arith.truncf %168 : vector<16x32xf32> to vector<16x32xbf16>
    %cst_59 = arith.constant dense<0.000000e+00> : vector<16x64xf32>
    %171 = tpu.matmul %170, %169, %cst_59 {dimension_numbers = #tpu.dot_dimension_numbers<[1], [0], [0], [1], [0, 0, 1, 1], [], []>} : vector<16x32xbf16>, vector<32x64xbf16>, vector<16x64xf32> -> vector<16x64xf32>
    %c0_60 = arith.constant 0 : index
    %c0_61 = arith.constant 0 : index
    %172 = vector.load %arg10[%c0_60, %c0_61] : memref<1x64xf32, #tpu.memory_space<vmem>>, vector<1x64xf32>
    %173 = vector.broadcast %172 : vector<1x64xf32> to vector<16x64xf32>
    %174 = arith.addf %171, %173 : vector<16x64xf32>
    %175 = arith.mulf %174, %174 : vector<16x64xf32>
    %176 = arith.mulf %174, %175 : vector<16x64xf32>
    %cst_62 = arith.constant 4.471500e-02 : f32
    %177 = vector.broadcast %cst_62 : f32 to vector<16x64xf32>
    %178 = arith.mulf %177, %176 : vector<16x64xf32>
    %179 = arith.addf %174, %178 : vector<16x64xf32>
    %cst_63 = arith.constant 0.797884583 : f32
    %180 = vector.broadcast %cst_63 : f32 to vector<16x64xf32>
    %181 = arith.mulf %180, %179 : vector<16x64xf32>
    %182 = math.tanh %181 : vector<16x64xf32>
    %cst_64 = arith.constant 1.000000e+00 : f32
    %183 = vector.broadcast %cst_64 : f32 to vector<16x64xf32>
    %184 = arith.addf %183, %182 : vector<16x64xf32>
    %cst_65 = arith.constant 5.000000e-01 : f32
    %185 = vector.broadcast %cst_65 : f32 to vector<16x64xf32>
    %186 = arith.mulf %185, %184 : vector<16x64xf32>
    %187 = arith.mulf %174, %186 : vector<16x64xf32>
    %c0_66 = arith.constant 0 : index
    %c0_67 = arith.constant 0 : index
    %188 = vector.load %arg11[%c0_66, %c0_67] : memref<64x32xbf16, #tpu.memory_space<vmem>>, vector<64x32xbf16>
    %189 = arith.truncf %187 : vector<16x64xf32> to vector<16x64xbf16>
    %cst_68 = arith.constant dense<0.000000e+00> : vector<16x32xf32>
    %190 = tpu.matmul %189, %188, %cst_68 {dimension_numbers = #tpu.dot_dimension_numbers<[1], [0], [0], [1], [0, 0, 1, 1], [], []>} : vector<16x64xbf16>, vector<64x32xbf16>, vector<16x32xf32> -> vector<16x32xf32>
    %c0_69 = arith.constant 0 : index
    %c0_70 = arith.constant 0 : index
    %191 = vector.load %arg12[%c0_69, %c0_70] : memref<1x32xf32, #tpu.memory_space<vmem>>, vector<1x32xf32>
    %192 = vector.broadcast %191 : vector<1x32xf32> to vector<16x32xf32>
    %193 = arith.addf %190, %192 : vector<16x32xf32>
    %194 = arith.addf %168, %193 : vector<16x32xf32>
    %c0_71 = arith.constant 0 : index
    %c0_72 = arith.constant 0 : index
    %195 = vector.load %arg13[%c0_71, %c0_72] : memref<1x32xf32, #tpu.memory_space<vmem>>, vector<1x32xf32>
    %c0_73 = arith.constant 0 : index
    %c0_74 = arith.constant 0 : index
    %196 = vector.load %arg14[%c0_73, %c0_74] : memref<1x32xf32, #tpu.memory_space<vmem>>, vector<1x32xf32>
    %cst_75 = arith.constant dense<0.000000e+00> : vector<16xf32>
    %197 = vector.multi_reduction <add>, %194, %cst_75 [1] : vector<16x32xf32> to vector<16xf32>
    %198 = vector.shape_cast %197 : vector<16xf32> to vector<16x1xf32>
    %cst_76 = arith.constant 3.200000e+01 : f32
    %199 = vector.broadcast %cst_76 : f32 to vector<16x1xf32>
    %200 = arith.divf %198, %199 : vector<16x1xf32>
    %201 = vector.broadcast %200 : vector<16x1xf32> to vector<16x32xf32>
    %202 = arith.subf %194, %201 : vector<16x32xf32>
    %203 = arith.mulf %202, %202 : vector<16x32xf32>
    %cst_77 = arith.constant dense<0.000000e+00> : vector<16xf32>
    %204 = vector.multi_reduction <add>, %203, %cst_77 [1] : vector<16x32xf32> to vector<16xf32>
    %205 = vector.shape_cast %204 : vector<16xf32> to vector<16x1xf32>
    %cst_78 = arith.constant 3.200000e+01 : f32
    %206 = vector.broadcast %cst_78 : f32 to vector<16x1xf32>
    %207 = arith.divf %205, %206 : vector<16x1xf32>
    %208 = vector.broadcast %200 : vector<16x1xf32> to vector<16x32xf32>
    %209 = arith.subf %194, %208 : vector<16x32xf32>
    %cst_79 = arith.constant 9.99999974E-6 : f32
    %210 = vector.broadcast %cst_79 : f32 to vector<16x1xf32>
    %211 = arith.addf %207, %210 : vector<16x1xf32>
    %212 = math.rsqrt %211 : vector<16x1xf32>
    %213 = vector.broadcast %212 : vector<16x1xf32> to vector<16x32xf32>
    %214 = arith.mulf %209, %213 : vector<16x32xf32>
    %215 = vector.broadcast %195 : vector<1x32xf32> to vector<16x32xf32>
    %216 = arith.mulf %214, %215 : vector<16x32xf32>
    %217 = vector.broadcast %196 : vector<1x32xf32> to vector<16x32xf32>
    %218 = arith.addf %216, %217 : vector<16x32xf32>
    %c0_80 = arith.constant 0 : index
    %c0_81 = arith.constant 0 : index
    %219 = vector.load %arg15[%c0_80, %c0_81] : memref<32x32xbf16, #tpu.memory_space<vmem>>, vector<32x32xbf16>
    %220 = arith.truncf %218 : vector<16x32xf32> to vector<16x32xbf16>
    %cst_82 = arith.constant dense<0.000000e+00> : vector<16x32xf32>
    %221 = tpu.matmul %220, %219, %cst_82 {dimension_numbers = #tpu.dot_dimension_numbers<[1], [0], [0], [1], [0, 0, 1, 1], [], []>} : vector<16x32xbf16>, vector<32x32xbf16>, vector<16x32xf32> -> vector<16x32xf32>
    %c0_83 = arith.constant 0 : index
    %c0_84 = arith.constant 0 : index
    %222 = vector.load %arg16[%c0_83, %c0_84] : memref<32x32xbf16, #tpu.memory_space<vmem>>, vector<32x32xbf16>
    %223 = arith.truncf %8 : vector<16x32xf32> to vector<16x32xbf16>
    %cst_85 = arith.constant dense<0.000000e+00> : vector<16x32xf32>
    %224 = tpu.matmul %223, %222, %cst_85 {dimension_numbers = #tpu.dot_dimension_numbers<[1], [0], [0], [1], [0, 0, 1, 1], [], []>} : vector<16x32xbf16>, vector<32x32xbf16>, vector<16x32xf32> -> vector<16x32xf32>
    %225 = arith.addf %221, %224 : vector<16x32xf32>
    %c0_86 = arith.constant 0 : index
    %c0_87 = arith.constant 0 : index
    %226 = vector.load %arg17[%c0_86, %c0_87] : memref<1x32xf32, #tpu.memory_space<vmem>>, vector<1x32xf32>
    %227 = vector.broadcast %226 : vector<1x32xf32> to vector<16x32xf32>
    %228 = arith.addf %225, %227 : vector<16x32xf32>
    %cst_88 = arith.constant 0.000000e+00 : f32
    %229 = vector.broadcast %cst_88 : f32 to vector<16x32xf32>
    %230 = arith.maximumf %228, %229 : vector<16x32xf32>
    %231 = vector.shape_cast %230 : vector<16x32xf32> to vector<2x8x32xf32>
    %c0_89 = arith.constant 0 : index
    %c0_90 = arith.constant 0 : index
    %232 = vector.load %arg18[%c0_89, %c0_90] : memref<1x32xf32, #tpu.memory_space<vmem>>, vector<1x32xf32>
    %233 = vector.shape_cast %232 : vector<1x32xf32> to vector<1x1x32xf32>
    %234 = vector.broadcast %233 : vector<1x1x32xf32> to vector<2x8x32xf32>
    %235 = arith.mulf %231, %234 : vector<2x8x32xf32>
    %cst_91 = arith.constant dense<0.000000e+00> : vector<2x8xf32>
    %236 = vector.multi_reduction <add>, %235, %cst_91 [2] : vector<2x8x32xf32> to vector<2x8xf32>
    %c0_92 = arith.constant 0 : index
    %c0_93 = arith.constant 0 : index
    %237 = vector.load %arg19[%c0_92, %c0_93] : memref<1x1xf32, #tpu.memory_space<vmem>>, vector<1x1xf32>
    %238 = vector.broadcast %237 : vector<1x1xf32> to vector<2x8xf32>
    %239 = arith.addf %236, %238 : vector<2x8xf32>
    %cst_94 = arith.constant 0.000000e+00 : f32
    %240 = vector.broadcast %cst_94 : f32 to vector<2x8xf32>
    %241 = arith.subf %240, %239 : vector<2x8xf32>
    %242 = math.exp %241 : vector<2x8xf32>
    %cst_95 = arith.constant 1.000000e+00 : f32
    %243 = vector.broadcast %cst_95 : f32 to vector<2x8xf32>
    %244 = arith.addf %243, %242 : vector<2x8xf32>
    %cst_96 = arith.constant 1.000000e+00 : f32
    %245 = vector.broadcast %cst_96 : f32 to vector<2x8xf32>
    %246 = arith.divf %245, %244 : vector<2x8xf32>
    %c0_97 = arith.constant 0 : index
    %c0_98 = arith.constant 0 : index
    %c0_99 = arith.constant 0 : index
    %247 = vector.load %arg20[%c0_97, %c0_98, %c0_99] : memref<1x2x8xf32, #tpu.memory_space<vmem>>, vector<1x2x8xf32>
    %248 = vector.shape_cast %247 : vector<1x2x8xf32> to vector<2x8xf32>
    %249 = vector.shape_cast %246 : vector<2x8xf32> to vector<1x2x8xf32>
    tpu.vector_store %arg20[%c0_97, %c0_98, %c0_99], %249 {strides = array<i32>} : memref<1x2x8xf32, #tpu.memory_space<vmem>>, vector<1x2x8xf32>,
    return
  }
  func.func @transform_0(%arg0: i32) -> (i32, i32, i32) {
    %c0_i32 = arith.constant 0 : i32
    %c0_i32_0 = arith.constant 0 : i32
    %c0_i32_1 = arith.constant 0 : i32
    return %arg0, %c0_i32, %c0_i32_0 : i32, i32, i32
  }
  func.func @transform_1(%arg0: i32) -> (i32, i32, i32) {
    %c0_i32 = arith.constant 0 : i32
    %c0_i32_0 = arith.constant 0 : i32
    %c0_i32_1 = arith.constant 0 : i32
    return %arg0, %c0_i32, %c0_i32_0 : i32, i32, i32
  }
  func.func @transform_2(%arg0: i32) -> (i32, i32) {
    %c0_i32 = arith.constant 0 : i32
    %c0_i32_0 = arith.constant 0 : i32
    %c0_i32_1 = arith.constant 0 : i32
    return %c0_i32, %c0_i32_0 : i32, i32
  }
  func.func @transform_3(%arg0: i32) -> (i32, i32) {
    %c0_i32 = arith.constant 0 : i32
    %c0_i32_0 = arith.constant 0 : i32
    %c0_i32_1 = arith.constant 0 : i32
    return %c0_i32, %c0_i32_0 : i32, i32
  }
  func.func @transform_4(%arg0: i32) -> (i32, i32, i32) {
    %c0_i32 = arith.constant 0 : i32
    %c0_i32_0 = arith.constant 0 : i32
    %c0_i32_1 = arith.constant 0 : i32
    %c0_i32_2 = arith.constant 0 : i32
    return %c0_i32, %c0_i32_0, %c0_i32_1 : i32, i32, i32
  }
  func.func @transform_5(%arg0: i32) -> (i32, i32) {
    %c0_i32 = arith.constant 0 : i32
    %c0_i32_0 = arith.constant 0 : i32
    %c0_i32_1 = arith.constant 0 : i32
    return %c0_i32, %c0_i32_0 : i32, i32
  }
  func.func @transform_6(%arg0: i32) -> (i32, i32) {
    %c0_i32 = arith.constant 0 : i32
    %c0_i32_0 = arith.constant 0 : i32
    %c0_i32_1 = arith.constant 0 : i32
    return %c0_i32, %c0_i32_0 : i32, i32
  }
  func.func @transform_7(%arg0: i32) -> (i32, i32) {
    %c0_i32 = arith.constant 0 : i32
    %c0_i32_0 = arith.constant 0 : i32
    %c0_i32_1 = arith.constant 0 : i32
    return %c0_i32, %c0_i32_0 : i32, i32
  }
  func.func @transform_8(%arg0: i32) -> (i32, i32) {
    %c0_i32 = arith.constant 0 : i32
    %c0_i32_0 = arith.constant 0 : i32
    %c0_i32_1 = arith.constant 0 : i32
    return %c0_i32, %c0_i32_0 : i32, i32
  }
  func.func @transform_9(%arg0: i32) -> (i32, i32) {
    %c0_i32 = arith.constant 0 : i32
    %c0_i32_0 = arith.constant 0 : i32
    %c0_i32_1 = arith.constant 0 : i32
    return %c0_i32, %c0_i32_0 : i32, i32
  }
  func.func @transform_10(%arg0: i32) -> (i32, i32) {
    %c0_i32 = arith.constant 0 : i32
    %c0_i32_0 = arith.constant 0 : i32
    %c0_i32_1 = arith.constant 0 : i32
    return %c0_i32, %c0_i32_0 : i32, i32
  }
  func.func @transform_11(%arg0: i32) -> (i32, i32) {
    %c0_i32 = arith.constant 0 : i32
    %c0_i32_0 = arith.constant 0 : i32
    %c0_i32_1 = arith.constant 0 : i32
    return %c0_i32, %c0_i32_0 : i32, i32
  }
  func.func @transform_12(%arg0: i32) -> (i32, i32) {
    %c0_i32 = arith.constant 0 : i32
    %c0_i32_0 = arith.constant 0 : i32
    %c0_i32_1 = arith.constant 0 : i32
    return %c0_i32, %c0_i32_0 : i32, i32
  }
  func.func @transform_13(%arg0: i32) -> (i32, i32) {
    %c0_i32 = arith.constant 0 : i32
    %c0_i32_0 = arith.constant 0 : i32
    %c0_i32_1 = arith.constant 0 : i32
    return %c0_i32, %c0_i32_0 : i32, i32
  }
  func.func @transform_14(%arg0: i32) -> (i32, i32) {
    %c0_i32 = arith.constant 0 : i32
    %c0_i32_0 = arith.constant 0 : i32
    %c0_i32_1 = arith.constant 0 : i32
    return %c0_i32, %c0_i32_0 : i32, i32
  }
  func.func @transform_15(%arg0: i32) -> (i32, i32) {
    %c0_i32 = arith.constant 0 : i32
    %c0_i32_0 = arith.constant 0 : i32
    %c0_i32_1 = arith.constant 0 : i32
    return %c0_i32, %c0_i32_0 : i32, i32
  }
  func.func @transform_16(%arg0: i32) -> (i32, i32) {
    %c0_i32 = arith.constant 0 : i32
    %c0_i32_0 = arith.constant 0 : i32
    %c0_i32_1 = arith.constant 0 : i32
    return %c0_i32, %c0_i32_0 : i32, i32
  }
  func.func @transform_17(%arg0: i32) -> (i32, i32) {
    %c0_i32 = arith.constant 0 : i32
    %c0_i32_0 = arith.constant 0 : i32
    %c0_i32_1 = arith.constant 0 : i32
    return %c0_i32, %c0_i32_0 : i32, i32
  }
  func.func @transform_18(%arg0: i32) -> (i32, i32) {
    %c0_i32 = arith.constant 0 : i32
    %c0_i32_0 = arith.constant 0 : i32
    %c0_i32_1 = arith.constant 0 : i32
    return %c0_i32, %c0_i32_0 : i32, i32
  }
  func.func @transform_19(%arg0: i32) -> (i32, i32, i32) {
    %c0_i32 = arith.constant 0 : i32
    %c0_i32_0 = arith.constant 0 : i32
    %c0_i32_1 = arith.constant 0 : i32
    return %arg0, %c0_i32, %c0_i32_0 : i32, i32, i32
  }
}

module attributes {stable_mosaic.version = 11 : i64} {
  func.func @kernel(%arg0: i32, %arg1: memref<2x8x32xf32, #tpu.memory_space<vmem>>, %arg2: memref<2x1x8xf32, #tpu.memory_space<vmem>>, %arg3: memref<32x128xbf16, #tpu.memory_space<vmem>>, %arg4: memref<1x128xf32, #tpu.memory_space<vmem>>, %arg5: memref<4x8x32xbf16, #tpu.memory_space<vmem>>, %arg6: memref<1x32xf32, #tpu.memory_space<vmem>>, %arg7: memref<1x32xf32, #tpu.memory_space<vmem>>, %arg8: memref<1x32xf32, #tpu.memory_space<vmem>>, %arg9: memref<32x64xbf16, #tpu.memory_space<vmem>>, %arg10: memref<1x64xf32, #tpu.memory_space<vmem>>, %arg11: memref<64x32xbf16, #tpu.memory_space<vmem>>, %arg12: memref<1x32xf32, #tpu.memory_space<vmem>>, %arg13: memref<1x32xf32, #tpu.memory_space<vmem>>, %arg14: memref<1x32xf32, #tpu.memory_space<vmem>>, %arg15: memref<32x32xbf16, #tpu.memory_space<vmem>>, %arg16: memref<32x32xbf16, #tpu.memory_space<vmem>>, %arg17: memref<1x32xf32, #tpu.memory_space<vmem>>, %arg18: memref<1x32xf32, #tpu.memory_space<vmem>>, %arg19: memref<1x1xf32, #tpu.memory_space<vmem>>, %arg20: memref<1x2x8xf32, #tpu.memory_space<vmem>>) attributes {dimension_semantics = [#tpu.dimension_semantics<parallel>], iteration_bounds = array<i64: 2>, scalar_prefetch = 0 : i64, scratch_operands = 0 : i64, tpu.core_type = #tpu.core_type<tc>, window_params = [{transform_indices = @transform_0, window_bounds = array<i64: 2, 8, 32>}, {transform_indices = @transform_1, window_bounds = array<i64: 2, 1, 8>}, {pipeline_mode = #tpu.pipeline_mode<synchronous>, transform_indices = @transform_2, window_bounds = array<i64: 32, 128>}, {pipeline_mode = #tpu.pipeline_mode<synchronous>, transform_indices = @transform_3, window_bounds = array<i64: 1, 128>}, {pipeline_mode = #tpu.pipeline_mode<synchronous>, transform_indices = @transform_4, window_bounds = array<i64: 4, 8, 32>}, {pipeline_mode = #tpu.pipeline_mode<synchronous>, transform_indices = @transform_5, window_bounds = array<i64: 1, 32>}, {pipeline_mode = #tpu.pipeline_mode<synchronous>, transform_indices = @transform_6, window_bounds = array<i64: 1, 32>}, {pipeline_mode = #tpu.pipeline_mode<synchronous>, transform_indices = @transform_7, window_bounds = array<i64: 1, 32>}, {pipeline_mode = #tpu.pipeline_mode<synchronous>, transform_indices = @transform_8, window_bounds = array<i64: 32, 64>}, {pipeline_mode = #tpu.pipeline_mode<synchronous>, transform_indices = @transform_9, window_bounds = array<i64: 1, 64>}, {pipeline_mode = #tpu.pipeline_mode<synchronous>, transform_indices = @transform_10, window_bounds = array<i64: 64, 32>}, {pipeline_mode = #tpu.pipeline_mode<synchronous>, transform_indices = @transform_11, window_bounds = array<i64: 1, 32>}, {pipeline_mode = #tpu.pipeline_mode<synchronous>, transform_indices = @transform_12, window_bounds = array<i64: 1, 32>}, {pipeline_mode = #tpu.pipeline_mode<synchronous>, transform_indices = @transform_13, window_bounds = array<i64: 1, 32>}, {pipeline_mode = #tpu.pipeline_mode<synchronous>, transform_indices = @transform_14, window_bounds = array<i64: 32, 32>}, {pipeline_mode = #tpu.pipeline_mode<synchronous>, transform_indices = @transform_15, window_bounds = array<i64: 32, 32>}, {pipeline_mode = #tpu.pipeline_mode<synchronous>, transform_indices = @transform_16, window_bounds = array<i64: 1, 32>}, {pipeline_mode = #tpu.pipeline_mode<synchronous>, transform_indices = @transform_17, window_bounds = array<i64: 1, 32>}, {pipeline_mode = #tpu.pipeline_mode<synchronous>, transform_indices = @transform_18, window_bounds = array<i64: 1, 1>}, {transform_indices = @transform_19, window_bounds = array<i64: 1, 2, 8>}]} {
    %c0 = arith.constant 0 : index
    %c0_0 = arith.constant 0 : index
    %c0_1 = arith.constant 0 : index
    %0 = vector.load %arg1[%c0, %c0_0, %c0_1] : memref<2x8x32xf32, #tpu.memory_space<vmem>>, vector<2x8x32xf32>
    %1 = vector.shape_cast %0 : vector<2x8x32xf32> to vector<16x32xf32>
    %2 = arith.truncf %1 : vector<16x32xf32> to vector<16x32xbf16>
    %c0_2 = arith.constant 0 : index
    %c0_3 = arith.constant 0 : index
    %3 = vector.load %arg3[%c0_2, %c0_3] : memref<32x128xbf16, #tpu.memory_space<vmem>>, vector<32x128xbf16>
    %cst = arith.constant dense<0.000000e+00> : vector<16x128xf32>
    %4 = tpu.matmul %2, %3, %cst {dimension_numbers = #tpu.dot_dimension_numbers<[1], [0], [0], [1], [0, 0, 1, 1], [], []>} : vector<16x32xbf16>, vector<32x128xbf16>, vector<16x128xf32> -> vector<16x128xf32>
    %c0_4 = arith.constant 0 : index
    %c0_5 = arith.constant 0 : index
    %5 = vector.load %arg4[%c0_4, %c0_5] : memref<1x128xf32, #tpu.memory_space<vmem>>, vector<1x128xf32>
    %6 = vector.broadcast %5 : vector<1x128xf32> to vector<16x128xf32>
    %7 = arith.addf %4, %6 : vector<16x128xf32>
    %8 = vector.extract_strided_slice %7 {offsets = [0, 0], sizes = [16, 32], strides = [1, 1]} : vector<16x128xf32> to vector<16x32xf32>
    %9 = vector.extract_strided_slice %7 {offsets = [0, 32], sizes = [16, 32], strides = [1, 1]} : vector<16x128xf32> to vector<16x32xf32>
    %10 = vector.shape_cast %9 : vector<16x32xf32> to vector<2x8x32xf32>
    %11 = vector.extract_strided_slice %7 {offsets = [0, 64], sizes = [16, 32], strides = [1, 1]} : vector<16x128xf32> to vector<16x32xf32>
    %12 = vector.shape_cast %11 : vector<16x32xf32> to vector<2x8x32xf32>
    %13 = vector.extract_strided_slice %7 {offsets = [0, 96], sizes = [16, 32], strides = [1, 1]} : vector<16x128xf32> to vector<16x32xf32>
    %14 = vector.shape_cast %13 : vector<16x32xf32> to vector<2x8x32xf32>
    %c0_6 = arith.constant 0 : index
    %c0_7 = arith.constant 0 : index
    %c0_8 = arith.constant 0 : index
    %15 = vector.load %arg2[%c0_6, %c0_7, %c0_8] : memref<2x1x8xf32, #tpu.memory_space<vmem>>, vector<2x1x8xf32>
    %cst_9 = arith.constant 5.000000e-01 : f32
    %16 = vector.broadcast %cst_9 : f32 to vector<2x1x8xf32>
    %17 = arith.cmpf ogt, %15, %16 : vector<2x1x8xf32>
    %18 = tpu.iota {dimensions = array<i32: 0>} : vector<8x8xi32>
    %19 = tpu.iota {dimensions = array<i32: 1>} : vector<8x8xi32>
    %20 = arith.cmpi sle, %19, %18 : vector<8x8xi32>
    %21 = vector.shape_cast %20 : vector<8x8xi1> to vector<1x8x8xi1>
    %22 = vector.broadcast %17 : vector<2x1x8xi1> to vector<2x8x8xi1>
    %23 = vector.broadcast %21 : vector<1x8x8xi1> to vector<2x8x8xi1>
    %24 = arith.andi %22, %23 : vector<2x8x8xi1>
    %cst_10 = arith.constant 0.000000e+00 : f32
    %cst_11 = arith.constant -1.000000e+09 : f32
    %25 = vector.broadcast %cst_10 : f32 to vector<2x8x8xf32>
    %26 = vector.broadcast %cst_11 : f32 to vector<2x8x8xf32>
    %27 = arith.select %24, %25, %26 : vector<2x8x8xi1>, vector<2x8x8xf32>
    %cst_12 = arith.constant 0.000000e+00 : f32
    %28 = vector.broadcast %cst_12 : f32 to vector<16x32xf32>
    %29 = vector.extract_strided_slice %10 {offsets = [0, 0, 0], sizes = [2, 8, 8], strides = [1, 1, 1]} : vector<2x8x32xf32> to vector<2x8x8xf32>
    %30 = arith.truncf %29 : vector<2x8x8xf32> to vector<2x8x8xbf16>
    %31 = vector.extract_strided_slice %12 {offsets = [0, 0, 0], sizes = [2, 8, 8], strides = [1, 1, 1]} : vector<2x8x32xf32> to vector<2x8x8xf32>
    %32 = arith.truncf %31 : vector<2x8x8xf32> to vector<2x8x8xbf16>
    %33 = vector.extract_strided_slice %14 {offsets = [0, 0, 0], sizes = [2, 8, 8], strides = [1, 1, 1]} : vector<2x8x32xf32> to vector<2x8x8xf32>
    %34 = arith.truncf %33 : vector<2x8x8xf32> to vector<2x8x8xbf16>
    "tpu.trace_start"() <{level = 10 : i32, message = "bld,bmd->blm"}> : () -> ()
    %cst_13 = arith.constant dense<0.000000e+00> : vector<2x8x8xf32>
    %35 = tpu.matmul %30, %32, %cst_13 {dimension_numbers = #tpu.dot_dimension_numbers<[2], [2], [1], [1], [0, 0, 0, 1, 1, 1], [0], [0]>} : vector<2x8x8xbf16>, vector<2x8x8xbf16>, vector<2x8x8xf32> -> vector<2x8x8xf32>
    "tpu.trace_stop"() : () -> ()
    %cst_14 = arith.constant 0.353553385 : f32
    %36 = vector.broadcast %cst_14 : f32 to vector<2x8x8xf32>
    %37 = arith.mulf %35, %36 : vector<2x8x8xf32>
    %38 = arith.addf %37, %27 : vector<2x8x8xf32>
    %cst_15 = arith.constant dense<0xFF800000> : vector<2x8xf32>
    %39 = vector.multi_reduction <maximumf>, %38, %cst_15 [2] : vector<2x8x8xf32> to vector<2x8xf32>
    %40 = vector.shape_cast %39 : vector<2x8xf32> to vector<2x8x1xf32>
    %41 = vector.broadcast %40 : vector<2x8x1xf32> to vector<2x8x8xf32>
    %42 = arith.subf %38, %41 : vector<2x8x8xf32>
    %43 = math.exp %42 : vector<2x8x8xf32>
    %cst_16 = arith.constant dense<0.000000e+00> : vector<2x8xf32>
    %44 = vector.multi_reduction <add>, %43, %cst_16 [2] : vector<2x8x8xf32> to vector<2x8xf32>
    %45 = vector.shape_cast %44 : vector<2x8xf32> to vector<2x8x1xf32>
    %46 = tpu.reciprocal %45 {approx = true} : vector<2x8x1xf32> -> vector<2x8x1xf32>
    %47 = vector.broadcast %46 : vector<2x8x1xf32> to vector<2x8x8xf32>
    %48 = arith.mulf %43, %47 : vector<2x8x8xf32>
    %49 = arith.truncf %48 : vector<2x8x8xf32> to vector<2x8x8xbf16>
    "tpu.trace_start"() <{level = 10 : i32, message = "blm,bmd->bld"}> : () -> ()
    %cst_17 = arith.constant dense<0.000000e+00> : vector<2x8x8xf32>
    %50 = tpu.matmul %49, %34, %cst_17 {dimension_numbers = #tpu.dot_dimension_numbers<[2], [1], [1], [2], [0, 0, 0, 1, 1, 2], [0], [0]>} : vector<2x8x8xbf16>, vector<2x8x8xbf16>, vector<2x8x8xf32> -> vector<2x8x8xf32>
    "tpu.trace_stop"() : () -> ()
    %51 = vector.shape_cast %50 : vector<2x8x8xf32> to vector<16x8xf32>
    %c0_18 = arith.constant 0 : index
    %c0_19 = arith.constant 0 : index
    %c0_20 = arith.constant 0 : index
    %52 = vector.load %arg5[%c0_18, %c0_19, %c0_20] : memref<4x8x32xbf16, #tpu.memory_space<vmem>>, vector<1x8x32xbf16>
    %53 = vector.shape_cast %52 : vector<1x8x32xbf16> to vector<8x32xbf16>
    %54 = arith.truncf %51 : vector<16x8xf32> to vector<16x8xbf16>
    %cst_21 = arith.constant dense<0.000000e+00> : vector<16x32xf32>
    %55 = tpu.matmul %54, %53, %cst_21 {dimension_numbers = #tpu.dot_dimension_numbers<[1], [0], [0], [1], [0, 0, 1, 1], [], []>} : vector<16x8xbf16>, vector<8x32xbf16>, vector<16x32xf32> -> vector<16x32xf32>
    %56 = arith.addf %28, %55 : vector<16x32xf32>
    %57 = vector.extract_strided_slice %10 {offsets = [0, 0, 8], sizes = [2, 8, 8], strides = [1, 1, 1]} : vector<2x8x32xf32> to vector<2x8x8xf32>
    %58 = arith.truncf %57 : vector<2x8x8xf32> to vector<2x8x8xbf16>
    %59 = vector.extract_strided_slice %12 {offsets = [0, 0, 8], sizes = [2, 8, 8], strides = [1, 1, 1]} : vector<2x8x32xf32> to vector<2x8x8xf32>
    %60 = arith.truncf %59 : vector<2x8x8xf32> to vector<2x8x8xbf16>
    %61 = vector.extract_strided_slice %14 {offsets = [0, 0, 8], sizes = [2, 8, 8], strides = [1, 1, 1]} : vector<2x8x32xf32> to vector<2x8x8xf32>
    %62 = arith.truncf %61 : vector<2x8x8xf32> to vector<2x8x8xbf16>
    "tpu.trace_start"() <{level = 10 : i32, message = "bld,bmd->blm"}> : () -> ()
    %cst_22 = arith.constant dense<0.000000e+00> : vector<2x8x8xf32>
    %63 = tpu.matmul %58, %60, %cst_22 {dimension_numbers = #tpu.dot_dimension_numbers<[2], [2], [1], [1], [0, 0, 0, 1, 1, 1], [0], [0]>} : vector<2x8x8xbf16>, vector<2x8x8xbf16>, vector<2x8x8xf32> -> vector<2x8x8xf32>
    "tpu.trace_stop"() : () -> ()
    %cst_23 = arith.constant 0.353553385 : f32
    %64 = vector.broadcast %cst_23 : f32 to vector<2x8x8xf32>
    %65 = arith.mulf %63, %64 : vector<2x8x8xf32>
    %66 = arith.addf %65, %27 : vector<2x8x8xf32>
    %cst_24 = arith.constant dense<0xFF800000> : vector<2x8xf32>
    %67 = vector.multi_reduction <maximumf>, %66, %cst_24 [2] : vector<2x8x8xf32> to vector<2x8xf32>
    %68 = vector.shape_cast %67 : vector<2x8xf32> to vector<2x8x1xf32>
    %69 = vector.broadcast %68 : vector<2x8x1xf32> to vector<2x8x8xf32>
    %70 = arith.subf %66, %69 : vector<2x8x8xf32>
    %71 = math.exp %70 : vector<2x8x8xf32>
    %cst_25 = arith.constant dense<0.000000e+00> : vector<2x8xf32>
    %72 = vector.multi_reduction <add>, %71, %cst_25 [2] : vector<2x8x8xf32> to vector<2x8xf32>
    %73 = vector.shape_cast %72 : vector<2x8xf32> to vector<2x8x1xf32>
    %74 = tpu.reciprocal %73 {approx = true} : vector<2x8x1xf32> -> vector<2x8x1xf32>
    %75 = vector.broadcast %74 : vector<2x8x1xf32> to vector<2x8x8xf32>
    %76 = arith.mulf %71, %75 : vector<2x8x8xf32>
    %77 = arith.truncf %76 : vector<2x8x8xf32> to vector<2x8x8xbf16>
    "tpu.trace_start"() <{level = 10 : i32, message = "blm,bmd->bld"}> : () -> ()
    %cst_26 = arith.constant dense<0.000000e+00> : vector<2x8x8xf32>
    %78 = tpu.matmul %77, %62, %cst_26 {dimension_numbers = #tpu.dot_dimension_numbers<[2], [1], [1], [2], [0, 0, 0, 1, 1, 2], [0], [0]>} : vector<2x8x8xbf16>, vector<2x8x8xbf16>, vector<2x8x8xf32> -> vector<2x8x8xf32>
    "tpu.trace_stop"() : () -> ()
    %79 = vector.shape_cast %78 : vector<2x8x8xf32> to vector<16x8xf32>
    %c1 = arith.constant 1 : index
    %c0_27 = arith.constant 0 : index
    %c0_28 = arith.constant 0 : index
    %80 = vector.load %arg5[%c1, %c0_27, %c0_28] : memref<4x8x32xbf16, #tpu.memory_space<vmem>>, vector<1x8x32xbf16>
    %81 = vector.shape_cast %80 : vector<1x8x32xbf16> to vector<8x32xbf16>
    %82 = arith.truncf %79 : vector<16x8xf32> to vector<16x8xbf16>
    %cst_29 = arith.constant dense<0.000000e+00> : vector<16x32xf32>
    %83 = tpu.matmul %82, %81, %cst_29 {dimension_numbers = #tpu.dot_dimension_numbers<[1], [0], [0], [1], [0, 0, 1, 1], [], []>} : vector<16x8xbf16>, vector<8x32xbf16>, vector<16x32xf32> -> vector<16x32xf32>
    %84 = arith.addf %56, %83 : vector<16x32xf32>
    %85 = vector.extract_strided_slice %10 {offsets = [0, 0, 16], sizes = [2, 8, 8], strides = [1, 1, 1]} : vector<2x8x32xf32> to vector<2x8x8xf32>
    %86 = arith.truncf %85 : vector<2x8x8xf32> to vector<2x8x8xbf16>
    %87 = vector.extract_strided_slice %12 {offsets = [0, 0, 16], sizes = [2, 8, 8], strides = [1, 1, 1]} : vector<2x8x32xf32> to vector<2x8x8xf32>
    %88 = arith.truncf %87 : vector<2x8x8xf32> to vector<2x8x8xbf16>
    %89 = vector.extract_strided_slice %14 {offsets = [0, 0, 16], sizes = [2, 8, 8], strides = [1, 1, 1]} : vector<2x8x32xf32> to vector<2x8x8xf32>
    %90 = arith.truncf %89 : vector<2x8x8xf32> to vector<2x8x8xbf16>
    "tpu.trace_start"() <{level = 10 : i32, message = "bld,bmd->blm"}> : () -> ()
    %cst_30 = arith.constant dense<0.000000e+00> : vector<2x8x8xf32>
    %91 = tpu.matmul %86, %88, %cst_30 {dimension_numbers = #tpu.dot_dimension_numbers<[2], [2], [1], [1], [0, 0, 0, 1, 1, 1], [0], [0]>} : vector<2x8x8xbf16>, vector<2x8x8xbf16>, vector<2x8x8xf32> -> vector<2x8x8xf32>
    "tpu.trace_stop"() : () -> ()
    %cst_31 = arith.constant 0.353553385 : f32
    %92 = vector.broadcast %cst_31 : f32 to vector<2x8x8xf32>
    %93 = arith.mulf %91, %92 : vector<2x8x8xf32>
    %94 = arith.addf %93, %27 : vector<2x8x8xf32>
    %cst_32 = arith.constant dense<0xFF800000> : vector<2x8xf32>
    %95 = vector.multi_reduction <maximumf>, %94, %cst_32 [2] : vector<2x8x8xf32> to vector<2x8xf32>
    %96 = vector.shape_cast %95 : vector<2x8xf32> to vector<2x8x1xf32>
    %97 = vector.broadcast %96 : vector<2x8x1xf32> to vector<2x8x8xf32>
    %98 = arith.subf %94, %97 : vector<2x8x8xf32>
    %99 = math.exp %98 : vector<2x8x8xf32>
    %cst_33 = arith.constant dense<0.000000e+00> : vector<2x8xf32>
    %100 = vector.multi_reduction <add>, %99, %cst_33 [2] : vector<2x8x8xf32> to vector<2x8xf32>
    %101 = vector.shape_cast %100 : vector<2x8xf32> to vector<2x8x1xf32>
    %102 = tpu.reciprocal %101 {approx = true} : vector<2x8x1xf32> -> vector<2x8x1xf32>
    %103 = vector.broadcast %102 : vector<2x8x1xf32> to vector<2x8x8xf32>
    %104 = arith.mulf %99, %103 : vector<2x8x8xf32>
    %105 = arith.truncf %104 : vector<2x8x8xf32> to vector<2x8x8xbf16>
    "tpu.trace_start"() <{level = 10 : i32, message = "blm,bmd->bld"}> : () -> ()
    %cst_34 = arith.constant dense<0.000000e+00> : vector<2x8x8xf32>
    %106 = tpu.matmul %105, %90, %cst_34 {dimension_numbers = #tpu.dot_dimension_numbers<[2], [1], [1], [2], [0, 0, 0, 1, 1, 2], [0], [0]>} : vector<2x8x8xbf16>, vector<2x8x8xbf16>, vector<2x8x8xf32> -> vector<2x8x8xf32>
    "tpu.trace_stop"() : () -> ()
    %107 = vector.shape_cast %106 : vector<2x8x8xf32> to vector<16x8xf32>
    %c2 = arith.constant 2 : index
    %c0_35 = arith.constant 0 : index
    %c0_36 = arith.constant 0 : index
    %108 = vector.load %arg5[%c2, %c0_35, %c0_36] : memref<4x8x32xbf16, #tpu.memory_space<vmem>>, vector<1x8x32xbf16>
    %109 = vector.shape_cast %108 : vector<1x8x32xbf16> to vector<8x32xbf16>
    %110 = arith.truncf %107 : vector<16x8xf32> to vector<16x8xbf16>
    %cst_37 = arith.constant dense<0.000000e+00> : vector<16x32xf32>
    %111 = tpu.matmul %110, %109, %cst_37 {dimension_numbers = #tpu.dot_dimension_numbers<[1], [0], [0], [1], [0, 0, 1, 1], [], []>} : vector<16x8xbf16>, vector<8x32xbf16>, vector<16x32xf32> -> vector<16x32xf32>
    %112 = arith.addf %84, %111 : vector<16x32xf32>
    %113 = vector.extract_strided_slice %10 {offsets = [0, 0, 24], sizes = [2, 8, 8], strides = [1, 1, 1]} : vector<2x8x32xf32> to vector<2x8x8xf32>
    %114 = arith.truncf %113 : vector<2x8x8xf32> to vector<2x8x8xbf16>
    %115 = vector.extract_strided_slice %12 {offsets = [0, 0, 24], sizes = [2, 8, 8], strides = [1, 1, 1]} : vector<2x8x32xf32> to vector<2x8x8xf32>
    %116 = arith.truncf %115 : vector<2x8x8xf32> to vector<2x8x8xbf16>
    %117 = vector.extract_strided_slice %14 {offsets = [0, 0, 24], sizes = [2, 8, 8], strides = [1, 1, 1]} : vector<2x8x32xf32> to vector<2x8x8xf32>
    %118 = arith.truncf %117 : vector<2x8x8xf32> to vector<2x8x8xbf16>
    "tpu.trace_start"() <{level = 10 : i32, message = "bld,bmd->blm"}> : () -> ()
    %cst_38 = arith.constant dense<0.000000e+00> : vector<2x8x8xf32>
    %119 = tpu.matmul %114, %116, %cst_38 {dimension_numbers = #tpu.dot_dimension_numbers<[2], [2], [1], [1], [0, 0, 0, 1, 1, 1], [0], [0]>} : vector<2x8x8xbf16>, vector<2x8x8xbf16>, vector<2x8x8xf32> -> vector<2x8x8xf32>
    "tpu.trace_stop"() : () -> ()
    %cst_39 = arith.constant 0.353553385 : f32
    %120 = vector.broadcast %cst_39 : f32 to vector<2x8x8xf32>
    %121 = arith.mulf %119, %120 : vector<2x8x8xf32>
    %122 = arith.addf %121, %27 : vector<2x8x8xf32>
    %cst_40 = arith.constant dense<0xFF800000> : vector<2x8xf32>
    %123 = vector.multi_reduction <maximumf>, %122, %cst_40 [2] : vector<2x8x8xf32> to vector<2x8xf32>
    %124 = vector.shape_cast %123 : vector<2x8xf32> to vector<2x8x1xf32>
    %125 = vector.broadcast %124 : vector<2x8x1xf32> to vector<2x8x8xf32>
    %126 = arith.subf %122, %125 : vector<2x8x8xf32>
    %127 = math.exp %126 : vector<2x8x8xf32>
    %cst_41 = arith.constant dense<0.000000e+00> : vector<2x8xf32>
    %128 = vector.multi_reduction <add>, %127, %cst_41 [2] : vector<2x8x8xf32> to vector<2x8xf32>
    %129 = vector.shape_cast %128 : vector<2x8xf32> to vector<2x8x1xf32>
    %130 = tpu.reciprocal %129 {approx = true} : vector<2x8x1xf32> -> vector<2x8x1xf32>
    %131 = vector.broadcast %130 : vector<2x8x1xf32> to vector<2x8x8xf32>
    %132 = arith.mulf %127, %131 : vector<2x8x8xf32>
    %133 = arith.truncf %132 : vector<2x8x8xf32> to vector<2x8x8xbf16>
    "tpu.trace_start"() <{level = 10 : i32, message = "blm,bmd->bld"}> : () -> ()
    %cst_42 = arith.constant dense<0.000000e+00> : vector<2x8x8xf32>
    %134 = tpu.matmul %133, %118, %cst_42 {dimension_numbers = #tpu.dot_dimension_numbers<[2], [1], [1], [2], [0, 0, 0, 1, 1, 2], [0], [0]>} : vector<2x8x8xbf16>, vector<2x8x8xbf16>, vector<2x8x8xf32> -> vector<2x8x8xf32>
    "tpu.trace_stop"() : () -> ()
    %135 = vector.shape_cast %134 : vector<2x8x8xf32> to vector<16x8xf32>
    %c3 = arith.constant 3 : index
    %c0_43 = arith.constant 0 : index
    %c0_44 = arith.constant 0 : index
    %136 = vector.load %arg5[%c3, %c0_43, %c0_44] : memref<4x8x32xbf16, #tpu.memory_space<vmem>>, vector<1x8x32xbf16>
    %137 = vector.shape_cast %136 : vector<1x8x32xbf16> to vector<8x32xbf16>
    %138 = arith.truncf %135 : vector<16x8xf32> to vector<16x8xbf16>
    %cst_45 = arith.constant dense<0.000000e+00> : vector<16x32xf32>
    %139 = tpu.matmul %138, %137, %cst_45 {dimension_numbers = #tpu.dot_dimension_numbers<[1], [0], [0], [1], [0, 0, 1, 1], [], []>} : vector<16x8xbf16>, vector<8x32xbf16>, vector<16x32xf32> -> vector<16x32xf32>
    %140 = arith.addf %112, %139 : vector<16x32xf32>
    %c0_46 = arith.constant 0 : index
    %c0_47 = arith.constant 0 : index
    %141 = vector.load %arg6[%c0_46, %c0_47] : memref<1x32xf32, #tpu.memory_space<vmem>>, vector<1x32xf32>
    %142 = vector.broadcast %141 : vector<1x32xf32> to vector<16x32xf32>
    %143 = arith.addf %140, %142 : vector<16x32xf32>
    %144 = arith.addf %1, %143 : vector<16x32xf32>
    %c0_48 = arith.constant 0 : index
    %c0_49 = arith.constant 0 : index
    %145 = vector.load %arg7[%c0_48, %c0_49] : memref<1x32xf32, #tpu.memory_space<vmem>>, vector<1x32xf32>
    %c0_50 = arith.constant 0 : index
    %c0_51 = arith.constant 0 : index
    %146 = vector.load %arg8[%c0_50, %c0_51] : memref<1x32xf32, #tpu.memory_space<vmem>>, vector<1x32xf32>
    %cst_52 = arith.constant dense<0.000000e+00> : vector<16xf32>
    %147 = vector.multi_reduction <add>, %144, %cst_52 [1] : vector<16x32xf32> to vector<16xf32>
    %148 = vector.shape_cast %147 : vector<16xf32> to vector<16x1xf32>
    %cst_53 = arith.constant 3.200000e+01 : f32
    %149 = vector.broadcast %cst_53 : f32 to vector<16x1xf32>
    %150 = arith.divf %148, %149 : vector<16x1xf32>
    %151 = vector.broadcast %150 : vector<16x1xf32> to vector<16x32xf32>
    %152 = arith.subf %144, %151 : vector<16x32xf32>
    %153 = arith.mulf %152, %152 : vector<16x32xf32>
    %cst_54 = arith.constant dense<0.000000e+00> : vector<16xf32>
    %154 = vector.multi_reduction <add>, %153, %cst_54 [1] : vector<16x32xf32> to vector<16xf32>
    %155 = vector.shape_cast %154 : vector<16xf32> to vector<16x1xf32>
    %cst_55 = arith.constant 3.200000e+01 : f32
    %156 = vector.broadcast %cst_55 : f32 to vector<16x1xf32>
    %157 = arith.divf %155, %156 : vector<16x1xf32>
    %158 = vector.broadcast %150 : vector<16x1xf32> to vector<16x32xf32>
    %159 = arith.subf %144, %158 : vector<16x32xf32>
    %cst_56 = arith.constant 9.99999974E-6 : f32
    %160 = vector.broadcast %cst_56 : f32 to vector<16x1xf32>
    %161 = arith.addf %157, %160 : vector<16x1xf32>
    %162 = math.rsqrt %161 : vector<16x1xf32>
    %163 = vector.broadcast %162 : vector<16x1xf32> to vector<16x32xf32>
    %164 = arith.mulf %159, %163 : vector<16x32xf32>
    %165 = vector.broadcast %145 : vector<1x32xf32> to vector<16x32xf32>
    %166 = arith.mulf %164, %165 : vector<16x32xf32>
    %167 = vector.broadcast %146 : vector<1x32xf32> to vector<16x32xf32>
    %168 = arith.addf %166, %167 : vector<16x32xf32>
    %c0_57 = arith.constant 0 : index
    %c0_58 = arith.constant 0 : index
    %169 = vector.load %arg9[%c0_57, %c0_58] : memref<32x64xbf16, #tpu.memory_space<vmem>>, vector<32x64xbf16>
    %170 = arith.truncf %168 : vector<16x32xf32> to vector<16x32xbf16>
    %cst_59 = arith.constant dense<0.000000e+00> : vector<16x64xf32>
    %171 = tpu.matmul %170, %169, %cst_59 {dimension_numbers = #tpu.dot_dimension_numbers<[1], [0], [0], [1], [0, 0, 1, 1], [], []>} : vector<16x32xbf16>, vector<32x64xbf16>, vector<16x64xf32> -> vector<16x64xf32>
    %c0_60 = arith.constant 0 : index
    %c0_61 = arith.constant 0 : index
    %172 = vector.load %arg10[%c0_60, %c0_61] : memref<1x64xf32, #tpu.memory_space<vmem>>, vector<1x64xf32>
    %173 = vector.broadcast %172 : vector<1x64xf32> to vector<16x64xf32>
    %174 = arith.addf %171, %173 : vector<16x64xf32>
    %175 = arith.mulf %174, %174 : vector<16x64xf32>
    %176 = arith.mulf %174, %175 : vector<16x64xf32>
    %cst_62 = arith.constant 4.471500e-02 : f32
    %177 = vector.broadcast %cst_62 : f32 to vector<16x64xf32>
    %178 = arith.mulf %177, %176 : vector<16x64xf32>
    %179 = arith.addf %174, %178 : vector<16x64xf32>
    %cst_63 = arith.constant 0.797884583 : f32
    %180 = vector.broadcast %cst_63 : f32 to vector<16x64xf32>
    %181 = arith.mulf %180, %179 : vector<16x64xf32>
    %182 = math.tanh %181 : vector<16x64xf32>
    %cst_64 = arith.constant 1.000000e+00 : f32
    %183 = vector.broadcast %cst_64 : f32 to vector<16x64xf32>
    %184 = arith.addf %183, %182 : vector<16x64xf32>
    %cst_65 = arith.constant 5.000000e-01 : f32
    %185 = vector.broadcast %cst_65 : f32 to vector<16x64xf32>
    %186 = arith.mulf %185, %184 : vector<16x64xf32>
    %187 = arith.mulf %174, %186 : vector<16x64xf32>
    %c0_66 = arith.constant 0 : index
    %c0_67 = arith.constant 0 : index
    %188 = vector.load %arg11[%c0_66, %c0_67] : memref<64x32xbf16, #tpu.memory_space<vmem>>, vector<64x32xbf16>
    %189 = arith.truncf %187 : vector<16x64xf32> to vector<16x64xbf16>
    %cst_68 = arith.constant dense<0.000000e+00> : vector<16x32xf32>
    %190 = tpu.matmul %189, %188, %cst_68 {dimension_numbers = #tpu.dot_dimension_numbers<[1], [0], [0], [1], [0, 0, 1, 1], [], []>} : vector<16x64xbf16>, vector<64x32xbf16>, vector<16x32xf32> -> vector<16x32xf32>
    %c0_69 = arith.constant 0 : index
    %c0_70 = arith.constant 0 : index
    %191 = vector.load %arg12[%c0_69, %c0_70] : memref<1x32xf32, #tpu.memory_space<vmem>>, vector<1x32xf32>
    %192 = vector.broadcast %191 : vector<1x32xf32> to vector<16x32xf32>
    %193 = arith.addf %190, %192 : vector<16x32xf32>
    %194 = arith.addf %168, %193 : vector<16x32xf32>
    %c0_71 = arith.constant 0 : index
    %c0_72 = arith.constant 0 : index
    %195 = vector.load %arg13[%c0_71, %c0_72] : memref<1x32xf32, #tpu.memory_space<vmem>>, vector<1x32xf32>
    %c0_73 = arith.constant 0 : index
    %c0_74 = arith.constant 0 : index
    %196 = vector.load %arg14[%c0_73, %c0_74] : memref<1x32xf32, #tpu.memory_space<vmem>>, vector<1x32xf32>
    %cst_75 = arith.constant dense<0.000000e+00> : vector<16xf32>
    %197 = vector.multi_reduction <add>, %194, %cst_75 [1] : vector<16x32xf32> to vector<16xf32>
    %198 = vector.shape_cast %197 : vector<16xf32> to vector<16x1xf32>
    %cst_76 = arith.constant 3.200000e+01 : f32
    %199 = vector.broadcast %cst_76 : f32 to vector<16x1xf32>
    %200 = arith.divf %198, %199 : vector<16x1xf32>
    %201 = vector.broadcast %200 : vector<16x1xf32> to vector<16x32xf32>
    %202 = arith.subf %194, %201 : vector<16x32xf32>
    %203 = arith.mulf %202, %202 : vector<16x32xf32>
    %cst_77 = arith.constant dense<0.000000e+00> : vector<16xf32>
    %204 = vector.multi_reduction <add>, %203, %cst_77 [1] : vector<16x32xf32> to vector<16xf32>
    %205 = vector.shape_cast %204 : vector<16xf32> to vector<16x1xf32>
    %cst_78 = arith.constant 3.200000e+01 : f32
    %206 = vector.broadcast %cst_78 : f32 to vector<16x1xf32>
    %207 = arith.divf %205, %206 : vector<16x1xf32>
    %208 = vector.broadcast %200 : vector<16x1xf32> to vector<16x32xf32>
    %209 = arith.subf %194, %208 : vector<16x32xf32>
    %cst_79 = arith.constant 9.99999974E-6 : f32
    %210 = vector.broadcast %cst_79 : f32 to vector<16x1xf32>
    %211 = arith.addf %207, %210 : vector<16x1xf32>
    %212 = math.rsqrt %211 : vector<16x1xf32>
    %213 = vector.broadcast %212 : vector<16x1xf32> to vector<16x32xf32>
    %214 = arith.mulf %209, %213 : vector<16x32xf32>
    %215 = vector.broadcast %195 : vector<1x32xf32> to vector<16x32xf32>
    %216 = arith.mulf %214, %215 : vector<16x32xf32>
    %217 = vector.broadcast %196 : vector<1x32xf32> to vector<16x32xf32>
    %218 = arith.addf %216, %217 : vector<16x32xf32>
    %c0_80 = arith.constant 0 : index
    %c0_81 = arith.constant 0 : index
    %219 = vector.load %arg15[%c0_80, %c0_81] : memref<32x32xbf16, #tpu.memory_space<vmem>>, vector<32x32xbf16>
    %220 = arith.truncf %218 : vector<16x32xf32> to vector<16x32xbf16>
    %cst_82 = arith.constant dense<0.000000e+00> : vector<16x32xf32>
    %221 = tpu.matmul %220, %219, %cst_82 {dimension_numbers = #tpu.dot_dimension_numbers<[1], [0], [0], [1], [0, 0, 1, 1], [], []>} : vector<16x32xbf16>, vector<32x32xbf16>, vector<16x32xf32> -> vector<16x32xf32>
    %c0_83 = arith.constant 0 : index
    %c0_84 = arith.constant 0 : index
    %222 = vector.load %arg16[%c0_83, %c0_84] : memref<32x32xbf16, #tpu.memory_space<vmem>>, vector<32x32xbf16>
    %223 = arith.truncf %8 : vector<16x32xf32> to vector<16x32xbf16>
    %cst_85 = arith.constant dense<0.000000e+00> : vector<16x32xf32>
    %224 = tpu.matmul %223, %222, %cst_85 {dimension_numbers = #tpu.dot_dimension_numbers<[1], [0], [0], [1], [0, 0, 1, 1], [], []>} : vector<16x32xbf16>, vector<32x32xbf16>, vector<16x32xf32> -> vector<16x32xf32>
    %225 = arith.addf %221, %224 : vector<16x32xf32>
    %c0_86 = arith.constant 0 : index
    %c0_87 = arith.constant 0 : index
    %226 = vector.load %arg17[%c0_86, %c0_87] : memref<1x32xf32, #tpu.memory_space<vmem>>, vector<1x32xf32>
    %227 = vector.broadcast %226 : vector<1x32xf32> to vector<16x32xf32>
    %228 = arith.addf %225, %227 : vector<16x32xf32>
    %cst_88 = arith.constant 0.000000e+00 : f32
    %229 = vector.broadcast %cst_88 : f32 to vector<16x32xf32>
    %230 = arith.maximumf %228, %229 : vector<16x32xf32>
    %231 = vector.shape_cast %230 : vector<16x32xf32> to vector<2x8x32xf32>
    %c0_89 = arith.constant 0 : index
    %c0_90 = arith.constant 0 : index
    %232 = vector.load %arg18[%c0_89, %c0_90] : memref<1x32xf32, #tpu.memory_space<vmem>>, vector<1x32xf32>
    %233 = vector.shape_cast %232 : vector<1x32xf32> to vector<1x1x32xf32>
    %234 = vector.broadcast %233 : vector<1x1x32xf32> to vector<2x8x32xf32>
    %235 = arith.mulf %231, %234 : vector<2x8x32xf32>
    %cst_91 = arith.constant dense<0.000000e+00> : vector<2x8xf32>
    %236 = vector.multi_reduction <add>, %235, %cst_91 [2] : vector<2x8x32xf32> to vector<2x8xf32>
    %c0_92 = arith.constant 0 : index
    %c0_93 = arith.constant 0 : index
    %237 = vector.load %arg19[%c0_92, %c0_93] : memref<1x1xf32, #tpu.memory_space<vmem>>, vector<1x1xf32>
    %238 = vector.broadcast %237 : vector<1x1xf32> to vector<2x8xf32>
    %239 = arith.addf %236, %238 : vector<2x8xf32>
    %cst_94 = arith.constant 0.000000e+00 : f32
    %240 = vector.broadcast %cst_94 : f32 to vector<2x8xf32>
    %241 = arith.subf %240, %239 : vector<2x8xf32>
    %242 = math.exp %241 : vector<2x8xf32>
    %cst_95 = arith.constant 1.000000e+00 : f32
    %243 = vector.broadcast %cst_95 : f32 to vector<2x8xf32>
    %244 = arith.addf %243, %242 : vector<2x8xf32>
    %cst_96 = arith.constant 1.000000e+00 : f32
    %245 = vector.broadcast %cst_96 : f32 to vector<2x8xf32>
    %246 = arith.divf %245, %244 : vector<2x8xf32>
    %c0_97 = arith.constant 0 : index
    %c0_98 = arith.constant 0 : index
    %c0_99 = arith.constant 0 : index
    %247 = vector.load %arg20[%c0_97, %c0_98, %c0_99] : memref<1x2x8xf32, #tpu.memory_space<vmem>>, vector<1x2x8xf32>
    %248 = vector.shape_cast %247 : vector<1x2x8xf32> to vector<2x8xf32>
    %249 = vector.shape_cast %246 : vector<2x8xf32> to vector<1x2x8xf32>
    tpu.vector_store %arg20[%c0_97, %c0_98, %c0_99], %249 {strides = array<i32>} : memref<1x2x8xf32, #tpu.memory_space<vmem>>, vector<1x2x8xf32>,
    return
  }
  func.func @transform_0(%arg0: i32) -> (i32, i32, i32) {
    %c0_i32 = arith.constant 0 : i32
    %c0_i32_0 = arith.constant 0 : i32
    %c0_i32_1 = arith.constant 0 : i32
    return %arg0, %c0_i32, %c0_i32_0 : i32, i32, i32
  }
  func.func @transform_1(%arg0: i32) -> (i32, i32, i32) {
    %c0_i32 = arith.constant 0 : i32
    %c0_i32_0 = arith.constant 0 : i32
    %c0_i32_1 = arith.constant 0 : i32
    return %arg0, %c0_i32, %c0_i32_0 : i32, i32, i32
  }
  func.func @transform_2(%arg0: i32) -> (i32, i32) {
    %c0_i32 = arith.constant 0 : i32
    %c0_i32_0 = arith.constant 0 : i32
    %c0_i32_1 = arith.constant 0 : i32
    return %c0_i32, %c0_i32_0 : i32, i32
  }
  func.func @transform_3(%arg0: i32) -> (i32, i32) {
    %c0_i32 = arith.constant 0 : i32
    %c0_i32_0 = arith.constant 0 : i32
    %c0_i32_1 = arith.constant 0 : i32
    return %c0_i32, %c0_i32_0 : i32, i32
  }
  func.func @transform_4(%arg0: i32) -> (i32, i32, i32) {
    %c0_i32 = arith.constant 0 : i32
    %c0_i32_0 = arith.constant 0 : i32
    %c0_i32_1 = arith.constant 0 : i32
    %c0_i32_2 = arith.constant 0 : i32
    return %c0_i32, %c0_i32_0, %c0_i32_1 : i32, i32, i32
  }
  func.func @transform_5(%arg0: i32) -> (i32, i32) {
    %c0_i32 = arith.constant 0 : i32
    %c0_i32_0 = arith.constant 0 : i32
    %c0_i32_1 = arith.constant 0 : i32
    return %c0_i32, %c0_i32_0 : i32, i32
  }
  func.func @transform_6(%arg0: i32) -> (i32, i32) {
    %c0_i32 = arith.constant 0 : i32
    %c0_i32_0 = arith.constant 0 : i32
    %c0_i32_1 = arith.constant 0 : i32
    return %c0_i32, %c0_i32_0 : i32, i32
  }
  func.func @transform_7(%arg0: i32) -> (i32, i32) {
    %c0_i32 = arith.constant 0 : i32
    %c0_i32_0 = arith.constant 0 : i32
    %c0_i32_1 = arith.constant 0 : i32
    return %c0_i32, %c0_i32_0 : i32, i32
  }
  func.func @transform_8(%arg0: i32) -> (i32, i32) {
    %c0_i32 = arith.constant 0 : i32
    %c0_i32_0 = arith.constant 0 : i32
    %c0_i32_1 = arith.constant 0 : i32
    return %c0_i32, %c0_i32_0 : i32, i32
  }
  func.func @transform_9(%arg0: i32) -> (i32, i32) {
    %c0_i32 = arith.constant 0 : i32
    %c0_i32_0 = arith.constant 0 : i32
    %c0_i32_1 = arith.constant 0 : i32
    return %c0_i32, %c0_i32_0 : i32, i32
  }
  func.func @transform_10(%arg0: i32) -> (i32, i32) {
    %c0_i32 = arith.constant 0 : i32
    %c0_i32_0 = arith.constant 0 : i32
    %c0_i32_1 = arith.constant 0 : i32
    return %c0_i32, %c0_i32_0 : i32, i32
  }
  func.func @transform_11(%arg0: i32) -> (i32, i32) {
    %c0_i32 = arith.constant 0 : i32
    %c0_i32_0 = arith.constant 0 : i32
    %c0_i32_1 = arith.constant 0 : i32
    return %c0_i32, %c0_i32_0 : i32, i32
  }
  func.func @transform_12(%arg0: i32) -> (i32, i32) {
    %c0_i32 = arith.constant 0 : i32
    %c0_i32_0 = arith.constant 0 : i32
    %c0_i32_1 = arith.constant 0 : i32
    return %c0_i32, %c0_i32_0 : i32, i32
  }
  func.func @transform_13(%arg0: i32) -> (i32, i32) {
    %c0_i32 = arith.constant 0 : i32
    %c0_i32_0 = arith.constant 0 : i32
    %c0_i32_1 = arith.constant 0 : i32
    return %c0_i32, %c0_i32_0 : i32, i32
  }
  func.func @transform_14(%arg0: i32) -> (i32, i32) {
    %c0_i32 = arith.constant 0 : i32
    %c0_i32_0 = arith.constant 0 : i32
    %c0_i32_1 = arith.constant 0 : i32
    return %c0_i32, %c0_i32_0 : i32, i32
  }
  func.func @transform_15(%arg0: i32) -> (i32, i32) {
    %c0_i32 = arith.constant 0 : i32
    %c0_i32_0 = arith.constant 0 : i32
    %c0_i32_1 = arith.constant 0 : i32
    return %c0_i32, %c0_i32_0 : i32, i32
  }
  func.func @transform_16(%arg0: i32) -> (i32, i32) {
    %c0_i32 = arith.constant 0 : i32
    %c0_i32_0 = arith.constant 0 : i32
    %c0_i32_1 = arith.constant 0 : i32
    return %c0_i32, %c0_i32_0 : i32, i32
  }
  func.func @transform_17(%arg0: i32) -> (i32, i32) {
    %c0_i32 = arith.constant 0 : i32
    %c0_i32_0 = arith.constant 0 : i32
    %c0_i32_1 = arith.constant 0 : i32
    return %c0_i32, %c0_i32_0 : i32, i32
  }
  func.func @transform_18(%arg0: i32) -> (i32, i32) {
    %c0_i32 = arith.constant 0 : i32
    %c0_i32_0 = arith.constant 0 : i32
    %c0_i32_1 = arith.constant 0 : i32
    return %c0_i32, %c0_i32_0 : i32, i32
  }
  func.func @transform_19(%arg0: i32) -> (i32, i32, i32) {
    %c0_i32 = arith.constant 0 : i32
    %c0_i32_0 = arith.constant 0 : i32
    %c0_i32_1 = arith.constant 0 : i32
    return %arg0, %c0_i32, %c0_i32_0 : i32, i32, i32
  }
}

</mosaic_0001>

<bundles_post_ra>
// kernel: tpu_custom_call.1
= control target key start
LH: loop header
LB: loop body
LE: loop exit
PB: predicated region body
PF: predicated region fallthrough
CT: control target
= control target key end

     0   :  { %s4249_s0 = inlined_call_operand.vmem [shape: f32[4,8,32], index: 0, kind: input, shape index: {}]   ;;  %s4250_s1 = inlined_call_operand.hbm [shape: f32[4,1,8], index: 1, kind: input, shape index: {}]   ;;  %s4251_s2 = inlined_call_operand.vmem [shape: bf16[32,128], index: 2, kind: input, shape index: {}]   ;;  %s4252_s3 = inlined_call_operand.vmem [shape: f32[1,128], index: 3, kind: input, shape index: {}]   ;;  %s4253_s4 = inlined_call_operand.hbm [shape: bf16[4,8,32], index: 4, kind: input, shape index: {}]   ;;  %s4254_s5 = inlined_call_operand.hbm [shape: f32[1,32], index: 5, kind: input, shape index: {}]   ;;  %s4255_s6 = inlined_call_operand.hbm [shape: f32[1,32], index: 6, kind: input, shape index: {}]   ;;  %s4256_s7 = inlined_call_operand.hbm [shape: f32[1,32], index: 7, kind: input, shape index: {}]   ;;  %s4257_s8 = inlined_call_operand.vmem [shape: bf16[32,64], index: 8, kind: input, shape index: {}]   ;;  %s4258_s9 = inlined_call_operand.hbm [shape: f32[1,64], index: 9, kind: input, shape index: {}]   ;;  %s4259_s10 = inlined_call_operand.vmem [shape: bf16[64,32], index: 10, kind: input, shape index: {}]   ;;  %s4260_s11 = inlined_call_operand.hbm [shape: f32[1,32], index: 11, kind: input, shape index: {}]   ;;  %s4261_s12 = inlined_call_operand.hbm [shape: f32[1,32], index: 12, kind: input, shape index: {}]   ;;  %s4262_s13 = inlined_call_operand.vmem [shape: f32[1,32], index: 13, kind: input, shape index: {}]   ;;  %s4263_s14 = inlined_call_operand.vmem [shape: bf16[32,32], index: 14, kind: input, shape index: {}]   ;;  %s4264_s15 = inlined_call_operand.hbm [shape: bf16[32,32], index: 15, kind: input, shape index: {}]   ;;  %s4265_s16 = inlined_call_operand.vmem [shape: f32[1,32], index: 16, kind: input, shape index: {}]   ;;  %s4266_s17 = inlined_call_operand.vmem [shape: f32[1,32], index: 17, kind: input, shape index: {}]   ;;  %s4267_s18 = inlined_call_operand.<no memory space> [shape: f32[1,1], index: 18, kind: input, shape index: {}]   ;;  %s4268_s19 = inlined_call_operand.hbm [shape: f32[2,2,8], index: 19, kind: output, shape index: {}]  }
   0x1   :  { %4279 = sst [smem:[#allocation25_spill]] %s4249_s0  ;;  %v24_v0 = vstv %s4267_s18 }
   0x2   :  { %4280 = sst [smem:[#allocation26_spill]] %s4250_s1  ;;  %25 = vst [vmem:[#allocation2] sm:$0x1] %v24_v0 }
   0x3   :  { %4281 = sst [smem:[#allocation27_spill]] %s4251_s2 }
   0x4   :  { %4282 = sst [smem:[#allocation28_spill]] %s4252_s3 }
   0x5   :  { %4283 = sst [smem:[#allocation29_spill]] %s4253_s4 }
   0x6   :  { %4284 = sst [smem:[#allocation30_spill]] %s4254_s5 }
   0x7   :  { %4285 = sst [smem:[#allocation31_spill]] %s4255_s6 }
   0x8   :  { %4286 = sst [smem:[#allocation32_spill]] %s4259_s10 }
   0x9   :  { %4287 = sst [smem:[#allocation33_spill]] %s4262_s13 }
   0xa   :  { %4288 = sst [smem:[#allocation34_spill]] %s4263_s14 }
   0xb   :  { %4289 = sst [smem:[#allocation35_spill]] %s4265_s16 }
   0xc   :  { %4290 = sst [smem:[#allocation36_spill]] %s4266_s17 }
   0xd   :  { %4291 = sst [smem:[#allocation37_spill]] %s4268_s19 }
   0xe   :  { %26 = vsyncpa [#allocation4], 0 }
   0xf   :  { %28 = vsyncpa [#allocation4 + $0x1], 0 }
  0x10   :  { %29 = vsyncpa [#allocation7], 0 }
  0x11   :  { %30 = vsyncpa [#allocation10], 0 }
  0x12   :  { %31 = vsyncpa [#allocation13], 0 }
  0x13   :  { %32 = vsyncpa [#allocation16], 0 }
  0x14   :  { %33 = vsyncpa [#allocation5], 0 }
  0x15   :  { %35 = vsyncpa [#allocation5 + $0x1], 0  ;;  %s3571_s20 = smov 0   ;;  %s3573_s21 = smov 0  }
  0x16   :  { %s3575_s1 = smov 0   ;;  %s3577_s22 = smov 0  }
  0x17 LB: > { %s3438_s18 = smov [#allocation6]   ;;  %s3592_s23 = sadd.s32 4294967295, %s3436_s22   ;;  %s3436_s22 = sphi %s3577_s22, %s4331_s22   ;;  %s3432_s1 = sphi %s3575_s1, %s4330_s1   ;;  %s3428_s21 = sphi %s3573_s21, %s4329_s21   ;;  %s3424_s20 = sphi %s3571_s20, %s4328_s20  }
  0x18   : > { %s499_s2 = sshll.u32 %s3438_s18, 4  ;;  %p2587_p0 = scmp.ge.s32.totalorder %s3436_s22, 1  ;;  %s3597_s2 = int_to_ptr.vmem [resolvable:$true] %s499_s2 }
  0x19   : > { %p4275_p1 = scmp.eq.s32.totalorder %s3592_s23, 0  ;;  %p481_p2 = scmp.lt.s32.totalorder %s3436_s22, 3 }
  0x1a   : > { %s3439_s25 = smov [#allocation9]   ;;  %s3440_s27 = smov [#allocation12]  }
  0x1b   : > { %p3599_p3 = pnand %p2587_p0, %p481_p2  ;;  %s524_s3 = sshll.u32 %s3439_s25, 4  ;;  %s3612_s3 = int_to_ptr.vmem [resolvable:$true] %s524_s3 }
  0x1c   : > { %s549_s28 = sshll.u32 %s3440_s27, 4  ;;  %s4294_s4 = sld [smem:[#allocation29_spill]]  ;;  %s3614_s28 = int_to_ptr.vmem [resolvable:$true] %s549_s28 }
  0x1d   : > { %s4292_s24 = scalar_select %p3599_p3, 1, 0 }
  0x1e   : > { %p2923_p5 = pneg %p3599_p3 }
  0x20   : > { %p3608_p6 = pnand %p2923_p5, %p4275_p1 }
  0x22   : > { %s3100_s30 = scalar_lea.hbm %s4294_s4, 256  ;;  %p3624_p8 = pneg %p3608_p6 }
  0x23   : > { %p3101_p7 = scmp.ne.s32.totalorder %s4294_s4, %s3100_s30  ;;  %p3107_p11 = scmp.lt.u32.totalorder %s3100_s30, %s4294_s4 }
  0x25   : > { %p3103_p9 = pnand %p3624_p8, %p3101_p7 }
  0x27   : > { %p3104_p10 = pneg %p3103_p9 }
  0x29   : > { %p3109_p12 = pnand %p3107_p11, %p3104_p10 }
  0x2b   : > { %3112 = shalt.err (!%p3109_p12)
}
  0x2c   : > { %s3113_s19 = scalar_lea.vmem %s3597_s2, 256  ;;  %p3121_p5 = scmp.lt.s32.totalorder %s3597_s2, %s3597_s2 }
  0x2d   : > { %p3114_p13 = scmp.ne.s32.totalorder %s3597_s2, %s3113_s19  ;;  %p3122_p4 = scmp.lt.s32.totalorder %s3113_s19, %s3113_s19 }
  0x2f   : > { %p3116_p0 = pnand %p3114_p13, %p3624_p8  ;;  %p3123_p7 = por %p3122_p4, %p3121_p5 }
  0x31   : > { %p3117_p2 = pneg %p3116_p0 }
  0x33   : > { %p3124_p9 = pnand %p3123_p7, %p3117_p2 }
  0x35   : > { %3127 = shalt.err (!%p3124_p9)
}
  0x36   : > { %s4274_s29 = smov 64   ;;  %s3442_s17 = smov 4  }
  0x37   : > { %2926 = dma.hbm_to_vmem [thread:$0]  (!%p3608_p6), %s4294_s4, 256, %s3597_s2, [#allocation7], %s4274_s29, %s4274_s29, %s3442_s17  }
  0x38   : > { %s4296_s6 = sld [smem:[#allocation31_spill]] }
  0x3e   : > { %s3128_s19 = scalar_lea.hbm %s4296_s6, 16 }
  0x3f   : > { %p3129_p4 = scmp.ne.s32.totalorder %s4296_s6, %s3128_s19  ;;  %p3135_p12 = scmp.lt.u32.totalorder %s3128_s19, %s4296_s6 }
  0x41   : > { %p3131_p10 = pnand %p3129_p4, %p3624_p8 }
  0x43   : > { %p3132_p11 = pneg %p3131_p10 }
  0x45   : > { %p3137_p13 = pnand %p3135_p12, %p3132_p11 }
  0x47   : > { %3140 = shalt.err (!%p3137_p13)
}
  0x48   : > { %s3141_s2 = scalar_lea.vmem %s3612_s3, 16  ;;  %s3148_s13 = scalar_lea.vmem %s3612_s3, 32 }
  0x49   : > { %p3142_p0 = scmp.ne.s32.totalorder %s3612_s3, %s3141_s2  ;;  %p3149_p7 = scmp.lt.s32.totalorder %s3612_s3, %s3612_s3 }
  0x4a   : > { %p3150_p9 = scmp.lt.s32.totalorder %s3148_s13, %s3141_s2 }
  0x4b   : > { %p3144_p2 = pnand %p3142_p0, %p3624_p8 }
  0x4c   : > { %p3151_p4 = por %p3150_p9, %p3149_p7 }
  0x4d   : > { %p3145_p5 = pneg %p3144_p2 }
  0x4f   : > { %p3152_p10 = pnand %p3151_p4, %p3145_p5 }
  0x51   : > { %3155 = shalt.err (!%p3152_p10)
}
  0x52   : > { %2932 = dma.hbm_to_vmem [thread:$0]  (!%p3608_p6), %s4296_s6, 16, %s3612_s3, [#allocation10]  }
  0x53   : > { %s3156_s30 = scalar_lea.hbm %s4258_s9, 16 }
  0x54   : > { %p3157_p11 = scmp.ne.s32.totalorder %s4258_s9, %s3156_s30  ;;  %p3163_p0 = scmp.lt.u32.totalorder %s3156_s30, %s4258_s9 }
  0x56   : > { %p3159_p12 = pnand %p3157_p11, %p3624_p8 }
  0x58   : > { %p3160_p13 = pneg %p3159_p12 }
  0x5a   : > { %p3165_p2 = pnand %p3163_p0, %p3160_p13 }
  0x5c   : > { %3168 = shalt.err (!%p3165_p2)
}
  0x5d   : > { %s3169_s3 = scalar_lea.vmem %s3614_s28, 16  ;;  %s3176_s13 = scalar_lea.vmem %s3614_s28, 32 }
  0x5e   : > { %p3170_p5 = scmp.ne.s32.totalorder %s3614_s28, %s3169_s3  ;;  %p3177_p4 = scmp.lt.s32.totalorder %s3614_s28, %s3614_s28 }
  0x5f   : > { %p3178_p10 = scmp.lt.s32.totalorder %s3176_s13, %s3169_s3 }
  0x60   : > { %p3172_p7 = pnand %p3170_p5, %p3624_p8 }
  0x61   : > { %p3179_p11 = por %p3178_p10, %p3177_p4 }
  0x62   : > { %p3173_p9 = pneg %p3172_p7 }
  0x64   : > { %p3180_p12 = pnand %p3179_p11, %p3173_p9 }
  0x66   : > { %3183 = shalt.err (!%p3180_p12)
}
  0x67   : > { %2938 = dma.hbm_to_vmem [thread:$0]  (!%p3608_p6), %s4258_s9, 16, %s3614_s28, [#allocation13]  }
  0x68   : > { %s3443_s16 = smov [#allocation15]   ;;  %s3444_s30 = smov [#allocation8]  }
  0x69   : > { %s574_s0 = sshll.u32 %s3443_s16, 4  ;;  %s513_s18 = sshll.u32 %s3444_s30, 4  ;;  %s575_s0 = int_to_ptr.vmem [resolvable:$true] %s574_s0  ;;  %s514_s18 = int_to_ptr.vmem [resolvable:$true] %s513_s18 }
  0x6a   : > { %s3184_s2 = scalar_lea.hbm %s4261_s12, 16 }
  0x6b   : > { %p3185_p13 = scmp.ne.s32.totalorder %s4261_s12, %s3184_s2  ;;  %p3191_p5 = scmp.lt.u32.totalorder %s3184_s2, %s4261_s12 }
  0x6d   : > { %p3187_p0 = pnand %p3185_p13, %p3624_p8 }
  0x6f   : > { %p3188_p2 = pneg %p3187_p0 }
  0x71   : > { %p3193_p7 = pnand %p3191_p5, %p3188_p2 }
  0x73   : > { %3196 = shalt.err (!%p3193_p7)
}
  0x74   : > { %s3197_s28 = scalar_lea.vmem %s575_s0, 16  ;;  %s3204_s14 = scalar_lea.vmem %s575_s0, 32 }
  0x75   : > { %p3198_p9 = scmp.ne.s32.totalorder %s575_s0, %s3197_s28  ;;  %p3205_p11 = scmp.lt.s32.totalorder %s575_s0, %s575_s0 }
  0x76   : > { %p3206_p12 = scmp.lt.s32.totalorder %s3204_s14, %s3197_s28 }
  0x77   : > { %p3200_p4 = pnand %p3198_p9, %p3624_p8 }
  0x78   : > { %p3207_p1 = por %p3206_p12, %p3205_p11 }
  0x79   : > { %p3201_p10 = pneg %p3200_p4 }
  0x7b   : > { %p3208_p3 = pnand %p3207_p1, %p3201_p10 }
  0x7d   : > { %3211 = shalt.err (!%p3208_p3)
}
  0x7e   : > { %2944 = dma.hbm_to_vmem [thread:$0]  (!%p3608_p6), %s4261_s12, 16, %s575_s0, [#allocation16]  }
  0x7f   : > { %s4297_s5 = sld [smem:[#allocation30_spill]] }
  0x85   : > { %s3212_s19 = scalar_lea.hbm %s4297_s5, 16 }
  0x86   : > { %p3213_p13 = scmp.ne.s32.totalorder %s4297_s5, %s3212_s19  ;;  %p3219_p3 = scmp.lt.u32.totalorder %s3212_s19, %s4297_s5 }
  0x88   : > { %p3215_p0 = pnand %p3213_p13, %p3624_p8 }
  0x8a   : > { %p3216_p1 = pneg %p3215_p0 }
  0x8c   : > { %p3221_p2 = pnand %p3219_p3, %p3216_p1 }
  0x8e   : > { %3224 = shalt.err (!%p3221_p2)
}
  0x8f   : > { %s3225_s28 = scalar_lea.vmem %s514_s18, 16  ;;  %s3232_s0 = scalar_lea.vmem %s514_s18, 32 }
  0x90   : > { %p3226_p5 = scmp.ne.s32.totalorder %s514_s18, %s3225_s28  ;;  %p3233_p4 = scmp.lt.s32.totalorder %s514_s18, %s514_s18 }
  0x91   : > { %p3234_p10 = scmp.lt.s32.totalorder %s3232_s0, %s3225_s28 }
  0x92   : > { %p3228_p7 = pnand %p3226_p5, %p3624_p8 }
  0x93   : > { %p3235_p11 = por %p3234_p10, %p3233_p4 }
  0x94   : > { %p3229_p9 = pneg %p3228_p7 }
  0x96   : > { %p3236_p12 = pnand %p3235_p11, %p3229_p9 }
  0x98   : > { %3239 = shalt.err (!%p3236_p12)
}
  0x99   : > { %2929 = dma.hbm_to_vmem [thread:$0]  (!%p3608_p6), %s4297_s5, 16, %s514_s18, [#allocation7]  }
  0x9a   : > { %s3445_s30 = smov [#allocation11]   ;;  %s3446_s27 = smov [#allocation14]  }
  0x9b   : > { %s535_s29 = sshll.u32 %s3445_s30, 4  ;;  %s563_s19 = sshll.u32 %s3446_s27, 4  ;;  %s536_s29 = int_to_ptr.vmem [resolvable:$true] %s535_s29  ;;  %s564_s19 = int_to_ptr.vmem [resolvable:$true] %s563_s19 }
  0x9c   : > { %s3240_s13 = scalar_lea.hbm %s4256_s7, 16 }
  0x9d   : > { %p3241_p13 = scmp.ne.s32.totalorder %s4256_s7, %s3240_s13  ;;  %p3247_p3 = scmp.lt.u32.totalorder %s3240_s13, %s4256_s7 }
  0x9f   : > { %p3243_p0 = pnand %p3241_p13, %p3624_p8 }
  0xa1   : > { %p3244_p1 = pneg %p3243_p0 }
  0xa3   : > { %p3249_p2 = pnand %p3247_p3, %p3244_p1 }
  0xa5   : > { %3252 = shalt.err (!%p3249_p2)
}
  0xa6   : > { %s3253_s18 = scalar_lea.vmem %s536_s29, 16  ;;  %s3260_s16 = scalar_lea.vmem %s536_s29, 32 }
  0xa7   : > { %p3254_p5 = scmp.ne.s32.totalorder %s536_s29, %s3253_s18  ;;  %p3261_p4 = scmp.lt.s32.totalorder %s536_s29, %s536_s29 }
  0xa8   : > { %p3262_p10 = scmp.lt.s32.totalorder %s3260_s16, %s3253_s18 }
  0xa9   : > { %p3256_p7 = pnand %p3254_p5, %p3624_p8 }
  0xaa   : > { %p3263_p11 = por %p3262_p10, %p3261_p4 }
  0xab   : > { %p3257_p9 = pneg %p3256_p7 }
  0xad   : > { %p3264_p12 = pnand %p3263_p11, %p3257_p9 }
  0xaf   : > { %3267 = shalt.err (!%p3264_p12)
}
  0xb0   : > { %2935 = dma.hbm_to_vmem [thread:$0]  (!%p3608_p6), %s4256_s7, 16, %s536_s29, [#allocation10]  }
  0xb1   : > { %s3268_s13 = scalar_lea.hbm %s4260_s11, 16 }
  0xb2   : > { %p3269_p13 = scmp.ne.s32.totalorder %s4260_s11, %s3268_s13  ;;  %p3275_p3 = scmp.lt.u32.totalorder %s3268_s13, %s4260_s11 }
  0xb4   : > { %p3271_p0 = pnand %p3269_p13, %p3624_p8 }
  0xb6   : > { %p3272_p1 = pneg %p3271_p0 }
  0xb8   : > { %p3277_p2 = pnand %p3275_p3, %p3272_p1 }
  0xba   : > { %3280 = shalt.err (!%p3277_p2)
}
  0xbb   : > { %s3281_s18 = scalar_lea.vmem %s564_s19, 16  ;;  %s3288_s29 = scalar_lea.vmem %s564_s19, 32 }
  0xbc   : > { %p3282_p5 = scmp.ne.s32.totalorder %s564_s19, %s3281_s18  ;;  %p3289_p4 = scmp.lt.s32.totalorder %s564_s19, %s564_s19 }
  0xbd   : > { %p3290_p10 = scmp.lt.s32.totalorder %s3288_s29, %s3281_s18 }
  0xbe   : > { %p3284_p7 = pnand %p3282_p5, %p3624_p8 }
  0xbf   : > { %p3291_p11 = por %p3290_p10, %p3289_p4 }
  0xc0   : > { %p3285_p9 = pneg %p3284_p7 }
  0xc2   : > { %p3292_p12 = pnand %p3291_p11, %p3285_p9 }
  0xc4   : > { %3295 = shalt.err (!%p3292_p12)
}
  0xc5   : > { %2941 = dma.hbm_to_vmem [thread:$0]  (!%p3608_p6), %s4260_s11, 16, %s564_s19, [#allocation13]  }
  0xc6   : > { %s3447_s27 = smov [#allocation17]   ;;  %s3296_s10 = scalar_lea.hbm %s4264_s15, 256 }
  0xc7   : > { %s590_s2 = sshll.u32 %s3447_s27, 4  ;;  %p3297_p13 = scmp.ne.s32.totalorder %s4264_s15, %s3296_s10  ;;  %s591_s2 = int_to_ptr.vmem [resolvable:$true] %s590_s2 }
  0xc8   : > { %p3303_p3 = scmp.lt.u32.totalorder %s3296_s10, %s4264_s15 }
  0xc9   : > { %p3299_p0 = pnand %p3297_p13, %p3624_p8 }
  0xcb   : > { %p3300_p1 = pneg %p3299_p0 }
  0xcd   : > { %p3305_p2 = pnand %p3303_p3, %p3300_p1 }
  0xcf   : > { %3308 = shalt.err (!%p3305_p2)
}
  0xd0   : > { %s3309_s19 = scalar_lea.vmem %s591_s2, 256  ;;  %p3317_p4 = scmp.lt.s32.totalorder %s591_s2, %s591_s2 }
  0xd1   : > { %p3310_p5 = scmp.ne.s32.totalorder %s591_s2, %s3309_s19  ;;  %p3318_p10 = scmp.lt.s32.totalorder %s3309_s19, %s3309_s19 }
  0xd3   : > { %p3312_p7 = pnand %p3310_p5, %p3624_p8  ;;  %p3319_p11 = por %p3318_p10, %p3317_p4 }
  0xd5   : > { %p3313_p9 = pneg %p3312_p7 }
  0xd7   : > { %p3320_p12 = pnand %p3319_p11, %p3313_p9 }
  0xd9   : > { %3323 = shalt.err (!%p3320_p12)
}
  0xda   : > { %s4298_s29 = smov 64   ;;  %s2586_s26 = sadd.s32 4294967294, %s3436_s22  }
  0xdb   : > { %2947 = dma.hbm_to_vmem [thread:$0]  (!%p3608_p6), %s4264_s15, 256, %s591_s2, [#allocation16], %s4298_s29, %s4298_s29, %s3442_s17  }
  0xdc   : > { %s3791_s25 = sadd.s32 1, %s3436_s22   ;;  %s74_s3 = sadd.s32 1, %s3432_s1 }
  0xdd   : > { %s71_s27 = ssub.s32 %s3436_s22, %s3791_s25  ;;  %p81_p13 = scmp.ne.s32.totalorder %s3432_s1, %s3428_s21 }
  0xde   : > { %p72_p8 = scmp.eq.s32.totalorder %s71_s27, 0  ;;  %p82_p0 = scmp.eq.s32.totalorder %s3436_s22, 0 }
  0xdf   : > { %p87_p1 = scmp.ne.s32.totalorder %s3428_s21, %s3424_s20  ;;  %p4300_p2 = scmp.eq.s32.totalorder %s3592_s23, 0 }
  0xe0   : > { %s3802_s13 = scalar_select %p72_p8, %s3432_s1, %s74_s3  }
  0xe1   : > { %p3804_p3 = por %p82_p0, %p81_p13  ;;  %p3810_p6 = por %p4300_p2, %p87_p1 }
  0xe2   : > { %p468_p5 = scmp.eq.s32.totalorder %s3592_s23, 1  ;;  %p474_p7 = scmp.eq.s32.totalorder %s2586_s26, 1 }
  0xe3   : > { %p2964_p9 = scmp.lt.s32.totalorder %s3436_s22, 2  ;;  %s622_s2 = sand.u32 1, %s3432_s1  }
  0xe4   : > { %p3817_p4 = por %p468_p5, %p81_p13  ;;  %p3821_p10 = por %p474_p7, %p87_p1 }
  0xe5   : > { %s2597_s14 = sshll.u32 %s622_s2, 1  ;;  %s2665_s18 = sshll.u32 %s3436_s22, 5 }
  0xe6   : > { %s4302_s28 = scalar_select %p3817_p4, 1, 0 }
  0xe7   : > { %s4303_s0 = scalar_select %p3821_p10, 1, 0 }
  0xe8   : > { %s4304_s16 = sld [smem:[#allocation26_spill]]  ;;  %s626_s26 = scalar_lea.vmem [#allocation3], %s2597_s14 }
  0xe9   : > { %s633_s27 = sshll.u32 %s626_s26, 4  ;;  %p3835_p11 = pnand %p2964_p9, %p3804_p3  ;;  %s3831_s27 = int_to_ptr.vmem [resolvable:$true] %s633_s27 }
  0xea   : > { %s3839_s4 = scalar_lea.sflag [#allocation4], %s622_s2 }
  0xeb   : > { %p3326_p8 = pneg %p3835_p11 }
  0xee   : > { %s3829_s30 = scalar_lea.hbm %s4304_s16, %s2665_s18  ;;  %s3329_s10 = scalar_lea.hbm %s4304_s16, 64 }
  0xef   : > { %s3324_s19 = scalar_lea.hbm %s3829_s30, 32  ;;  %p3330_p1 = scmp.lt.u32.totalorder %s3829_s30, %s4304_s16 }
  0xf0   : > { %p3325_p12 = scmp.ne.s32.totalorder %s3829_s30, %s3324_s19  ;;  %p3331_p3 = scmp.lt.u32.totalorder %s3329_s10, %s3324_s19 }
  0xf1   : > { %p3333_p5 = scmp.lt.u32.totalorder %s3324_s19, %s3829_s30 }
  0xf2   : > { %p3327_p13 = pnand %p3326_p8, %p3325_p12  ;;  %p3332_p2 = por %p3331_p3, %p3330_p1 }
  0xf4   : > { %p3328_p0 = pneg %p3327_p13  ;;  %p3334_p7 = por %p3333_p5, %p3332_p2 }
  0xf6   : > { %p3335_p9 = pnand %p3334_p7, %p3328_p0 }
  0xf8   : > { %3338 = shalt.err (!%p3335_p9)
}
  0xf9   : > { %s3339_s2 = scalar_lea.vmem %s3831_s27, 32  ;;  %s3448_s14 = smov [#allocation3]  }
  0xfa   : > { %p3340_p12 = scmp.ne.s32.totalorder %s3831_s27, %s3339_s2  ;;  %s3344_s18 = sshll.u32 %s3448_s14, 4  ;;  %s3345_s18 = int_to_ptr.vmem [resolvable:$false] %s3344_s18 }
  0xfb   : > { %s3346_s29 = scalar_lea.vmem %s3345_s18, 64  ;;  %p3347_p4 = scmp.lt.s32.totalorder %s3831_s27, %s3345_s18 }
  0xfc   : > { %p3342_p13 = pnand %p3340_p12, %p3326_p8  ;;  %p3348_p1 = scmp.lt.s32.totalorder %s3346_s29, %s3339_s2 }
  0xfe   : > { %p3343_p10 = pneg %p3342_p13  ;;  %p3349_p3 = por %p3348_p1, %p3347_p4 }
 0x100   : > { %p3350_p2 = pnand %p3349_p3, %p3343_p10 }
 0x102   : > { %3353 = shalt.err (!%p3350_p2)
}
 0x103   : > { %s3449_s19 = smov 16   ;;  %s3450_s10 = smov 1  }
 0x104   : > { %2951 = dma.hbm_to_vmem [thread:$0]  (!%p3835_p11), %s3829_s30, 32, %s3831_s27, %s3839_s4, %s3449_s19, %s3449_s19, %s3450_s10  }
 0x105   : > { %p4306_p8 = scmp.ne.s32.totalorder %s4292_s24, 0 }
 0x106   : > { %s3870_s26 = sand.u32 (!%p4306_p8), 1, %s3428_s21  }
 0x107   : > { %645 = sbr.rel (%p4306_p8) target bundleno = 5164 (0x142c), region = 96  ;;  %s4278_s2 = sshll.u32 (!%p4306_p8), %s3870_s26, 1 }
 0x108   : > { %s648_s14 = scalar_lea.sflag (!%p4306_p8), [#allocation4], %s3870_s26  ;;  %s3876_s18 = scalar_lea.vmem (!%p4306_p8), [#allocation3], %s4278_s2 }
 0x10e   : > { %3399 = dma.done.wait (%p3810_p6), %s648_s14, 32  }
 0x10f   : > { %3401 = vsyncadd (%p3810_p6), %s648_s14, 4294967264  ;;  %p4307_p4 = scmp.eq.s32.totalorder %s3592_s23, 0 }
 0x111   : > { %3403 = dma.done.wait (%p4307_p4), [#allocation7], 272   ;;  %p4308_p10 = pmov %p4307_p4 }
 0x112   : > { %p4309_p11 = pmov %p4307_p4 }
 0x113   : > { %3405 = vsyncadd (%p4308_p10), [#allocation7], 4294967024 }
 0x114   : > { %3407 = dma.done.wait (%p4309_p11), [#allocation10], 32   ;;  %p4310_p0 = pmov %p4307_p4 }
 0x116   : > { %3409 = vsyncadd (%p4310_p0), [#allocation10], 4294967264  ;;  %p4311_p5 = pmov %p4310_p0 }
 0x117   : > { %p4312_p7 = pmov %p4310_p0 }
 0x118   : > { %3411 = dma.done.wait (%p4311_p5), [#allocation13], 32  }
 0x119   : > { %3413 = vsyncadd (%p4312_p7), [#allocation13], 4294967264  ;;  %p4313_p6 = pmov %p4310_p0 }
 0x11a   : > { %p4314_p9 = pmov %p4310_p0 }
 0x11b   : > { %3415 = dma.done.wait (%p4313_p6), [#allocation16], 272  }
 0x11c   : > { %3417 = vsyncadd (%p4314_p9), [#allocation16], 4294967024  ;;  %s2611_s4 = sshll.u32 %s3592_s23, 1  ;;  %v3451_v1 = vmov 0.0   ;;  %vm3452_vm0 = vmmov 0   ;;  %s4315_s27 = sld [smem:[#allocation25_spill]]  ;;  %v826_v24 = vlaneseq }
 0x11d   : > { %2723 = vmatprep.subr.bf16.mxu0 %v3451_v1  ;;  %2727 = vmatprep.mubr.msk.bf16.mxu0 %vm3452_vm0, %v3451_v1  ;;  %p744_p12 = scmp.lt.s32.totalorder %s2611_s4, 3  ;;  %s4316_s10 = sld [smem:[#allocation27_spill]]  ;;  %vm777_vm1 = vcmask 261120   ;;  %vm856_vm2 = vcmask 64512   ;;  %v3455_v23 = vmov 0   ;;  %vm987_vm10 = vcmask 1043456  }
 0x11e   : > { %2731 = vmatprep.subr.bf16.mxu1 %v3451_v1  ;;  %2733 = vmatprep.mubr.msk.bf16.mxu1 %vm3452_vm0, %v3451_v1  ;;  %s3453_s17 = smov 96   ;;  %s3454_s30 = smov 64   ;;  %v827_v25 = vshrl.u32 %v826_v24, 7  ;;  %v829_v26 = vand.u32 127, %v826_v24  ;;  %v822_v28 = vld [vmem:[%s3876_s18] sm:$0x1] }
 0x11f   : > { %s4333_s4 = smov (!%p744_p12, %s2611_s4), 3  ;;  %3034 = vset.pattern.permute.xlu1 %v3455_v23  ;;  %3035 = vset.pattern.permute.xlu0 %v3455_v23  ;;  %vm824_vm3 = vcmp.gt.f32.partialorder %v822_v28, 0.5  ;;  %v823_v29 = vld [vmem:[%s3876_s18 + $0x1] sm:$0x1]  ;;  %v3456_v36 = vmov -1e+09  }
 0x120   : > { %s2612_s24 = sshll.u32 %s4333_s4, 3  ;;  %v3956_v27 = vsub.s32 %v829_v26, %v827_v25  ;;  %v835_v30 = vsub.s32 0, %v827_v25  ;;  %v831_v31 = vsel %vm824_vm3, 1, %v3455_v23  ;;  %vm825_vm4 = vcmp.gt.f32.partialorder %v823_v29, 0.5  ;;  %s3457_s18 = smov 32  }
 0x121   : > { %v832_v33 = vsel %vm825_vm4, 1, %v3455_v23  ;;  %vm830_vm5 = vcmp.le.s32.totalorder %v829_v26, %v827_v25  ;;  %s3460_s29 = smov 24   ;;  %s3461_s19 = smov 48   ;;  %vm2136_vm11 = vcmask 523264   ;;  %vm2409_vm12 = vcmask 1041409  }
 0x122   : > { %s747_s3 = scalar_lea.vmem %s4315_s27, %s2612_s24  ;;  %s4317_s24 = sld [smem:[#allocation28_spill]]  ;;  %v836_v32 = vrot.slane %v831_v31, %v835_v30  ;;  %v840_v34 = vrot.slane %v832_v33, %v835_v30  ;;  %vm2412_vm13 = vcmask 58368  }
 0x123   : > { %v3036_v2 = vld [vmem:[%s4316_s10] sm:$0xff]   ;;  %v3037_v3 = vld [vmem:[%s4316_s10 + $0x8] sm:$0xff]   ;;  %s3458_s27 = smov 56   ;;  %s3462_s14 = smov 80  }
 0x124   : > { %2724 = vmatpush3.bf16.msra.mxu0 %v3036_v2  ;;  %v3914_v4 = vld [vmem:[%s747_s3] sm:$0xff]  ;;  %v3916_v5 = vld [vmem:[%s747_s3 + $0x8] sm:$0xff]  ;;  %vm841_vm6 = vcmp.eq.s32.totalorder %v836_v32, 1  ;;  %vm842_vm8 = vcmp.eq.s32.totalorder %v840_v34, 1  ;;  %s3459_s3 = smov 88   ;;  %s3463_s2 = smov 16  }
 0x125   : > { %2725 = vmatprep.subr.bf16.mxu0 %v3451_v1  ;;  %v753_v6 = vpack.c.bf16 %v3916_v5, %v3914_v4  ;;  %vm845_vm7 = vmand %vm841_vm6, %vm830_vm5  ;;  %s3464_s4 = smov 40   ;;  %p4325_p1 = scmp.ne.s32.totalorder %s4302_s28, 0 }
 0x126   : > { %v3960_v37 = vsel %vm845_vm7, 0.0, %v3456_v36  ;;  %vm846_vm9 = vmand %vm842_vm8, %vm830_vm5 }
 0x127   : > { %v3963_v44 = vsel %vm846_vm9, 0.0, %v3456_v36 }
 0x128   : > { %2726 = vmatpush3.bf16.msra.mxu0 %v3037_v3  ;;  %v2613_v7 = vld [vmem:[%s4317_s24] ss:$0 sm:$0xff]  ;;  %s3465_s24 = smov 72  }
 0x129   : > { %2737 = vmatprep.subr.bf16.mxu0 %v3451_v1 }
 0x12b   : > { %2728 = vmatmul.mubr.msk.bf16.vlgmr.msra.gmra.mrb[0].mxu0 %vm777_vm1, %v753_v6 }
 0x12c   : > { %2739 = vmatprep.mubr.msk.bf16.mxu0 %vm3452_vm0, %v3451_v1 }
 0x1fe   : > { %v815_v8 = vpop.f32.mrb[0].mxu0 }
 0x1ff   : > { %v3928_v9 = vadd.f32 %v2613_v7, %v815_v8  ;;  %v2729_v10 = vpop.f32.mrb[1].mxu0 }
 0x200   : > { %v818_v11 = vpop.f32.mrb[2].mxu0 }
 0x201   : > { %v3932_v12 = vpack.c.bf16 %v3928_v9, %v3928_v9  ;;  %v3934_v13 = vadd.f32 %v2613_v7, %v818_v11  ;;  %v2730_v14 = vpop.f32.mrb[3].mxu0 }
 0x203   : > { %v2236_v15 = vpack.c.bf16 %v3934_v13, %v3928_v9  ;;  %852 = vrot.lane.b32.xlu1 %v3932_v12, %s3453_s17  ;;  %854 = vrot.lane.b32.xlu0 %v3932_v12, %s3454_s30  ;;  %v3942_v16 = vpack.c.bf16 %v3934_v13, %v3934_v13 }
 0x207   : > { %904 = vrot.lane.b32.xlu1 %v3942_v16, %s3453_s17  ;;  %906 = vrot.lane.b32.xlu0 %v3942_v16, %s3454_s30  ;;  %s3466_s17 = smov 8  }
 0x275   : > { %v855_v17 = vpop.permute.xlu0 %854  ;;  %v853_v21 = vpop.permute.xlu1 %852 }
 0x276   : > { %v861_v18 = vsel %vm856_vm2, %v855_v17, 0 }
 0x277   : > { %2732 = vmatpush3.bf16.xpose.msra.mxu1 %v861_v18 }
 0x278   : > { %2743 = vmatprep.subr.bf16.mxu1 %v3451_v1 }
 0x279   : > { %v907_v19 = vpop.permute.xlu0 %906  ;;  %v905_v22 = vpop.permute.xlu1 %904 }
 0x27a   : > { %v912_v20 = vsel %vm856_vm2, %v907_v19, 0 }
 0x27b   : > { %2738 = vmatpush3.bf16.xpose.msra.mxu0 %v912_v20 }
 0x27c   : > { %2749 = vmatprep.subr.bf16.mxu0 %v3451_v1 }
 0x27e   : > { %2734 = vmatmul.mubr.msk.bf16.vlgmr.msra.gmra.mrb[0].mxu1 %vm856_vm2, %v853_v21 }
 0x27f   : > { %2745 = vmatprep.mubr.msk.bf16.mxu1 %vm3452_vm0, %v3451_v1 }
 0x282   : > { %2740 = vmatmul.mubr.msk.bf16.vlgmr.msra.gmra.mrb[4].mxu0 %vm856_vm2, %v905_v22 }
 0x283   : > { %2751 = vmatprep.mubr.msk.bf16.mxu0 %vm3452_vm0, %v3451_v1 }
 0x351   : > { %v897_v35 = vpop.f32.mrb[0].mxu1 }
 0x352   : > { %v954_v38 = vmul.f32 0.35355338, %v897_v35  ;;  %v2735_v39 = vpop.f32.mrb[1].mxu1 }
 0x353   : > { %v900_v40 = vpop.f32.mrb[2].mxu1 }
 0x354   : > { %v2736_v41 = vpop.f32.mrb[3].mxu1  ;;  %v956_v42 = vadd.f32 %v954_v38, %v3960_v37 }
 0x355   : > { %v948_v43 = vpop.f32.mrb[4].mxu0 }
 0x356   : > { %v955_v45 = vmul.f32 0.35355338, %v948_v43  ;;  %v2741_v46 = vpop.f32.mrb[5].mxu0  ;;  %v958_v47 = vsel %vm856_vm2, %v956_v42, -inf }
 0x357   : > { %959 = vmax.xlane.f32.xlu0 %v958_v47  ;;  %v951_v48 = vpop.f32.mrb[6].mxu0 }
 0x358   : > { %v2742_v49 = vpop.f32.mrb[7].mxu0  ;;  %v957_v50 = vadd.f32 %v955_v45, %v3963_v44 }
 0x35a   : > { %v961_v51 = vsel %vm856_vm2, %v957_v50, -inf }
 0x35b   : > { %962 = vmax.xlane.f32.xlu1 %v961_v51 }
 0x36c   : > { %982 = vrot.lane.b32.xlu1 %v3932_v12, %s3457_s18 }
 0x370   : > { %1083 = vrot.lane.b32.xlu1 %v3932_v12, %s3458_s27 }
 0x374   : > { %1133 = vrot.lane.b32.xlu1 %v3942_v16, %s3458_s27  ;;  %s4321_s27 = sld [smem:[#allocation35_spill]] }
 0x378   : > { %1131 = vrot.lane.b32.xlu1 %v3942_v16, %s3459_s3 }
 0x3e4   : > { %v960_v52 = vpop.xlane.xlu0 %959 }
 0x3e5   : > { %v964_v53 = vsub.f32 %v956_v42, %v960_v52 }
 0x3e7   : > { %v966_v54 = vmul.f32 1.442695, %v964_v53 }
 0x3e8   : > { %v963_v55 = vpop.xlane.xlu1 %962 }
 0x3e9   : > { %3048 = vpow2.f32 %v966_v54  ;;  %v965_v56 = vsub.f32 %v957_v50, %v963_v55 }
 0x3eb   : > { %v968_v57 = vmul.f32 1.442695, %v965_v56 }
 0x3ec   : > { %v983_v58 = vpop.permute.xlu1 %982 }
 0x3ed   : > { %3050 = vpow2.f32 %v968_v57  ;;  %v989_v59 = vsel %vm987_vm10, %v983_v58, 0 }
 0x3ee   : > { %2744 = vmatpush3.bf16.msra.mxu1 %v989_v59 }
 0x3ef   : > { %2755 = vmatprep.subr.bf16.mxu1 %v3451_v1 }
 0x3f0   : > { %v1084_v8 = vpop.permute.xlu1 %1083 }
 0x3f1   : > { %v1089_v17 = vsel %vm856_vm2, %v1084_v8, 0 }
 0x3f3   : > { %v3049_v60 = vpop.eup %3048 }
 0x3f4   : > { %v970_v61 = vsel %vm856_vm2, %v3049_v60, 0.0  ;;  %v1134_v19 = vpop.permute.xlu1 %1133 }
 0x3f5   : > { %971 = vadd.xlane.f32.xlu0 %v970_v61  ;;  %v1139_v21 = vsel %vm856_vm2, %v1134_v19, 0 }
 0x3f7   : > { %v3051_v62 = vpop.eup %3050 }
 0x3f8   : > { %v973_v63 = vsel %vm856_vm2, %v3051_v62, 0.0  ;;  %v1132_v23 = vpop.permute.xlu1 %1131 }
 0x3f9   : > { %974 = vadd.xlane.f32.xlu0 %v973_v63 }
 0x40f   : > { %1031 = vrot.lane.b32.xlu0 %v3942_v16, %s3457_s18 }
 0x413   : > { %1081 = vrot.lane.b32.xlu0 %v3932_v12, %s3459_s3  ;;  %s4324_s3 = sld [smem:[#allocation37_spill]] }
 0x482   : > { %v972_v0 = vpop.xlane.xlu0 %971 }
 0x483   : > { %3052 = vrcp.f32 %v972_v0 }
 0x486   : > { %v975_v2 = vpop.xlane.xlu0 %974 }
 0x487   : > { %3054 = vrcp.f32 %v975_v2 }
 0x48a   : > { %v1032_v3 = vpop.permute.xlu0 %1031 }
 0x48b   : > { %v1037_v6 = vsel %vm987_vm10, %v1032_v3, 0 }
 0x48c   : > { %2750 = vmatpush3.bf16.msra.mxu0 %v1037_v6  ;;  %v1306_v6 = vld [vmem:[#allocation6 + $0x4] sm:$0xf] }
 0x48d   : > { %v3053_v7 = vpop.eup %3052  ;;  %2761 = vmatprep.subr.bf16.mxu0 %v3451_v1 }
 0x48e   : > { %v978_v10 = vmul.f32 %v3053_v7, %v3049_v60  ;;  %v1082_v22 = vpop.permute.xlu0 %1081 }
 0x490   : > { %v980_v11 = vpack.c.bf16 %v978_v10, %v978_v10  ;;  %v1312_v10 = vsel %vm987_vm10, %v1306_v6, 0 }
 0x491   : > { %v3055_v14 = vpop.eup %3054 }
 0x492   : > { %v979_v18 = vmul.f32 %v3055_v14, %v3051_v62  ;;  %2746 = vmatmul.mubr.msk.bf16.vlgmr.msra.gmra.mrb[4].mxu1 %vm856_vm2, %v980_v11  ;;  %v1079_v14 = vld [vmem:[#allocation6] sm:$0xf] }
 0x493   : > { %2756 = vmatpush3.bf16.xpose.msra.mxu1 %v1089_v17  ;;  %2757 = vmatprep.mubr.msk.bf16.mxu1 %vm3452_vm0, %v3451_v1  ;;  %v1359_v19 = vsel %vm987_vm10, %v1079_v14, 0 }
 0x494   : > { %v981_v20 = vpack.c.bf16 %v979_v18, %v979_v18  ;;  %2767 = vmatprep.subr.bf16.mxu1 %v3451_v1 }
 0x496   : > { %2752 = vmatmul.mubr.msk.bf16.vlgmr.msra.gmra.mrb[8].mxu0 %vm856_vm2, %v981_v20 }
 0x497   : > { %2762 = vmatpush3.bf16.xpose.msra.mxu0 %v1139_v21  ;;  %2763 = vmatprep.mubr.msk.bf16.mxu0 %vm3452_vm0, %v3451_v1 }
 0x498   : > { %2773 = vmatprep.subr.bf16.mxu0 %v3451_v1 }
 0x49a   : > { %2758 = vmatmul.mubr.msk.bf16.vlgmr.msra.gmra.mrb[8].mxu1 %vm856_vm2, %v1082_v22 }
 0x49b   : > { %2769 = vmatprep.mubr.msk.bf16.mxu1 %vm3452_vm0, %v3451_v1 }
 0x49e   : > { %2764 = vmatmul.mubr.msk.bf16.vlgmr.msra.gmra.mrb[12].mxu0 %vm856_vm2, %v1132_v23 }
 0x49f   : > { %2775 = vmatprep.mubr.msk.bf16.mxu0 %vm3452_vm0, %v3451_v1 }
 0x565   : > { %v3996_v24 = vpop.f32.mrb[4].mxu1 }
 0x566   : > { %v2747_v25 = vpop.f32.mrb[5].mxu1 }
 0x567   : > { %v1028_v26 = vpop.f32.mrb[6].mxu1 }
 0x568   : > { %v2748_v28 = vpop.f32.mrb[7].mxu1 }
 0x569   : > { %v3998_v29 = vpop.f32.mrb[8].mxu0 }
 0x56a   : > { %v1080_v30 = vpack.c.bf16 %v3998_v29, %v3996_v24  ;;  %v2753_v31 = vpop.f32.mrb[9].mxu0 }
 0x56b   : > { %v1076_v32 = vpop.f32.mrb[10].mxu0 }
 0x56c   : > { %v2754_v33 = vpop.f32.mrb[11].mxu0 }
 0x56d   : > { %v1125_v34 = vpop.f32.mrb[8].mxu1 }
 0x56e   : > { %v1181_v35 = vmul.f32 0.35355338, %v1125_v34  ;;  %v2759_v36 = vpop.f32.mrb[9].mxu1 }
 0x56f   : > { %v1128_v38 = vpop.f32.mrb[10].mxu1 }
 0x570   : > { %v2760_v39 = vpop.f32.mrb[11].mxu1  ;;  %v1183_v40 = vadd.f32 %v1181_v35, %v3960_v37 }
 0x571   : > { %v1175_v41 = vpop.f32.mrb[12].mxu0 }
 0x572   : > { %v1182_v42 = vmul.f32 0.35355338, %v1175_v41  ;;  %v2765_v43 = vpop.f32.mrb[13].mxu0  ;;  %v1185_v45 = vsel %vm856_vm2, %v1183_v40, -inf }
 0x573   : > { %1186 = vmax.xlane.f32.xlu0 %v1185_v45  ;;  %v1178_v46 = vpop.f32.mrb[14].mxu0 }
 0x574   : > { %v2766_v47 = vpop.f32.mrb[15].mxu0  ;;  %v1184_v48 = vadd.f32 %v1182_v42, %v3963_v44 }
 0x576   : > { %v1188_v49 = vsel %vm856_vm2, %v1184_v48, -inf }
 0x577   : > { %1189 = vmax.xlane.f32.xlu1 %v1188_v49 }
 0x588   : > { %1209 = vrot.lane.b32.xlu1 %v3932_v12, %s3460_s29 }
 0x58c   : > { %1404 = vrot.lane.b32.xlu1 %v3932_v12, %s3461_s19 }
 0x590   : > { %1454 = vrot.lane.b32.xlu1 %v3942_v16, %s3461_s19 }
 0x594   : > { %1452 = vrot.lane.b32.xlu1 %v3942_v16, %s3462_s14 }
 0x600   : > { %v1187_v50 = vpop.xlane.xlu0 %1186 }
 0x601   : > { %v1191_v51 = vsub.f32 %v1183_v40, %v1187_v50 }
 0x603   : > { %v1193_v52 = vmul.f32 1.442695, %v1191_v51 }
 0x604   : > { %v1190_v53 = vpop.xlane.xlu1 %1189 }
 0x605   : > { %3056 = vpow2.f32 %v1193_v52  ;;  %v1192_v54 = vsub.f32 %v1184_v48, %v1190_v53 }
 0x607   : > { %v1195_v55 = vmul.f32 1.442695, %v1192_v54 }
 0x608   : > { %v1210_v56 = vpop.permute.xlu1 %1209 }
 0x609   : > { %3058 = vpow2.f32 %v1195_v55  ;;  %v1215_v57 = vsel %vm987_vm10, %v1210_v56, 0 }
 0x60a   : > { %2768 = vmatpush3.bf16.msra.mxu1 %v1215_v57 }
 0x60b   : > { %2779 = vmatprep.subr.bf16.mxu1 %v3451_v1 }
 0x60c   : > { %v1405_v20 = vpop.permute.xlu1 %1404 }
 0x60d   : > { %v1410_v33 = vsel %vm856_vm2, %v1405_v20, 0 }
 0x60f   : > { %v3057_v58 = vpop.eup %3056 }
 0x610   : > { %v1197_v59 = vsel %vm856_vm2, %v3057_v58, 0.0  ;;  %v1455_v21 = vpop.permute.xlu1 %1454 }
 0x611   : > { %1198 = vadd.xlane.f32.xlu0 %v1197_v59  ;;  %v1460_v22 = vsel %vm856_vm2, %v1455_v21, 0 }
 0x613   : > { %v3059_v60 = vpop.eup %3058 }
 0x614   : > { %v1200_v61 = vsel %vm856_vm2, %v3059_v60, 0.0  ;;  %v1453_v23 = vpop.permute.xlu1 %1452 }
 0x615   : > { %1201 = vadd.xlane.f32.xlu0 %v1200_v61 }
 0x62b   : > { %1257 = vrot.lane.b32.xlu0 %v3942_v16, %s3460_s29  ;;  %s4319_s29 = sld [smem:[#allocation34_spill]] }
 0x62f   : > { %1402 = vrot.lane.b32.xlu0 %v3932_v12, %s3462_s14  ;;  %s4318_s14 = sld [smem:[#allocation32_spill]] }
 0x635   : > { %v3044_v9 = vld [vmem:[%s4318_s14 + $0x10] sm:$0xff]   ;;  %v3045_v13 = vld [vmem:[%s4318_s14 + $0x18] sm:$0xff]  }
 0x69e   : > { %v1199_v62 = vpop.xlane.xlu0 %1198 }
 0x69f   : > { %3060 = vrcp.f32 %v1199_v62 }
 0x6a2   : > { %v1202_v63 = vpop.xlane.xlu0 %1201 }
 0x6a3   : > { %3062 = vrcp.f32 %v1202_v63 }
 0x6a6   : > { %v1258_v0 = vpop.permute.xlu0 %1257 }
 0x6a7   : > { %v1263_v2 = vsel %vm987_vm10, %v1258_v0, 0 }
 0x6a8   : > { %2774 = vmatpush3.bf16.msra.mxu0 %v1263_v2 }
 0x6a9   : > { %v3061_v3 = vpop.eup %3060  ;;  %2785 = vmatprep.subr.bf16.mxu0 %v3451_v1 }
 0x6aa   : > { %v1205_v7 = vmul.f32 %v3061_v3, %v3057_v58  ;;  %v1403_v38 = vpop.permute.xlu0 %1402 }
 0x6ac   : > { %v1207_v8 = vpack.c.bf16 %v1205_v7, %v1205_v7 }
 0x6ad   : > { %v3063_v11 = vpop.eup %3062 }
 0x6ae   : > { %v1206_v17 = vmul.f32 %v3063_v11, %v3059_v60  ;;  %2770 = vmatmul.mubr.msk.bf16.vlgmr.msra.gmra.mrb[12].mxu1 %vm856_vm2, %v1207_v8 }
 0x6af   : > { %2780 = vmatpush3.bf16.msra.mxu1 %v1312_v10  ;;  %2781 = vmatprep.mubr.msk.bf16.mxu1 %vm3452_vm0, %v3451_v1 }
 0x6b0   : > { %v1208_v18 = vpack.c.bf16 %v1206_v17, %v1206_v17  ;;  %2791 = vmatprep.subr.bf16.mxu1 %v3451_v1 }
 0x6b2   : > { %2776 = vmatmul.mubr.msk.bf16.vlgmr.msra.gmra.mrb[16].mxu0 %vm856_vm2, %v1208_v18 }
 0x6b3   : > { %2786 = vmatpush3.bf16.msra.mxu0 %v1359_v19  ;;  %2787 = vmatprep.mubr.msk.bf16.mxu0 %vm3452_vm0, %v3451_v1 }
 0x6b4   : > { %2797 = vmatprep.subr.bf16.mxu0 %v3451_v1 }
 0x6ba   : > { %2788 = vmatmul.mubr.msk.bf16.vlgmr.msra.gmra.mrb[20].mxu0 %vm856_vm2, %v1080_v30 }
 0x6bb   : > { %2799 = vmatprep.mubr.msk.bf16.mxu0 %vm3452_vm0, %v3451_v1 }
 0x6bc   : > { %2798 = vmatpush3.bf16.xpose.msra.mxu0 %v1460_v22 }
 0x6bd   : > { %2809 = vmatprep.subr.bf16.mxu0 %v3451_v1 }
 0x6c3   : > { %2800 = vmatmul.mubr.msk.bf16.vlgmr.msra.gmra.mrb[24].mxu0 %vm856_vm2, %v1453_v23 }
 0x6c4   : > { %2811 = vmatprep.mubr.msk.bf16.mxu0 %vm3452_vm0, %v3451_v1 }
 0x781   : > { %v1251_v25 = vpop.f32.mrb[12].mxu1 }
 0x782   : > { %v2771_v26 = vpop.f32.mrb[13].mxu1 }
 0x783   : > { %v1254_v28 = vpop.f32.mrb[14].mxu1 }
 0x784   : > { %v2772_v24 = vpop.f32.mrb[15].mxu1 }
 0x785   : > { %v1299_v29 = vpop.f32.mrb[16].mxu0 }
 0x786   : > { %v1307_v30 = vpack.c.bf16 %v1299_v29, %v1251_v25  ;;  %v2777_v31 = vpop.f32.mrb[17].mxu0 }
 0x787   : > { %v1302_v32 = vpop.f32.mrb[18].mxu0 }
 0x788   : > { %v2778_v34 = vpop.f32.mrb[19].mxu0  ;;  %2782 = vmatmul.mubr.msk.bf16.vlgmr.msra.gmra.mrb[16].mxu1 %vm856_vm2, %v1307_v30  ;;  %v1627_v32 = vld [vmem:[#allocation6 + $0x8] sm:$0xf] }
 0x789   : > { %2792 = vmatpush3.bf16.xpose.msra.mxu1 %v1410_v33  ;;  %2793 = vmatprep.mubr.msk.bf16.mxu1 %vm3452_vm0, %v3451_v1  ;;  %v1633_v33 = vsel %vm987_vm10, %v1627_v32, 0 }
 0x78a   : > { %2803 = vmatprep.subr.bf16.mxu1 %v3451_v1 }
 0x78d   : > { %v1395_v35 = vpop.f32.mrb[20].mxu0 }
 0x78e   : > { %v2789_v36 = vpop.f32.mrb[21].mxu0 }
 0x78f   : > { %v1398_v39 = vpop.f32.mrb[22].mxu0 }
 0x790   : > { %v2790_v40 = vpop.f32.mrb[23].mxu0  ;;  %2794 = vmatmul.mubr.msk.bf16.vlgmr.msra.gmra.mrb[20].mxu1 %vm856_vm2, %v1403_v38 }
 0x791   : > { %2805 = vmatprep.mubr.msk.bf16.mxu1 %vm3452_vm0, %v3451_v1 }
 0x796   : > { %v1496_v41 = vpop.f32.mrb[24].mxu0 }
 0x797   : > { %v1503_v42 = vmul.f32 0.35355338, %v1496_v41  ;;  %v2801_v43 = vpop.f32.mrb[25].mxu0 }
 0x798   : > { %v1499_v45 = vpop.f32.mrb[26].mxu0 }
 0x799   : > { %v2802_v46 = vpop.f32.mrb[27].mxu0  ;;  %v1505_v47 = vadd.f32 %v1503_v42, %v3963_v44 }
 0x79b   : > { %v1509_v48 = vsel %vm856_vm2, %v1505_v47, -inf }
 0x79c   : > { %1510 = vmax.xlane.f32.xlu1 %v1509_v48 }
 0x7ad   : > { %1530 = vrot.lane.b32.xlu1 %v3932_v12, %s3463_s2 }
 0x7b1   : > { %1680 = vrot.lane.b32.xlu1 %v3932_v12, %s3464_s4 }
 0x7b5   : > { %1730 = vrot.lane.b32.xlu1 %v3942_v16, %s3464_s4  ;;  %s2662_s4 = sshll.u32 %s3592_s23, 5  ;;  %s2415_s23 = scalar_lea.sflag [#allocation5], %s3870_s26 }
 0x7b6   : > { %s4205_s19 = scalar_lea.hbm %s4324_s3, %s2662_s4 }
 0x7b9   : > { %1728 = vrot.lane.b32.xlu1 %v3942_v16, %s3465_s24 }
 0x829   : > { %v1511_v49 = vpop.xlane.xlu1 %1510 }
 0x82a   : > { %v1513_v52 = vsub.f32 %v1505_v47, %v1511_v49 }
 0x82c   : > { %v1516_v53 = vmul.f32 1.442695, %v1513_v52 }
 0x82d   : > { %v1531_v50 = vpop.permute.xlu1 %1530 }
 0x82e   : > { %v1536_v51 = vsel %vm987_vm10, %v1531_v50, 0  ;;  %3064 = vpow2.f32 %v1516_v53 }
 0x82f   : > { %2804 = vmatpush3.bf16.msra.mxu1 %v1536_v51 }
 0x830   : > { %2815 = vmatprep.subr.bf16.mxu1 %v3451_v1 }
 0x831   : > { %v1681_v28 = vpop.permute.xlu1 %1680 }
 0x832   : > { %v1686_v29 = vsel %vm856_vm2, %v1681_v28, 0 }
 0x838   : > { %v3065_v6 = vpop.eup %3064 }
 0x839   : > { %v1521_v7 = vsel %vm856_vm2, %v3065_v6, 0.0 }
 0x85b   : > { %v1348_v54 = vpop.f32.mrb[16].mxu1 }
 0x85c   : > { %v4057_v55 = vadd.f32 %v1395_v35, %v1348_v54  ;;  %v2783_v56 = vpop.f32.mrb[17].mxu1 }
 0x85d   : > { %v1351_v57 = vpop.f32.mrb[18].mxu1 }
 0x85e   : > { %v4059_v58 = vadd.f32 %v1398_v39, %v1351_v57  ;;  %v2784_v59 = vpop.f32.mrb[19].mxu1  ;;  %v1731_v39 = vpop.permute.xlu1 %1730 }
 0x85f   : > { %v1736_v45 = vsel %vm856_vm2, %v1731_v39, 0 }
 0x862   : > { %v1729_v53 = vpop.permute.xlu1 %1728 }
 0x863   : > { %v1446_v60 = vpop.f32.mrb[20].mxu1 }
 0x864   : > { %v1502_v61 = vmul.f32 0.35355338, %v1446_v60  ;;  %v2795_v62 = vpop.f32.mrb[21].mxu1 }
 0x865   : > { %v1449_v63 = vpop.f32.mrb[22].mxu1 }
 0x866   : > { %v2796_v0 = vpop.f32.mrb[23].mxu1  ;;  %v1504_v2 = vadd.f32 %v1502_v61, %v3960_v37 }
 0x868   : > { %v1506_v3 = vsel %vm856_vm2, %v1504_v2, -inf }
 0x869   : > { %1507 = vmax.xlane.f32.xlu0 %v1506_v3 }
 0x86d   : > { %1522 = vadd.xlane.f32.xlu0 %v1521_v7 }
 0x8f6   : > { %v1508_v8 = vpop.xlane.xlu0 %1507 }
 0x8f7   : > { %v1512_v10 = vsub.f32 %v1504_v2, %v1508_v8 }
 0x8f9   : > { %v1514_v11 = vmul.f32 1.442695, %v1512_v10 }
 0x8fa   : > { %v1523_v18 = vpop.xlane.xlu0 %1522 }
 0x8fb   : > { %3066 = vpow2.f32 %v1514_v11 }
 0x8fc   : > { %3068 = vrcp.f32 %v1523_v18 }
 0x905   : > { %v3067_v14 = vpop.eup %3066 }
 0x906   : > { %v1518_v17 = vsel %vm856_vm2, %v3067_v14, 0.0  ;;  %v3069_v19 = vpop.eup %3068 }
 0x907   : > { %1519 = vadd.xlane.f32.xlu0 %v1518_v17  ;;  %v1527_v21 = vmul.f32 %v3069_v19, %v3065_v6 }
 0x909   : > { %v1529_v25 = vpack.c.bf16 %v1527_v21, %v1527_v21 }
 0x91d   : > { %1578 = vrot.lane.b32.xlu0 %v3942_v16, %s3463_s2  ;;  %s4322_s2 = sld [smem:[#allocation36_spill]] }
 0x921   : > { %1678 = vrot.lane.b32.xlu0 %v3932_v12, %s3465_s24  ;;  %s4323_s24 = sshll.u32 %s3870_s26, 1 }
 0x994   : > { %v1520_v20 = vpop.xlane.xlu0 %1519 }
 0x995   : > { %3070 = vrcp.f32 %v1520_v20 }
 0x998   : > { %v1579_v22 = vpop.permute.xlu0 %1578 }
 0x999   : > { %v1584_v23 = vsel %vm987_vm10, %v1579_v22, 0 }
 0x99a   : > { %2810 = vmatpush3.bf16.msra.mxu0 %v1584_v23 }
 0x99b   : > { %2821 = vmatprep.subr.bf16.mxu0 %v3451_v1 }
 0x99c   : > { %v1679_v31 = vpop.permute.xlu0 %1678 }
 0x99d   : > { %2812 = vmatmul.mubr.msk.bf16.vlgmr.msra.gmra.mrb[28].mxu0 %vm856_vm2, %v1529_v25 }
 0x99e   : > { %2823 = vmatprep.mubr.msk.bf16.mxu0 %vm3452_vm0, %v3451_v1 }
 0x99f   : > { %v3071_v26 = vpop.eup %3070 }
 0x9a0   : > { %v1526_v24 = vmul.f32 %v3071_v26, %v3067_v14  ;;  %v1903_v26 = vld [vmem:[#allocation6 + $0xc] sm:$0xf] }
 0x9a1   : > { %v1909_v28 = vsel %vm987_vm10, %v1903_v26, 0 }
 0x9a2   : > { %v1528_v30 = vpack.c.bf16 %v1526_v24, %v1526_v24 }
 0x9a3   : > { %2822 = vmatpush3.bf16.xpose.msra.mxu0 %v1686_v29 }
 0x9a4   : > { %2806 = vmatmul.mubr.msk.bf16.vlgmr.msra.gmra.mrb[24].mxu1 %vm856_vm2, %v1528_v30  ;;  %2833 = vmatprep.subr.bf16.mxu0 %v3451_v1 }
 0x9a5   : > { %2817 = vmatprep.mubr.msk.bf16.mxu1 %vm3452_vm0, %v3451_v1  ;;  %2816 = vmatpush3.bf16.msra.mxu1 %v1633_v33 }
 0x9a6   : > { %2827 = vmatprep.subr.bf16.mxu1 %v3451_v1 }
 0x9aa   : > { %2824 = vmatmul.mubr.msk.bf16.vlgmr.msra.gmra.mrb[32].mxu0 %vm856_vm2, %v1679_v31 }
 0x9ab   : > { %2835 = vmatprep.mubr.msk.bf16.mxu0 %vm3452_vm0, %v3451_v1 }
 0xa70   : > { %v1620_v34 = vpop.f32.mrb[28].mxu0 }
 0xa71   : > { %v2813_v35 = vpop.f32.mrb[29].mxu0 }
 0xa72   : > { %v1623_v36 = vpop.f32.mrb[30].mxu0 }
 0xa73   : > { %v2814_v38 = vpop.f32.mrb[31].mxu0 }
 0xa77   : > { %v1572_v40 = vpop.f32.mrb[24].mxu1 }
 0xa78   : > { %v1628_v41 = vpack.c.bf16 %v1620_v34, %v1572_v40  ;;  %v2807_v42 = vpop.f32.mrb[25].mxu1 }
 0xa79   : > { %v1575_v43 = vpop.f32.mrb[26].mxu1 }
 0xa7a   : > { %v2808_v46 = vpop.f32.mrb[27].mxu1  ;;  %2818 = vmatmul.mubr.msk.bf16.vlgmr.msra.gmra.mrb[28].mxu1 %vm856_vm2, %v1628_v41 }
 0xa7b   : > { %2828 = vmatpush3.bf16.xpose.msra.mxu1 %v1736_v45  ;;  %2829 = vmatprep.mubr.msk.bf16.mxu1 %vm3452_vm0, %v3451_v1  ;;  %v2637_v45 = vld [vmem:[#allocation8] ss:$0 sm:$0xff] }
 0xa7c   : > { %2839 = vmatprep.subr.bf16.mxu1 %v3451_v1 }
 0xa7d   : > { %v1722_v47 = vpop.f32.mrb[32].mxu0 }
 0xa7e   : > { %v1778_v48 = vmul.f32 0.35355338, %v1722_v47  ;;  %v2825_v49 = vpop.f32.mrb[33].mxu0 }
 0xa7f   : > { %v1725_v50 = vpop.f32.mrb[34].mxu0 }
 0xa80   : > { %v2826_v51 = vpop.f32.mrb[35].mxu0  ;;  %v1780_v52 = vadd.f32 %v1778_v48, %v3960_v37 }
 0xa82   : > { %2830 = vmatmul.mubr.msk.bf16.vlgmr.msra.gmra.mrb[32].mxu1 %vm856_vm2, %v1729_v53  ;;  %v1782_v54 = vsel %vm856_vm2, %v1780_v52, -inf }
 0xa83   : > { %1783 = vmax.xlane.f32.xlu0 %v1782_v54  ;;  %2841 = vmatprep.mubr.msk.bf16.mxu1 %vm3452_vm0, %v3451_v1 }
 0xb10   : > { %v1784_v56 = vpop.xlane.xlu0 %1783 }
 0xb11   : > { %v1788_v57 = vsub.f32 %v1780_v52, %v1784_v56 }
 0xb13   : > { %v1790_v59 = vmul.f32 1.442695, %v1788_v57 }
 0xb15   : > { %3072 = vpow2.f32 %v1790_v59 }
 0xb1f   : > { %v3073_v60 = vpop.eup %3072 }
 0xb20   : > { %v1794_v61 = vsel %vm856_vm2, %v3073_v60, 0.0 }
 0xb21   : > { %1795 = vadd.xlane.f32.xlu0 %v1794_v61 }
 0xb4d   : > { %v1669_v62 = vpop.f32.mrb[28].mxu1 }
 0xb4e   : > { %v1676_v37 = vadd.f32 %v1669_v62, %v4057_v55  ;;  %v2819_v63 = vpop.f32.mrb[29].mxu1 }
 0xb4f   : > { %v1672_v0 = vpop.f32.mrb[30].mxu1 }
 0xb50   : > { %v4097_v2 = vadd.f32 %v1672_v0, %v4059_v58  ;;  %v2820_v3 = vpop.f32.mrb[31].mxu1 }
 0xb55   : > { %v1772_v6 = vpop.f32.mrb[32].mxu1 }
 0xb56   : > { %v1779_v7 = vmul.f32 0.35355338, %v1772_v6  ;;  %v2831_v8 = vpop.f32.mrb[33].mxu1  ;;  %v3039_v6 = vld [vmem:[%s4257_s8 + $0x8] sm:$0xff]  }
 0xb57   : > { %v1775_v10 = vpop.f32.mrb[34].mxu1 }
 0xb58   : > { %v2832_v11 = vpop.f32.mrb[35].mxu1  ;;  %v1781_v14 = vadd.f32 %v1779_v7, %v3963_v44 }
 0xb5a   : > { %v1785_v17 = vsel %vm856_vm2, %v1781_v14, -inf }
 0xb5b   : > { %1786 = vmax.xlane.f32.xlu1 %v1785_v17 }
 0xb6c   : > { %1806 = vrot.lane.b32.xlu1 %v3932_v12, %s3466_s17 }
 0xbae   : > { %v1796_v55 = vpop.xlane.xlu0 %1795 }
 0xbaf   : > { %3074 = vrcp.f32 %v1796_v55 }
 0xbb9   : > { %v3075_v18 = vpop.eup %3074 }
 0xbba   : > { %v1802_v20 = vmul.f32 %v3075_v18, %v3073_v60  ;;  %v2638_v18 = vld [vmem:[#allocation9] ss:$0 sm:$0xff] }
 0xbbc   : > { %v1804_v25 = vpack.c.bf16 %v1802_v20, %v1802_v20 }
 0xbe8   : > { %v1787_v19 = vpop.xlane.xlu1 %1786 }
 0xbe9   : > { %v1789_v58 = vsub.f32 %v1781_v14, %v1787_v19 }
 0xbeb   : > { %v1792_v21 = vmul.f32 1.442695, %v1789_v58 }
 0xbec   : > { %v1807_v22 = vpop.permute.xlu1 %1806 }
 0xbed   : > { %3076 = vpow2.f32 %v1792_v21  ;;  %v1812_v23 = vsel %vm987_vm10, %v1807_v22, 0  ;;  %v2639_v22 = vld [vmem:[#allocation11] ss:$0 sm:$0xff] }
 0xbee   : > { %2834 = vmatpush3.bf16.msra.mxu0 %v1812_v23 }
 0xbef   : > { %2845 = vmatprep.subr.bf16.mxu0 %v3451_v1 }
 0xbf1   : > { %2836 = vmatmul.mubr.msk.bf16.vlgmr.msra.gmra.mrb[36].mxu0 %vm856_vm2, %v1804_v25 }
 0xbf2   : > { %2847 = vmatprep.mubr.msk.bf16.mxu0 %vm3452_vm0, %v3451_v1  ;;  %2846 = vmatpush3.bf16.msra.mxu0 %v1909_v28  ;;  %v3041_v28 = vld [vmem:[#allocation17 + $0x8] sm:$0xff]  }
 0xbf3   : > { %2859 = vmatprep.subr.bf16.mxu0 %v3451_v1 }
 0xbf7   : > { %v3077_v12 = vpop.eup %3076 }
 0xbf8   : > { %v1797_v44 = vsel %vm856_vm2, %v3077_v12, 0.0 }
 0xbf9   : > { %1798 = vadd.xlane.f32.xlu0 %v1797_v44  ;;  %v3040_v44 = vld [vmem:[#allocation17] sm:$0xff]  }
 0xc0f   : > { %1854 = vrot.lane.b32.xlu0 %v3942_v16, %s3466_s17  ;;  %s4320_s17 = sld [smem:[#allocation33_spill]] }
 0xc86   : > { %v1799_v24 = vpop.xlane.xlu0 %1798 }
 0xc87   : > { %3078 = vrcp.f32 %v1799_v24  ;;  %v3042_v24 = vld [vmem:[%s4318_s14] sm:$0xff]  }
 0xc8a   : > { %v1855_v29 = vpop.permute.xlu0 %1854 }
 0xc8b   : > { %v1860_v30 = vsel %vm987_vm10, %v1855_v29, 0  ;;  %v3043_v29 = vld [vmem:[%s4318_s14 + $0x8] sm:$0xff]  }
 0xc8c   : > { %2840 = vmatpush3.bf16.msra.mxu1 %v1860_v30 }
 0xc8d   : > { %2851 = vmatprep.subr.bf16.mxu1 %v3451_v1 }
 0xc91   : > { %v3079_v31 = vpop.eup %3078 }
 0xc92   : > { %v1803_v32 = vmul.f32 %v3079_v31, %v3077_v12 }
 0xc94   : > { %v1805_v33 = vpack.c.bf16 %v1803_v32, %v1803_v32 }
 0xc96   : > { %2842 = vmatmul.mubr.msk.bf16.vlgmr.msra.gmra.mrb[36].mxu1 %vm856_vm2, %v1805_v33 }
 0xc97   : > { %2855 = vmatprep.mubr.msk.bf16.mxu1 %vm3452_vm0, %v3451_v1 }
 0xcc4   : > { %v1848_v16 = vpop.f32.mrb[36].mxu0 }
 0xcc5   : > { %v2837_v34 = vpop.f32.mrb[37].mxu0 }
 0xcc6   : > { %v1851_v35 = vpop.f32.mrb[38].mxu0 }
 0xcc7   : > { %v2838_v36 = vpop.f32.mrb[39].mxu0 }
 0xd69   : > { %v1896_v38 = vpop.f32.mrb[36].mxu1 }
 0xd6a   : > { %v1904_v39 = vpack.c.bf16 %v1896_v38, %v1848_v16  ;;  %v2843_v40 = vpop.f32.mrb[37].mxu1 }
 0xd6b   : > { %v1899_v41 = vpop.f32.mrb[38].mxu1 }
 0xd6c   : > { %v2844_v42 = vpop.f32.mrb[39].mxu1  ;;  %2848 = vmatmul.mubr.msk.bf16.vlgmr.msra.gmra.mrb[40].mxu0 %vm856_vm2, %v1904_v39 }
 0xd6d   : > { %2867 = vmatprep.mubr.msk.bf16.mxu0 %vm3452_vm0, %v3451_v1  ;;  %2860 = vmatpush3.bf16.msra.mxu0 %v3042_v24 }
 0xd6e   : > { %2861 = vmatprep.subr.bf16.mxu0 %v3451_v1 }
 0xd71   : > { %2862 = vmatpush3.bf16.msra.mxu0 %v3043_v29 }
 0xd72   : > { %2863 = vmatprep.subr.bf16.mxu0 %v3451_v1 }
 0xd75   : > { %2864 = vmatpush3.bf16.msra.mxu0 %v3044_v9  ;;  %v2650_v9 = vld [vmem:[#allocation15] ss:$0 sm:$0xff] }
 0xd76   : > { %2865 = vmatprep.subr.bf16.mxu0 %v3451_v1 }
 0xd79   : > { %2866 = vmatpush3.bf16.msra.mxu0 %v3045_v13 }
 0xe3f   : > { %v1945_v43 = vpop.f32.mrb[40].mxu0 }
 0xe40   : > { %v1952_v46 = vadd.f32 %v1945_v43, %v1676_v37  ;;  %v2849_v47 = vpop.f32.mrb[41].mxu0 }
 0xe41   : > { %v1948_v48 = vpop.f32.mrb[42].mxu0 }
 0xe42   : > { %v1961_v49 = vadd.f32 %v2637_v45, %v1952_v46  ;;  %v1953_v50 = vadd.f32 %v1948_v48, %v4097_v2  ;;  %v2850_v51 = vpop.f32.mrb[43].mxu0 }
 0xe44   : > { %v1962_v52 = vadd.f32 %v2637_v45, %v1953_v50  ;;  %v1963_v53 = vadd.f32 %v1961_v49, %v3914_v4 }
 0xe46   : > { %v1967_v54 = vsel %vm777_vm1, %v1963_v53, 0.0  ;;  %v1964_v56 = vadd.f32 %v1962_v52, %v3916_v5  ;;  %v3038_v5 = vld [vmem:[%s4257_s8] sm:$0xff]  }
 0xe47   : > { %1968 = vadd.xlane.f32.xlu1 %v1967_v54  ;;  %2852 = vmatpush3.bf16.msra.mxu1 %v3038_v5 }
 0xe48   : > { %v1970_v57 = vsel %vm777_vm1, %v1964_v56, 0.0  ;;  %2853 = vmatprep.subr.bf16.mxu1 %v3451_v1 }
 0xe49   : > { %1971 = vadd.xlane.f32.xlu0 %v1970_v57 }
 0xe4b   : > { %2854 = vmatpush3.bf16.msra.mxu1 %v3039_v6 }
 0xe4c   : > { %2871 = vmatprep.subr.bf16.mxu1 %v3451_v1 }
 0xed4   : > { %v1969_v59 = vpop.xlane.xlu1 %1968 }
 0xed5   : > { %v1974_v60 = vmul.f32 0.03125, %v1969_v59 }
 0xed6   : > { %v1972_v61 = vpop.xlane.xlu0 %1971 }
 0xed7   : > { %v1976_v62 = vsub.f32 %v1963_v53, %v1974_v60  ;;  %v1975_v37 = vmul.f32 0.03125, %v1972_v61 }
 0xed9   : > { %v1977_v63 = vsub.f32 %v1964_v56, %v1975_v37  ;;  %v1978_v0 = vmul.f32 %v1976_v62, %v1976_v62 }
 0xedb   : > { %v1980_v2 = vsel %vm777_vm1, %v1978_v0, 0.0  ;;  %v1979_v3 = vmul.f32 %v1977_v63, %v1977_v63 }
 0xedc   : > { %1981 = vadd.xlane.f32.xlu1 %v1980_v2 }
 0xedd   : > { %v1983_v4 = vsel %vm777_vm1, %v1979_v3, 0.0 }
 0xede   : > { %1984 = vadd.xlane.f32.xlu0 %v1983_v4 }
 0xf69   : > { %v1982_v7 = vpop.xlane.xlu1 %1981 }
 0xf6a   : > { %v1986_v8 = vmul.f32 0.03125, %v1982_v7 }
 0xf6b   : > { %v1985_v10 = vpop.xlane.xlu0 %1984 }
 0xf6c   : > { %v1988_v11 = vadd.f32 1e-05, %v1986_v8  ;;  %v1987_v14 = vmul.f32 0.03125, %v1985_v10 }
 0xf6e   : > { %3080 = vrsqrt.f32 %v1988_v11  ;;  %v1989_v17 = vadd.f32 1e-05, %v1987_v14 }
 0xf70   : > { %3082 = vrsqrt.f32 %v1989_v17 }
 0xf78   : > { %v3081_v55 = vpop.eup %3080 }
 0xf79   : > { %v1992_v19 = vmul.f32 %v3081_v55, %v1976_v62  ;;  %v2644_v62 = vld [vmem:[#allocation14] ss:$0 sm:$0xff] }
 0xf7a   : > { %v3083_v58 = vpop.eup %3082 }
 0xf7b   : > { %v2000_v20 = vmul.f32 %v2638_v18, %v1992_v19  ;;  %v1993_v21 = vmul.f32 %v3083_v58, %v1977_v63 }
 0xf7d   : > { %v2001_v23 = vmul.f32 %v2638_v18, %v1993_v21  ;;  %v4134_v25 = vadd.f32 %v2639_v22, %v2000_v20 }
 0xf7f   : > { %v4136_v12 = vadd.f32 %v2639_v22, %v2001_v23  ;;  %v3046_v22 = vld [vmem:[%s4319_s29] sm:$0xff]   ;;  %v3047_v23 = vld [vmem:[%s4319_s29 + $0x8] sm:$0xff]  }
 0xf81   : > { %v2014_v26 = vpack.c.bf16 %v4136_v12, %v4134_v25 }
 0xf83   : > { %2856 = vmatmul.mubr.msk.bf16.vlgmr.msra.gmra.mrb[40].mxu1 %vm777_vm1, %v2014_v26 }
 0xf84   : > { %2872 = vmatpush3.bf16.msra.mxu1 %v3040_v44  ;;  %2875 = vmatprep.mubr.msk.bf16.mxu1 %vm3452_vm0, %v3451_v1 }
 0xf85   : > { %2873 = vmatprep.subr.bf16.mxu1 %v3451_v1 }
 0xf88   : > { %2874 = vmatpush3.bf16.msra.mxu1 %v3041_v28 }
 0xf89   : > { %2879 = vmatprep.subr.bf16.mxu1 %v3451_v1 }
 0xf8b   : > { %2876 = vmatmul.mubr.msk.bf16.vlgmr.msra.gmra.mrb[44].mxu1 %vm777_vm1, %v2236_v15  ;;  %v2640_v15 = vld [vmem:[#allocation12] ss:$0 sm:$0xff] }
 0xf8c   : > { %2883 = vmatprep.mubr.msk.bf16.mxu1 %vm3452_vm0, %v3451_v1  ;;  %2880 = vmatpush3.bf16.msra.mxu1 %v3046_v22 }
 0xf8d   : > { %2881 = vmatprep.subr.bf16.mxu1 %v3451_v1 }
 0xf90   : > { %2882 = vmatpush3.bf16.msra.mxu1 %v3047_v23 }
0x1056   : > { %v2071_v30 = vpop.f32.mrb[40].mxu1 }
0x1057   : > { %v2072_v31 = vadd.f32 %v2640_v15, %v2071_v30  ;;  %v2857_v32 = vpop.f32.mrb[41].mxu1 }
0x1058   : > { %v2074_v33 = vpop.f32.mrb[42].mxu1  ;;  %v2651_v32 = vld [vmem:[%s4320_s17] ss:$0 sm:$0xff]  ;;  %s742_s17 = scalar_lea.vmem [#allocation18], %s4323_s24  ;;  %s3467_s24 = smov [#allocation18]  }
0x1059   : > { %v2078_v16 = vmul.f32 %v2072_v31, %v2072_v31  ;;  %v2075_v34 = vadd.f32 %v2640_v15, %v2074_v33  ;;  %v2858_v35 = vpop.f32.mrb[43].mxu1  ;;  %s2428_s30 = sshll.u32 %s742_s17, 4  ;;  %s3358_s5 = sshll.u32 %s3467_s24, 4  ;;  %s4207_s30 = int_to_ptr.vmem [resolvable:$true] %s2428_s30  ;;  %s3359_s5 = int_to_ptr.vmem [resolvable:$false] %s3358_s5 }
0x105a   : > { %s3360_s6 = scalar_lea.vmem %s3359_s5, 64  ;;  %p3361_p8 = scmp.lt.s32.totalorder %s4207_s30, %s3359_s5 }
0x105b   : > { %v2080_v36 = vmul.f32 %v2078_v16, %v2072_v31  ;;  %v2079_v38 = vmul.f32 %v2075_v34, %v2075_v34 }
0x105d   : > { %v2082_v39 = vmul.f32 0.044715, %v2080_v36  ;;  %v2081_v40 = vmul.f32 %v2079_v38, %v2075_v34  ;;  %v2658_v36 = vld [vmem:[%s4321_s27] ss:$0 sm:$0xff] }
0x105e   : > { %v4166_v41 = vpop.f32.mrb[44].mxu1 }
0x105f   : > { %v2084_v42 = vadd.f32 %v2082_v39, %v2072_v31  ;;  %v2083_v43 = vmul.f32 0.044715, %v2081_v40  ;;  %v2877_v45 = vpop.f32.mrb[45].mxu1 }
0x1060   : > { %v4168_v46 = vpop.f32.mrb[46].mxu1 }
0x1061   : > { %v2086_v47 = vmul.f32 0.7978846, %v2084_v42  ;;  %v2085_v48 = vadd.f32 %v2083_v43, %v2075_v34  ;;  %v2878_v49 = vpop.f32.mrb[47].mxu1 }
0x1063   : > { %3084 = vtanh.f32 %v2086_v47  ;;  %v2087_v50 = vmul.f32 0.7978846, %v2085_v48  ;;  %v2659_v47 = vld [vmem:[%s4322_s2] ss:$0 sm:$0xff]  ;;  %s3354_s2 = scalar_lea.vmem %s4207_s30, 32 }
0x1064   : > { %p3355_p13 = scmp.ne.s32.totalorder %s4207_s30, %s3354_s2  ;;  %p3362_p4 = scmp.lt.s32.totalorder %s3360_s6, %s3354_s2 }
0x1065   : > { %3086 = vtanh.f32 %v2087_v50 }
0x1066   : > { %p3356_p3 = pnand %p3355_p13, %p4325_p1  ;;  %p3363_p10 = por %p3362_p4, %p3361_p8 }
0x1068   : > { %p3357_p2 = pneg %p3356_p3 }
0x106a   : > { %p3364_p11 = pnand %p3363_p10, %p3357_p2 }
0x106d   : > { %v3085_v51 = vpop.eup %3084 }
0x106e   : > { %v2090_v52 = vadd.f32 1.0, %v3085_v51 }
0x106f   : > { %v3087_v53 = vpop.eup %3086 }
0x1070   : > { %v2092_v54 = vmul.f32 0.5, %v2090_v52  ;;  %v2091_v56 = vadd.f32 1.0, %v3087_v53 }
0x1072   : > { %v2093_v57 = vmul.f32 0.5, %v2091_v56  ;;  %v2094_v59 = vmul.f32 %v2092_v54, %v2072_v31  ;;  %v2660_v54 = vld [vmem:[#allocation2] ss:$0 sm:$0xff] }
0x1074   : > { %v2095_v60 = vmul.f32 %v2093_v57, %v2075_v34 }
0x1076   : > { %v2104_v61 = vpack.c.bf16 %v2095_v60, %v2094_v59 }
0x1078   : > { %2868 = vmatmul.mubr.msk.bf16.vlgmr.msra.gmra.mrb[44].mxu0 %vm2136_vm11, %v2104_v61 }
0x114b   : > { %v2174_v37 = vpop.f32.mrb[44].mxu0 }
0x114c   : > { %v2175_v63 = vadd.f32 %v2644_v62, %v2174_v37  ;;  %v2869_v0 = vpop.f32.mrb[45].mxu0 }
0x114d   : > { %v2177_v2 = vpop.f32.mrb[46].mxu0 }
0x114e   : > { %v2178_v3 = vadd.f32 %v2644_v62, %v2177_v2  ;;  %v2870_v4 = vpop.f32.mrb[47].mxu0  ;;  %v2181_v5 = vadd.f32 %v2175_v63, %v4134_v25 }
0x1150   : > { %v2185_v6 = vsel %vm777_vm1, %v2181_v5, 0.0  ;;  %v2182_v7 = vadd.f32 %v2178_v3, %v4136_v12 }
0x1151   : > { %2186 = vadd.xlane.f32.xlu1 %v2185_v6 }
0x1152   : > { %v2188_v8 = vsel %vm777_vm1, %v2182_v7, 0.0 }
0x1153   : > { %2189 = vadd.xlane.f32.xlu0 %v2188_v8 }
0x11de   : > { %v2187_v10 = vpop.xlane.xlu1 %2186 }
0x11df   : > { %v2191_v11 = vmul.f32 0.03125, %v2187_v10 }
0x11e0   : > { %v2190_v14 = vpop.xlane.xlu0 %2189 }
0x11e1   : > { %v2193_v17 = vsub.f32 %v2181_v5, %v2191_v11  ;;  %v2192_v55 = vmul.f32 0.03125, %v2190_v14 }
0x11e3   : > { %v2194_v18 = vsub.f32 %v2182_v7, %v2192_v55  ;;  %v2195_v19 = vmul.f32 %v2193_v17, %v2193_v17 }
0x11e5   : > { %v2197_v58 = vsel %vm777_vm1, %v2195_v19, 0.0  ;;  %v2196_v20 = vmul.f32 %v2194_v18, %v2194_v18 }
0x11e6   : > { %2198 = vadd.xlane.f32.xlu1 %v2197_v58 }
0x11e7   : > { %v2200_v21 = vsel %vm777_vm1, %v2196_v20, 0.0 }
0x11e8   : > { %2201 = vadd.xlane.f32.xlu0 %v2200_v21 }
0x1273   : > { %v2199_v25 = vpop.xlane.xlu1 %2198 }
0x1274   : > { %v2203_v12 = vmul.f32 0.03125, %v2199_v25 }
0x1275   : > { %v2202_v44 = vpop.xlane.xlu0 %2201 }
0x1276   : > { %v2205_v26 = vadd.f32 1e-05, %v2203_v12  ;;  %v2204_v28 = vmul.f32 0.03125, %v2202_v44 }
0x1278   : > { %3088 = vrsqrt.f32 %v2205_v26  ;;  %v2206_v24 = vadd.f32 1e-05, %v2204_v28 }
0x127a   : > { %3090 = vrsqrt.f32 %v2206_v24 }
0x1282   : > { %v3089_v29 = vpop.eup %3088 }
0x1283   : > { %v2209_v13 = vmul.f32 %v3089_v29, %v2193_v17 }
0x1284   : > { %v3091_v15 = vpop.eup %3090 }
0x1285   : > { %v2217_v30 = vmul.f32 %v2650_v9, %v2209_v13  ;;  %v2210_v31 = vmul.f32 %v3091_v15, %v2194_v18 }
0x1287   : > { %v2218_v1 = vmul.f32 %v2650_v9, %v2210_v31  ;;  %v2225_v33 = vadd.f32 %v2651_v32, %v2217_v30 }
0x1289   : > { %v2226_v16 = vadd.f32 %v2651_v32, %v2218_v1 }
0x128b   : > { %v2231_v34 = vpack.c.bf16 %v2226_v16, %v2225_v33 }
0x128d   : > { %2884 = vmatmul.mubr.msk.bf16.vlgmr.msra.gmra.mrb[48].mxu1 %vm777_vm1, %v2231_v34 }
0x1360   : > { %v2342_v35 = vpop.f32.mrb[48].mxu1 }
0x1361   : > { %v2343_v38 = vadd.f32 %v2342_v35, %v4166_v41  ;;  %v2885_v39 = vpop.f32.mrb[49].mxu1 }
0x1362   : > { %v2345_v40 = vpop.f32.mrb[50].mxu1 }
0x1363   : > { %v2356_v42 = vadd.f32 %v2658_v36, %v2343_v38  ;;  %v2346_v43 = vadd.f32 %v2345_v40, %v4168_v46  ;;  %v2886_v45 = vpop.f32.mrb[51].mxu1 }
0x1365   : > { %v2358_v48 = vmax.f32 %v2356_v42, 0.0  ;;  %v2357_v49 = vadd.f32 %v2658_v36, %v2346_v43 }
0x1367   : > { %v2359_v50 = vmax.f32 %v2357_v49, 0.0  ;;  %v2367_v51 = vmul.f32 %v2659_v47, %v2358_v48 }
0x1369   : > { %v2369_v52 = vsel %vm777_vm1, %v2367_v51, 0.0  ;;  %v2368_v53 = vmul.f32 %v2659_v47, %v2359_v50 }
0x136a   : > { %2370 = vadd.xlane.f32.xlu1 %v2369_v52 }
0x136b   : > { %v2372_v41 = vsel %vm777_vm1, %v2368_v53, 0.0 }
0x136c   : > { %2373 = vadd.xlane.f32.xlu0 %v2372_v41 }
0x137b   : > { %2382 = vperm.xlu1 %3034, %v2660_v54  }
0x13f7   : > { %v2371_v56 = vpop.xlane.xlu1 %2370 }
0x13f9   : > { %v2374_v46 = vpop.xlane.xlu0 %2373 }
0x13fb   : > { %v2383_v57 = vpop.permute.xlu1 %2382 }
0x13fc   : > { %v2385_v59 = vadd.f32 %v2383_v57, %v2371_v56  ;;  %v2386_v60 = vadd.f32 %v2383_v57, %v2374_v46 }
0x13fe   : > { %v2387_v61 = vsub.f32 0.0, %v2385_v59  ;;  %v2388_v62 = vsub.f32 0.0, %v2386_v60 }
0x1400   : > { %v2389_v37 = vmul.f32 1.442695, %v2387_v61  ;;  %v2391_v63 = vmul.f32 1.442695, %v2388_v62 }
0x1402   : > { %3092 = vpow2.f32 %v2389_v37 }
0x1403   : > { %3094 = vpow2.f32 %v2391_v63 }
0x140c   : > { %v3093_v0 = vpop.eup %3092 }
0x140d   : > { %v3095_v2 = vpop.eup %3094  ;;  %v2393_v3 = vadd.f32 1.0, %v3093_v0 }
0x140e   : > { %v2394_v4 = vadd.f32 1.0, %v3095_v2 }
0x140f   : > { %3096 = vrcp.f32 %v2393_v3 }
0x1410   : > { %3098 = vrcp.f32 %v2394_v4 }
0x1419   : > { %v3097_v5 = vpop.eup %3096 }
0x141a   : > { %v3099_v6 = vpop.eup %3098  ;;  %v2404_v7 = vrot.slane %v3097_v5, %v3956_v27 }
0x141b   : > { %v2408_v8 = vrot.slane %v3099_v6, %v3956_v27 }
0x141d   : > { %v2410_v10 = vsel %vm2409_vm12, %v2408_v8, %v2404_v7 }
0x141e   : > { %2413 = vst.msk [vmem:[%s742_s17] sm:$0x3] %vm2412_vm13, %v2410_v10 }
0x141f   : > { %3367 = shalt.err (!%p3364_p11)
}
0x1420   : > { %s3368_s26 = scalar_lea.hbm %s4205_s19, 32  ;;  %s3372_s18 = scalar_lea.hbm %s4324_s3, 64 }
0x1421   : > { %p3369_p0 = scmp.ne.s32.totalorder %s4205_s19, %s3368_s26  ;;  %p3373_p6 = scmp.lt.u32.totalorder %s4205_s19, %s4324_s3 }
0x1422   : > { %p3374_p9 = scmp.lt.u32.totalorder %s3372_s18, %s3368_s26  ;;  %p3376_p13 = scmp.lt.u32.totalorder %s3368_s26, %s4205_s19 }
0x1423   : > { %p3370_p5 = pnand %p3369_p0, %p4325_p1 }
0x1424   : > { %p3375_p12 = por %p3374_p9, %p3373_p6 }
0x1425   : > { %p3371_p7 = pneg %p3370_p5 }
0x1426   : > { %p3377_p3 = por %p3376_p13, %p3375_p12 }
0x1428   : > { %p3378_p2 = pnand %p3377_p3, %p3371_p7 }
0x142a   : > { %3381 = shalt.err (!%p3378_p2)
}
0x142b   : > { %2921 = dma.vmem_to_hbm [thread:$0]  (%p4325_p1), %s4207_s30, 32, %s4205_s19, %s2415_s23  }
0x142c PF: > { %s2440_s6 = sand.u32 1, %s3424_s20   ;;  %p4326_p8 = scmp.ne.s32.totalorder %s4303_s0, 0 }
0x142d   : > { %p4327_p4 = scmp.ge.s32.totalorder %s3436_s22, 2  ;;  %s2441_s2 = scalar_lea.sflag [#allocation5], %s2440_s6 }
0x142f   : > { %p2953_p10 = pnand %p4327_p4, %p4326_p8 }
0x1431   : > { %3419 = dma.done.wait (!%p2953_p10), %s2441_s2, 32  }
0x1432   : > { %3421 = vsyncadd (!%p2953_p10), %s2441_s2, 4294967264  ;;  %p38_p11 = scmp.ge.s32.totalorder %s3791_s25, 4   ;;  %s4328_s20 = smov %s3428_s21 }
0x1433   : > { %s4329_s21 = smov %s3432_s1  ;;  %s4330_s1 = smov %s3802_s13 }
0x1434   : > { %s4331_s22 = smov %s3791_s25  ;;  %40 = sbr.rel (!%p38_p11) target bundleno = 23 (0x17), region = 179 }
0x143b   :  { %2446 = vsyncpa [#allocation4], 1 }
0x143c   :  { %2448 = vsyncpa [#allocation4 + $0x1], 1 }
0x143d   :  { %2449 = vsyncpa [#allocation7], 1 }
0x143e   :  { %2450 = vsyncpa [#allocation10], 1 }
0x143f   :  { %2451 = vsyncpa [#allocation13], 1 }
0x1440   :  { %2452 = vsyncpa [#allocation16], 1 }
0x1441   :  { %2453 = vsyncpa [#allocation5], 1 }
0x1442   :  { %2455 = vsyncpa [#allocation5 + $0x1], 1 }

// kernel: tpu_custom_call.1
= control target key start
LH: loop header
LB: loop body
LE: loop exit
PB: predicated region body
PF: predicated region fallthrough
CT: control target
= control target key end

     0   :  { %s4249_s0 = inlined_call_operand.vmem [shape: f32[4,8,32], index: 0, kind: input, shape index: {}]   ;;  %s4250_s1 = inlined_call_operand.hbm [shape: f32[4,1,8], index: 1, kind: input, shape index: {}]   ;;  %s4251_s2 = inlined_call_operand.vmem [shape: bf16[32,128], index: 2, kind: input, shape index: {}]   ;;  %s4252_s3 = inlined_call_operand.vmem [shape: f32[1,128], index: 3, kind: input, shape index: {}]   ;;  %s4253_s4 = inlined_call_operand.hbm [shape: bf16[4,8,32], index: 4, kind: input, shape index: {}]   ;;  %s4254_s5 = inlined_call_operand.hbm [shape: f32[1,32], index: 5, kind: input, shape index: {}]   ;;  %s4255_s6 = inlined_call_operand.hbm [shape: f32[1,32], index: 6, kind: input, shape index: {}]   ;;  %s4256_s7 = inlined_call_operand.hbm [shape: f32[1,32], index: 7, kind: input, shape index: {}]   ;;  %s4257_s8 = inlined_call_operand.vmem [shape: bf16[32,64], index: 8, kind: input, shape index: {}]   ;;  %s4258_s9 = inlined_call_operand.hbm [shape: f32[1,64], index: 9, kind: input, shape index: {}]   ;;  %s4259_s10 = inlined_call_operand.vmem [shape: bf16[64,32], index: 10, kind: input, shape index: {}]   ;;  %s4260_s11 = inlined_call_operand.hbm [shape: f32[1,32], index: 11, kind: input, shape index: {}]   ;;  %s4261_s12 = inlined_call_operand.hbm [shape: f32[1,32], index: 12, kind: input, shape index: {}]   ;;  %s4262_s13 = inlined_call_operand.vmem [shape: f32[1,32], index: 13, kind: input, shape index: {}]   ;;  %s4263_s14 = inlined_call_operand.vmem [shape: bf16[32,32], index: 14, kind: input, shape index: {}]   ;;  %s4264_s15 = inlined_call_operand.hbm [shape: bf16[32,32], index: 15, kind: input, shape index: {}]   ;;  %s4265_s16 = inlined_call_operand.vmem [shape: f32[1,32], index: 16, kind: input, shape index: {}]   ;;  %s4266_s17 = inlined_call_operand.vmem [shape: f32[1,32], index: 17, kind: input, shape index: {}]   ;;  %s4267_s18 = inlined_call_operand.<no memory space> [shape: f32[1,1], index: 18, kind: input, shape index: {}]   ;;  %s4268_s19 = inlined_call_operand.hbm [shape: f32[2,2,8], index: 19, kind: output, shape index: {}]  }
   0x1   :  { %4279 = sst [smem:[#allocation25_spill]] %s4249_s0  ;;  %v24_v0 = vstv %s4267_s18 }
   0x2   :  { %4280 = sst [smem:[#allocation26_spill]] %s4250_s1  ;;  %25 = vst [vmem:[#allocation2] sm:$0x1] %v24_v0 }
   0x3   :  { %4281 = sst [smem:[#allocation27_spill]] %s4251_s2 }
   0x4   :  { %4282 = sst [smem:[#allocation28_spill]] %s4252_s3 }
   0x5   :  { %4283 = sst [smem:[#allocation29_spill]] %s4253_s4 }
   0x6   :  { %4284 = sst [smem:[#allocation30_spill]] %s4254_s5 }
   0x7   :  { %4285 = sst [smem:[#allocation31_spill]] %s4255_s6 }
   0x8   :  { %4286 = sst [smem:[#allocation32_spill]] %s4259_s10 }
   0x9   :  { %4287 = sst [smem:[#allocation33_spill]] %s4262_s13 }
   0xa   :  { %4288 = sst [smem:[#allocation34_spill]] %s4263_s14 }
   0xb   :  { %4289 = sst [smem:[#allocation35_spill]] %s4265_s16 }
   0xc   :  { %4290 = sst [smem:[#allocation36_spill]] %s4266_s17 }
   0xd   :  { %4291 = sst [smem:[#allocation37_spill]] %s4268_s19 }
   0xe   :  { %26 = vsyncpa [#allocation4], 0 }
   0xf   :  { %28 = vsyncpa [#allocation4 + $0x1], 0 }
  0x10   :  { %29 = vsyncpa [#allocation7], 0 }
  0x11   :  { %30 = vsyncpa [#allocation10], 0 }
  0x12   :  { %31 = vsyncpa [#allocation13], 0 }
  0x13   :  { %32 = vsyncpa [#allocation16], 0 }
  0x14   :  { %33 = vsyncpa [#allocation5], 0 }
  0x15   :  { %35 = vsyncpa [#allocation5 + $0x1], 0  ;;  %s3571_s20 = smov 0   ;;  %s3573_s21 = smov 0  }
  0x16   :  { %s3575_s1 = smov 0   ;;  %s3577_s22 = smov 0  }
  0x17 LB: > { %s3438_s18 = smov [#allocation6]   ;;  %s3592_s23 = sadd.s32 4294967295, %s3436_s22   ;;  %s3436_s22 = sphi %s3577_s22, %s4331_s22   ;;  %s3432_s1 = sphi %s3575_s1, %s4330_s1   ;;  %s3428_s21 = sphi %s3573_s21, %s4329_s21   ;;  %s3424_s20 = sphi %s3571_s20, %s4328_s20  }
  0x18   : > { %s499_s2 = sshll.u32 %s3438_s18, 4  ;;  %p2587_p0 = scmp.ge.s32.totalorder %s3436_s22, 1  ;;  %s3597_s2 = int_to_ptr.vmem [resolvable:$true] %s499_s2 }
  0x19   : > { %p4275_p1 = scmp.eq.s32.totalorder %s3592_s23, 0  ;;  %p481_p2 = scmp.lt.s32.totalorder %s3436_s22, 3 }
  0x1a   : > { %s3439_s25 = smov [#allocation9]   ;;  %s3440_s27 = smov [#allocation12]  }
  0x1b   : > { %p3599_p3 = pnand %p2587_p0, %p481_p2  ;;  %s524_s3 = sshll.u32 %s3439_s25, 4  ;;  %s3612_s3 = int_to_ptr.vmem [resolvable:$true] %s524_s3 }
  0x1c   : > { %s549_s28 = sshll.u32 %s3440_s27, 4  ;;  %s4294_s4 = sld [smem:[#allocation29_spill]]  ;;  %s3614_s28 = int_to_ptr.vmem [resolvable:$true] %s549_s28 }
  0x1d   : > { %s4292_s24 = scalar_select %p3599_p3, 1, 0 }
  0x1e   : > { %p2923_p5 = pneg %p3599_p3 }
  0x20   : > { %p3608_p6 = pnand %p2923_p5, %p4275_p1 }
  0x22   : > { %s3100_s30 = scalar_lea.hbm %s4294_s4, 256  ;;  %p3624_p8 = pneg %p3608_p6 }
  0x23   : > { %p3101_p7 = scmp.ne.s32.totalorder %s4294_s4, %s3100_s30  ;;  %p3107_p11 = scmp.lt.u32.totalorder %s3100_s30, %s4294_s4 }
  0x25   : > { %p3103_p9 = pnand %p3624_p8, %p3101_p7 }
  0x27   : > { %p3104_p10 = pneg %p3103_p9 }
  0x29   : > { %p3109_p12 = pnand %p3107_p11, %p3104_p10 }
  0x2b   : > { %3112 = shalt.err (!%p3109_p12)
}
  0x2c   : > { %s3113_s19 = scalar_lea.vmem %s3597_s2, 256  ;;  %p3121_p5 = scmp.lt.s32.totalorder %s3597_s2, %s3597_s2 }
  0x2d   : > { %p3114_p13 = scmp.ne.s32.totalorder %s3597_s2, %s3113_s19  ;;  %p3122_p4 = scmp.lt.s32.totalorder %s3113_s19, %s3113_s19 }
  0x2f   : > { %p3116_p0 = pnand %p3114_p13, %p3624_p8  ;;  %p3123_p7 = por %p3122_p4, %p3121_p5 }
  0x31   : > { %p3117_p2 = pneg %p3116_p0 }
  0x33   : > { %p3124_p9 = pnand %p3123_p7, %p3117_p2 }
  0x35   : > { %3127 = shalt.err (!%p3124_p9)
}
  0x36   : > { %s4274_s29 = smov 64   ;;  %s3442_s17 = smov 4  }
  0x37   : > { %2926 = dma.hbm_to_vmem [thread:$0]  (!%p3608_p6), %s4294_s4, 256, %s3597_s2, [#allocation7], %s4274_s29, %s4274_s29, %s3442_s17  }
  0x38   : > { %s4296_s6 = sld [smem:[#allocation31_spill]] }
  0x3e   : > { %s3128_s19 = scalar_lea.hbm %s4296_s6, 16 }
  0x3f   : > { %p3129_p4 = scmp.ne.s32.totalorder %s4296_s6, %s3128_s19  ;;  %p3135_p12 = scmp.lt.u32.totalorder %s3128_s19, %s4296_s6 }
  0x41   : > { %p3131_p10 = pnand %p3129_p4, %p3624_p8 }
  0x43   : > { %p3132_p11 = pneg %p3131_p10 }
  0x45   : > { %p3137_p13 = pnand %p3135_p12, %p3132_p11 }
  0x47   : > { %3140 = shalt.err (!%p3137_p13)
}
  0x48   : > { %s3141_s2 = scalar_lea.vmem %s3612_s3, 16  ;;  %s3148_s13 = scalar_lea.vmem %s3612_s3, 32 }
  0x49   : > { %p3142_p0 = scmp.ne.s32.totalorder %s3612_s3, %s3141_s2  ;;  %p3149_p7 = scmp.lt.s32.totalorder %s3612_s3, %s3612_s3 }
  0x4a   : > { %p3150_p9 = scmp.lt.s32.totalorder %s3148_s13, %s3141_s2 }
  0x4b   : > { %p3144_p2 = pnand %p3142_p0, %p3624_p8 }
  0x4c   : > { %p3151_p4 = por %p3150_p9, %p3149_p7 }
  0x4d   : > { %p3145_p5 = pneg %p3144_p2 }
  0x4f   : > { %p3152_p10 = pnand %p3151_p4, %p3145_p5 }
  0x51   : > { %3155 = shalt.err (!%p3152_p10)
}
  0x52   : > { %2932 = dma.hbm_to_vmem [thread:$0]  (!%p3608_p6), %s4296_s6, 16, %s3612_s3, [#allocation10]  }
  0x53   : > { %s3156_s30 = scalar_lea.hbm %s4258_s9, 16 }
  0x54   : > { %p3157_p11 = scmp.ne.s32.totalorder %s4258_s9, %s3156_s30  ;;  %p3163_p0 = scmp.lt.u32.totalorder %s3156_s30, %s4258_s9 }
  0x56   : > { %p3159_p12 = pnand %p3157_p11, %p3624_p8 }
  0x58   : > { %p3160_p13 = pneg %p3159_p12 }
  0x5a   : > { %p3165_p2 = pnand %p3163_p0, %p3160_p13 }
  0x5c   : > { %3168 = shalt.err (!%p3165_p2)
}
  0x5d   : > { %s3169_s3 = scalar_lea.vmem %s3614_s28, 16  ;;  %s3176_s13 = scalar_lea.vmem %s3614_s28, 32 }
  0x5e   : > { %p3170_p5 = scmp.ne.s32.totalorder %s3614_s28, %s3169_s3  ;;  %p3177_p4 = scmp.lt.s32.totalorder %s3614_s28, %s3614_s28 }
  0x5f   : > { %p3178_p10 = scmp.lt.s32.totalorder %s3176_s13, %s3169_s3 }
  0x60   : > { %p3172_p7 = pnand %p3170_p5, %p3624_p8 }
  0x61   : > { %p3179_p11 = por %p3178_p10, %p3177_p4 }
  0x62   : > { %p3173_p9 = pneg %p3172_p7 }
  0x64   : > { %p3180_p12 = pnand %p3179_p11, %p3173_p9 }
  0x66   : > { %3183 = shalt.err (!%p3180_p12)
}
  0x67   : > { %2938 = dma.hbm_to_vmem [thread:$0]  (!%p3608_p6), %s4258_s9, 16, %s3614_s28, [#allocation13]  }
  0x68   : > { %s3443_s16 = smov [#allocation15]   ;;  %s3444_s30 = smov [#allocation8]  }
  0x69   : > { %s574_s0 = sshll.u32 %s3443_s16, 4  ;;  %s513_s18 = sshll.u32 %s3444_s30, 4  ;;  %s575_s0 = int_to_ptr.vmem [resolvable:$true] %s574_s0  ;;  %s514_s18 = int_to_ptr.vmem [resolvable:$true] %s513_s18 }
  0x6a   : > { %s3184_s2 = scalar_lea.hbm %s4261_s12, 16 }
  0x6b   : > { %p3185_p13 = scmp.ne.s32.totalorder %s4261_s12, %s3184_s2  ;;  %p3191_p5 = scmp.lt.u32.totalorder %s3184_s2, %s4261_s12 }
  0x6d   : > { %p3187_p0 = pnand %p3185_p13, %p3624_p8 }
  0x6f   : > { %p3188_p2 = pneg %p3187_p0 }
  0x71   : > { %p3193_p7 = pnand %p3191_p5, %p3188_p2 }
  0x73   : > { %3196 = shalt.err (!%p3193_p7)
}
  0x74   : > { %s3197_s28 = scalar_lea.vmem %s575_s0, 16  ;;  %s3204_s14 = scalar_lea.vmem %s575_s0, 32 }
  0x75   : > { %p3198_p9 = scmp.ne.s32.totalorder %s575_s0, %s3197_s28  ;;  %p3205_p11 = scmp.lt.s32.totalorder %s575_s0, %s575_s0 }
  0x76   : > { %p3206_p12 = scmp.lt.s32.totalorder %s3204_s14, %s3197_s28 }
  0x77   : > { %p3200_p4 = pnand %p3198_p9, %p3624_p8 }
  0x78   : > { %p3207_p1 = por %p3206_p12, %p3205_p11 }
  0x79   : > { %p3201_p10 = pneg %p3200_p4 }
  0x7b   : > { %p3208_p3 = pnand %p3207_p1, %p3201_p10 }
  0x7d   : > { %3211 = shalt.err (!%p3208_p3)
}
  0x7e   : > { %2944 = dma.hbm_to_vmem [thread:$0]  (!%p3608_p6), %s4261_s12, 16, %s575_s0, [#allocation16]  }
  0x7f   : > { %s4297_s5 = sld [smem:[#allocation30_spill]] }
  0x85   : > { %s3212_s19 = scalar_lea.hbm %s4297_s5, 16 }
  0x86   : > { %p3213_p13 = scmp.ne.s32.totalorder %s4297_s5, %s3212_s19  ;;  %p3219_p3 = scmp.lt.u32.totalorder %s3212_s19, %s4297_s5 }
  0x88   : > { %p3215_p0 = pnand %p3213_p13, %p3624_p8 }
  0x8a   : > { %p3216_p1 = pneg %p3215_p0 }
  0x8c   : > { %p3221_p2 = pnand %p3219_p3, %p3216_p1 }
  0x8e   : > { %3224 = shalt.err (!%p3221_p2)
}
  0x8f   : > { %s3225_s28 = scalar_lea.vmem %s514_s18, 16  ;;  %s3232_s0 = scalar_lea.vmem %s514_s18, 32 }
  0x90   : > { %p3226_p5 = scmp.ne.s32.totalorder %s514_s18, %s3225_s28  ;;  %p3233_p4 = scmp.lt.s32.totalorder %s514_s18, %s514_s18 }
  0x91   : > { %p3234_p10 = scmp.lt.s32.totalorder %s3232_s0, %s3225_s28 }
  0x92   : > { %p3228_p7 = pnand %p3226_p5, %p3624_p8 }
  0x93   : > { %p3235_p11 = por %p3234_p10, %p3233_p4 }
  0x94   : > { %p3229_p9 = pneg %p3228_p7 }
  0x96   : > { %p3236_p12 = pnand %p3235_p11, %p3229_p9 }
  0x98   : > { %3239 = shalt.err (!%p3236_p12)
}
  0x99   : > { %2929 = dma.hbm_to_vmem [thread:$0]  (!%p3608_p6), %s4297_s5, 16, %s514_s18, [#allocation7]  }
  0x9a   : > { %s3445_s30 = smov [#allocation11]   ;;  %s3446_s27 = smov [#allocation14]  }
  0x9b   : > { %s535_s29 = sshll.u32 %s3445_s30, 4  ;;  %s563_s19 = sshll.u32 %s3446_s27, 4  ;;  %s536_s29 = int_to_ptr.vmem [resolvable:$true] %s535_s29  ;;  %s564_s19 = int_to_ptr.vmem [resolvable:$true] %s563_s19 }
  0x9c   : > { %s3240_s13 = scalar_lea.hbm %s4256_s7, 16 }
  0x9d   : > { %p3241_p13 = scmp.ne.s32.totalorder %s4256_s7, %s3240_s13  ;;  %p3247_p3 = scmp.lt.u32.totalorder %s3240_s13, %s4256_s7 }
  0x9f   : > { %p3243_p0 = pnand %p3241_p13, %p3624_p8 }
  0xa1   : > { %p3244_p1 = pneg %p3243_p0 }
  0xa3   : > { %p3249_p2 = pnand %p3247_p3, %p3244_p1 }
  0xa5   : > { %3252 = shalt.err (!%p3249_p2)
}
  0xa6   : > { %s3253_s18 = scalar_lea.vmem %s536_s29, 16  ;;  %s3260_s16 = scalar_lea.vmem %s536_s29, 32 }
  0xa7   : > { %p3254_p5 = scmp.ne.s32.totalorder %s536_s29, %s3253_s18  ;;  %p3261_p4 = scmp.lt.s32.totalorder %s536_s29, %s536_s29 }
  0xa8   : > { %p3262_p10 = scmp.lt.s32.totalorder %s3260_s16, %s3253_s18 }
  0xa9   : > { %p3256_p7 = pnand %p3254_p5, %p3624_p8 }
  0xaa   : > { %p3263_p11 = por %p3262_p10, %p3261_p4 }
  0xab   : > { %p3257_p9 = pneg %p3256_p7 }
  0xad   : > { %p3264_p12 = pnand %p3263_p11, %p3257_p9 }
  0xaf   : > { %3267 = shalt.err (!%p3264_p12)
}
  0xb0   : > { %2935 = dma.hbm_to_vmem [thread:$0]  (!%p3608_p6), %s4256_s7, 16, %s536_s29, [#allocation10]  }
  0xb1   : > { %s3268_s13 = scalar_lea.hbm %s4260_s11, 16 }
  0xb2   : > { %p3269_p13 = scmp.ne.s32.totalorder %s4260_s11, %s3268_s13  ;;  %p3275_p3 = scmp.lt.u32.totalorder %s3268_s13, %s4260_s11 }
  0xb4   : > { %p3271_p0 = pnand %p3269_p13, %p3624_p8 }
  0xb6   : > { %p3272_p1 = pneg %p3271_p0 }
  0xb8   : > { %p3277_p2 = pnand %p3275_p3, %p3272_p1 }
  0xba   : > { %3280 = shalt.err (!%p3277_p2)
}
  0xbb   : > { %s3281_s18 = scalar_lea.vmem %s564_s19, 16  ;;  %s3288_s29 = scalar_lea.vmem %s564_s19, 32 }
  0xbc   : > { %p3282_p5 = scmp.ne.s32.totalorder %s564_s19, %s3281_s18  ;;  %p3289_p4 = scmp.lt.s32.totalorder %s564_s19, %s564_s19 }
  0xbd   : > { %p3290_p10 = scmp.lt.s32.totalorder %s3288_s29, %s3281_s18 }
  0xbe   : > { %p3284_p7 = pnand %p3282_p5, %p3624_p8 }
  0xbf   : > { %p3291_p11 = por %p3290_p10, %p3289_p4 }
  0xc0   : > { %p3285_p9 = pneg %p3284_p7 }
  0xc2   : > { %p3292_p12 = pnand %p3291_p11, %p3285_p9 }
  0xc4   : > { %3295 = shalt.err (!%p3292_p12)
}
  0xc5   : > { %2941 = dma.hbm_to_vmem [thread:$0]  (!%p3608_p6), %s4260_s11, 16, %s564_s19, [#allocation13]  }
  0xc6   : > { %s3447_s27 = smov [#allocation17]   ;;  %s3296_s10 = scalar_lea.hbm %s4264_s15, 256 }
  0xc7   : > { %s590_s2 = sshll.u32 %s3447_s27, 4  ;;  %p3297_p13 = scmp.ne.s32.totalorder %s4264_s15, %s3296_s10  ;;  %s591_s2 = int_to_ptr.vmem [resolvable:$true] %s590_s2 }
  0xc8   : > { %p3303_p3 = scmp.lt.u32.totalorder %s3296_s10, %s4264_s15 }
  0xc9   : > { %p3299_p0 = pnand %p3297_p13, %p3624_p8 }
  0xcb   : > { %p3300_p1 = pneg %p3299_p0 }
  0xcd   : > { %p3305_p2 = pnand %p3303_p3, %p3300_p1 }
  0xcf   : > { %3308 = shalt.err (!%p3305_p2)
}
  0xd0   : > { %s3309_s19 = scalar_lea.vmem %s591_s2, 256  ;;  %p3317_p4 = scmp.lt.s32.totalorder %s591_s2, %s591_s2 }
  0xd1   : > { %p3310_p5 = scmp.ne.s32.totalorder %s591_s2, %s3309_s19  ;;  %p3318_p10 = scmp.lt.s32.totalorder %s3309_s19, %s3309_s19 }
  0xd3   : > { %p3312_p7 = pnand %p3310_p5, %p3624_p8  ;;  %p3319_p11 = por %p3318_p10, %p3317_p4 }
  0xd5   : > { %p3313_p9 = pneg %p3312_p7 }
  0xd7   : > { %p3320_p12 = pnand %p3319_p11, %p3313_p9 }
  0xd9   : > { %3323 = shalt.err (!%p3320_p12)
}
  0xda   : > { %s4298_s29 = smov 64   ;;  %s2586_s26 = sadd.s32 4294967294, %s3436_s22  }
  0xdb   : > { %2947 = dma.hbm_to_vmem [thread:$0]  (!%p3608_p6), %s4264_s15, 256, %s591_s2, [#allocation16], %s4298_s29, %s4298_s29, %s3442_s17  }
  0xdc   : > { %s3791_s25 = sadd.s32 1, %s3436_s22   ;;  %s74_s3 = sadd.s32 1, %s3432_s1 }
  0xdd   : > { %s71_s27 = ssub.s32 %s3436_s22, %s3791_s25  ;;  %p81_p13 = scmp.ne.s32.totalorder %s3432_s1, %s3428_s21 }
  0xde   : > { %p72_p8 = scmp.eq.s32.totalorder %s71_s27, 0  ;;  %p82_p0 = scmp.eq.s32.totalorder %s3436_s22, 0 }
  0xdf   : > { %p87_p1 = scmp.ne.s32.totalorder %s3428_s21, %s3424_s20  ;;  %p4300_p2 = scmp.eq.s32.totalorder %s3592_s23, 0 }
  0xe0   : > { %s3802_s13 = scalar_select %p72_p8, %s3432_s1, %s74_s3  }
  0xe1   : > { %p3804_p3 = por %p82_p0, %p81_p13  ;;  %p3810_p6 = por %p4300_p2, %p87_p1 }
  0xe2   : > { %p468_p5 = scmp.eq.s32.totalorder %s3592_s23, 1  ;;  %p474_p7 = scmp.eq.s32.totalorder %s2586_s26, 1 }
  0xe3   : > { %p2964_p9 = scmp.lt.s32.totalorder %s3436_s22, 2  ;;  %s622_s2 = sand.u32 1, %s3432_s1  }
  0xe4   : > { %p3817_p4 = por %p468_p5, %p81_p13  ;;  %p3821_p10 = por %p474_p7, %p87_p1 }
  0xe5   : > { %s2597_s14 = sshll.u32 %s622_s2, 1  ;;  %s2665_s18 = sshll.u32 %s3436_s22, 5 }
  0xe6   : > { %s4302_s28 = scalar_select %p3817_p4, 1, 0 }
  0xe7   : > { %s4303_s0 = scalar_select %p3821_p10, 1, 0 }
  0xe8   : > { %s4304_s16 = sld [smem:[#allocation26_spill]]  ;;  %s626_s26 = scalar_lea.vmem [#allocation3], %s2597_s14 }
  0xe9   : > { %s633_s27 = sshll.u32 %s626_s26, 4  ;;  %p3835_p11 = pnand %p2964_p9, %p3804_p3  ;;  %s3831_s27 = int_to_ptr.vmem [resolvable:$true] %s633_s27 }
  0xea   : > { %s3839_s4 = scalar_lea.sflag [#allocation4], %s622_s2 }
  0xeb   : > { %p3326_p8 = pneg %p3835_p11 }
  0xee   : > { %s3829_s30 = scalar_lea.hbm %s4304_s16, %s2665_s18  ;;  %s3329_s10 = scalar_lea.hbm %s4304_s16, 64 }
  0xef   : > { %s3324_s19 = scalar_lea.hbm %s3829_s30, 32  ;;  %p3330_p1 = scmp.lt.u32.totalorder %s3829_s30, %s4304_s16 }
  0xf0   : > { %p3325_p12 = scmp.ne.s32.totalorder %s3829_s30, %s3324_s19  ;;  %p3331_p3 = scmp.lt.u32.totalorder %s3329_s10, %s3324_s19 }
  0xf1   : > { %p3333_p5 = scmp.lt.u32.totalorder %s3324_s19, %s3829_s30 }
  0xf2   : > { %p3327_p13 = pnand %p3326_p8, %p3325_p12  ;;  %p3332_p2 = por %p3331_p3, %p3330_p1 }
  0xf4   : > { %p3328_p0 = pneg %p3327_p13  ;;  %p3334_p7 = por %p3333_p5, %p3332_p2 }
  0xf6   : > { %p3335_p9 = pnand %p3334_p7, %p3328_p0 }
  0xf8   : > { %3338 = shalt.err (!%p3335_p9)
}
  0xf9   : > { %s3339_s2 = scalar_lea.vmem %s3831_s27, 32  ;;  %s3448_s14 = smov [#allocation3]  }
  0xfa   : > { %p3340_p12 = scmp.ne.s32.totalorder %s3831_s27, %s3339_s2  ;;  %s3344_s18 = sshll.u32 %s3448_s14, 4  ;;  %s3345_s18 = int_to_ptr.vmem [resolvable:$false] %s3344_s18 }
  0xfb   : > { %s3346_s29 = scalar_lea.vmem %s3345_s18, 64  ;;  %p3347_p4 = scmp.lt.s32.totalorder %s3831_s27, %s3345_s18 }
  0xfc   : > { %p3342_p13 = pnand %p3340_p12, %p3326_p8  ;;  %p3348_p1 = scmp.lt.s32.totalorder %s3346_s29, %s3339_s2 }
  0xfe   : > { %p3343_p10 = pneg %p3342_p13  ;;  %p3349_p3 = por %p3348_p1, %p3347_p4 }
 0x100   : > { %p3350_p2 = pnand %p3349_p3, %p3343_p10 }
 0x102   : > { %3353 = shalt.err (!%p3350_p2)
}
 0x103   : > { %s3449_s19 = smov 16   ;;  %s3450_s10 = smov 1  }
 0x104   : > { %2951 = dma.hbm_to_vmem [thread:$0]  (!%p3835_p11), %s3829_s30, 32, %s3831_s27, %s3839_s4, %s3449_s19, %s3449_s19, %s3450_s10  }
 0x105   : > { %p4306_p8 = scmp.ne.s32.totalorder %s4292_s24, 0 }
 0x106   : > { %s3870_s26 = sand.u32 (!%p4306_p8), 1, %s3428_s21  }
 0x107   : > { %645 = sbr.rel (%p4306_p8) target bundleno = 5164 (0x142c), region = 96  ;;  %s4278_s2 = sshll.u32 (!%p4306_p8), %s3870_s26, 1 }
 0x108   : > { %s648_s14 = scalar_lea.sflag (!%p4306_p8), [#allocation4], %s3870_s26  ;;  %s3876_s18 = scalar_lea.vmem (!%p4306_p8), [#allocation3], %s4278_s2 }
 0x10e   : > { %3399 = dma.done.wait (%p3810_p6), %s648_s14, 32  }
 0x10f   : > { %3401 = vsyncadd (%p3810_p6), %s648_s14, 4294967264  ;;  %p4307_p4 = scmp.eq.s32.totalorder %s3592_s23, 0 }
 0x111   : > { %3403 = dma.done.wait (%p4307_p4), [#allocation7], 272   ;;  %p4308_p10 = pmov %p4307_p4 }
 0x112   : > { %p4309_p11 = pmov %p4307_p4 }
 0x113   : > { %3405 = vsyncadd (%p4308_p10), [#allocation7], 4294967024 }
 0x114   : > { %3407 = dma.done.wait (%p4309_p11), [#allocation10], 32   ;;  %p4310_p0 = pmov %p4307_p4 }
 0x116   : > { %3409 = vsyncadd (%p4310_p0), [#allocation10], 4294967264  ;;  %p4311_p5 = pmov %p4310_p0 }
 0x117   : > { %p4312_p7 = pmov %p4310_p0 }
 0x118   : > { %3411 = dma.done.wait (%p4311_p5), [#allocation13], 32  }
 0x119   : > { %3413 = vsyncadd (%p4312_p7), [#allocation13], 4294967264  ;;  %p4313_p6 = pmov %p4310_p0 }
 0x11a   : > { %p4314_p9 = pmov %p4310_p0 }
 0x11b   : > { %3415 = dma.done.wait (%p4313_p6), [#allocation16], 272  }
 0x11c   : > { %3417 = vsyncadd (%p4314_p9), [#allocation16], 4294967024  ;;  %s2611_s4 = sshll.u32 %s3592_s23, 1  ;;  %v3451_v1 = vmov 0.0   ;;  %vm3452_vm0 = vmmov 0   ;;  %s4315_s27 = sld [smem:[#allocation25_spill]]  ;;  %v826_v24 = vlaneseq }
 0x11d   : > { %2723 = vmatprep.subr.bf16.mxu0 %v3451_v1  ;;  %2727 = vmatprep.mubr.msk.bf16.mxu0 %vm3452_vm0, %v3451_v1  ;;  %p744_p12 = scmp.lt.s32.totalorder %s2611_s4, 3  ;;  %s4316_s10 = sld [smem:[#allocation27_spill]]  ;;  %vm777_vm1 = vcmask 261120   ;;  %vm856_vm2 = vcmask 64512   ;;  %v3455_v23 = vmov 0   ;;  %vm987_vm10 = vcmask 1043456  }
 0x11e   : > { %2731 = vmatprep.subr.bf16.mxu1 %v3451_v1  ;;  %2733 = vmatprep.mubr.msk.bf16.mxu1 %vm3452_vm0, %v3451_v1  ;;  %s3453_s17 = smov 96   ;;  %s3454_s30 = smov 64   ;;  %v827_v25 = vshrl.u32 %v826_v24, 7  ;;  %v829_v26 = vand.u32 127, %v826_v24  ;;  %v822_v28 = vld [vmem:[%s3876_s18] sm:$0x1] }
 0x11f   : > { %s4333_s4 = smov (!%p744_p12, %s2611_s4), 3  ;;  %3034 = vset.pattern.permute.xlu1 %v3455_v23  ;;  %3035 = vset.pattern.permute.xlu0 %v3455_v23  ;;  %vm824_vm3 = vcmp.gt.f32.partialorder %v822_v28, 0.5  ;;  %v823_v29 = vld [vmem:[%s3876_s18 + $0x1] sm:$0x1]  ;;  %v3456_v36 = vmov -1e+09  }
 0x120   : > { %s2612_s24 = sshll.u32 %s4333_s4, 3  ;;  %v3956_v27 = vsub.s32 %v829_v26, %v827_v25  ;;  %v835_v30 = vsub.s32 0, %v827_v25  ;;  %v831_v31 = vsel %vm824_vm3, 1, %v3455_v23  ;;  %vm825_vm4 = vcmp.gt.f32.partialorder %v823_v29, 0.5  ;;  %s3457_s18 = smov 32  }
 0x121   : > { %v832_v33 = vsel %vm825_vm4, 1, %v3455_v23  ;;  %vm830_vm5 = vcmp.le.s32.totalorder %v829_v26, %v827_v25  ;;  %s3460_s29 = smov 24   ;;  %s3461_s19 = smov 48   ;;  %vm2136_vm11 = vcmask 523264   ;;  %vm2409_vm12 = vcmask 1041409  }
 0x122   : > { %s747_s3 = scalar_lea.vmem %s4315_s27, %s2612_s24  ;;  %s4317_s24 = sld [smem:[#allocation28_spill]]  ;;  %v836_v32 = vrot.slane %v831_v31, %v835_v30  ;;  %v840_v34 = vrot.slane %v832_v33, %v835_v30  ;;  %vm2412_vm13 = vcmask 58368  }
 0x123   : > { %v3036_v2 = vld [vmem:[%s4316_s10] sm:$0xff]   ;;  %v3037_v3 = vld [vmem:[%s4316_s10 + $0x8] sm:$0xff]   ;;  %s3458_s27 = smov 56   ;;  %s3462_s14 = smov 80  }
 0x124   : > { %2724 = vmatpush3.bf16.msra.mxu0 %v3036_v2  ;;  %v3914_v4 = vld [vmem:[%s747_s3] sm:$0xff]  ;;  %v3916_v5 = vld [vmem:[%s747_s3 + $0x8] sm:$0xff]  ;;  %vm841_vm6 = vcmp.eq.s32.totalorder %v836_v32, 1  ;;  %vm842_vm8 = vcmp.eq.s32.totalorder %v840_v34, 1  ;;  %s3459_s3 = smov 88   ;;  %s3463_s2 = smov 16  }
 0x125   : > { %2725 = vmatprep.subr.bf16.mxu0 %v3451_v1  ;;  %v753_v6 = vpack.c.bf16 %v3916_v5, %v3914_v4  ;;  %vm845_vm7 = vmand %vm841_vm6, %vm830_vm5  ;;  %s3464_s4 = smov 40   ;;  %p4325_p1 = scmp.ne.s32.totalorder %s4302_s28, 0 }
 0x126   : > { %v3960_v37 = vsel %vm845_vm7, 0.0, %v3456_v36  ;;  %vm846_vm9 = vmand %vm842_vm8, %vm830_vm5 }
 0x127   : > { %v3963_v44 = vsel %vm846_vm9, 0.0, %v3456_v36 }
 0x128   : > { %2726 = vmatpush3.bf16.msra.mxu0 %v3037_v3  ;;  %v2613_v7 = vld [vmem:[%s4317_s24] ss:$0 sm:$0xff]  ;;  %s3465_s24 = smov 72  }
 0x129   : > { %2737 = vmatprep.subr.bf16.mxu0 %v3451_v1 }
 0x12b   : > { %2728 = vmatmul.mubr.msk.bf16.vlgmr.msra.gmra.mrb[0].mxu0 %vm777_vm1, %v753_v6 }
 0x12c   : > { %2739 = vmatprep.mubr.msk.bf16.mxu0 %vm3452_vm0, %v3451_v1 }
 0x1fe   : > { %v815_v8 = vpop.f32.mrb[0].mxu0 }
 0x1ff   : > { %v3928_v9 = vadd.f32 %v2613_v7, %v815_v8  ;;  %v2729_v10 = vpop.f32.mrb[1].mxu0 }
 0x200   : > { %v818_v11 = vpop.f32.mrb[2].mxu0 }
 0x201   : > { %v3932_v12 = vpack.c.bf16 %v3928_v9, %v3928_v9  ;;  %v3934_v13 = vadd.f32 %v2613_v7, %v818_v11  ;;  %v2730_v14 = vpop.f32.mrb[3].mxu0 }
 0x203   : > { %v2236_v15 = vpack.c.bf16 %v3934_v13, %v3928_v9  ;;  %852 = vrot.lane.b32.xlu1 %v3932_v12, %s3453_s17  ;;  %854 = vrot.lane.b32.xlu0 %v3932_v12, %s3454_s30  ;;  %v3942_v16 = vpack.c.bf16 %v3934_v13, %v3934_v13 }
 0x207   : > { %904 = vrot.lane.b32.xlu1 %v3942_v16, %s3453_s17  ;;  %906 = vrot.lane.b32.xlu0 %v3942_v16, %s3454_s30  ;;  %s3466_s17 = smov 8  }
 0x275   : > { %v855_v17 = vpop.permute.xlu0 %854  ;;  %v853_v21 = vpop.permute.xlu1 %852 }
 0x276   : > { %v861_v18 = vsel %vm856_vm2, %v855_v17, 0 }
 0x277   : > { %2732 = vmatpush3.bf16.xpose.msra.mxu1 %v861_v18 }
 0x278   : > { %2743 = vmatprep.subr.bf16.mxu1 %v3451_v1 }
 0x279   : > { %v907_v19 = vpop.permute.xlu0 %906  ;;  %v905_v22 = vpop.permute.xlu1 %904 }
 0x27a   : > { %v912_v20 = vsel %vm856_vm2, %v907_v19, 0 }
 0x27b   : > { %2738 = vmatpush3.bf16.xpose.msra.mxu0 %v912_v20 }
 0x27c   : > { %2749 = vmatprep.subr.bf16.mxu0 %v3451_v1 }
 0x27e   : > { %2734 = vmatmul.mubr.msk.bf16.vlgmr.msra.gmra.mrb[0].mxu1 %vm856_vm2, %v853_v21 }
 0x27f   : > { %2745 = vmatprep.mubr.msk.bf16.mxu1 %vm3452_vm0, %v3451_v1 }
 0x282   : > { %2740 = vmatmul.mubr.msk.bf16.vlgmr.msra.gmra.mrb[4].mxu0 %vm856_vm2, %v905_v22 }
 0x283   : > { %2751 = vmatprep.mubr.msk.bf16.mxu0 %vm3452_vm0, %v3451_v1 }
 0x351   : > { %v897_v35 = vpop.f32.mrb[0].mxu1 }
 0x352   : > { %v954_v38 = vmul.f32 0.35355338, %v897_v35  ;;  %v2735_v39 = vpop.f32.mrb[1].mxu1 }
 0x353   : > { %v900_v40 = vpop.f32.mrb[2].mxu1 }
 0x354   : > { %v2736_v41 = vpop.f32.mrb[3].mxu1  ;;  %v956_v42 = vadd.f32 %v954_v38, %v3960_v37 }
 0x355   : > { %v948_v43 = vpop.f32.mrb[4].mxu0 }
 0x356   : > { %v955_v45 = vmul.f32 0.35355338, %v948_v43  ;;  %v2741_v46 = vpop.f32.mrb[5].mxu0  ;;  %v958_v47 = vsel %vm856_vm2, %v956_v42, -inf }
 0x357   : > { %959 = vmax.xlane.f32.xlu0 %v958_v47  ;;  %v951_v48 = vpop.f32.mrb[6].mxu0 }
 0x358   : > { %v2742_v49 = vpop.f32.mrb[7].mxu0  ;;  %v957_v50 = vadd.f32 %v955_v45, %v3963_v44 }
 0x35a   : > { %v961_v51 = vsel %vm856_vm2, %v957_v50, -inf }
 0x35b   : > { %962 = vmax.xlane.f32.xlu1 %v961_v51 }
 0x36c   : > { %982 = vrot.lane.b32.xlu1 %v3932_v12, %s3457_s18 }
 0x370   : > { %1083 = vrot.lane.b32.xlu1 %v3932_v12, %s3458_s27 }
 0x374   : > { %1133 = vrot.lane.b32.xlu1 %v3942_v16, %s3458_s27  ;;  %s4321_s27 = sld [smem:[#allocation35_spill]] }
 0x378   : > { %1131 = vrot.lane.b32.xlu1 %v3942_v16, %s3459_s3 }
 0x3e4   : > { %v960_v52 = vpop.xlane.xlu0 %959 }
 0x3e5   : > { %v964_v53 = vsub.f32 %v956_v42, %v960_v52 }
 0x3e7   : > { %v966_v54 = vmul.f32 1.442695, %v964_v53 }
 0x3e8   : > { %v963_v55 = vpop.xlane.xlu1 %962 }
 0x3e9   : > { %3048 = vpow2.f32 %v966_v54  ;;  %v965_v56 = vsub.f32 %v957_v50, %v963_v55 }
 0x3eb   : > { %v968_v57 = vmul.f32 1.442695, %v965_v56 }
 0x3ec   : > { %v983_v58 = vpop.permute.xlu1 %982 }
 0x3ed   : > { %3050 = vpow2.f32 %v968_v57  ;;  %v989_v59 = vsel %vm987_vm10, %v983_v58, 0 }
 0x3ee   : > { %2744 = vmatpush3.bf16.msra.mxu1 %v989_v59 }
 0x3ef   : > { %2755 = vmatprep.subr.bf16.mxu1 %v3451_v1 }
 0x3f0   : > { %v1084_v8 = vpop.permute.xlu1 %1083 }
 0x3f1   : > { %v1089_v17 = vsel %vm856_vm2, %v1084_v8, 0 }
 0x3f3   : > { %v3049_v60 = vpop.eup %3048 }
 0x3f4   : > { %v970_v61 = vsel %vm856_vm2, %v3049_v60, 0.0  ;;  %v1134_v19 = vpop.permute.xlu1 %1133 }
 0x3f5   : > { %971 = vadd.xlane.f32.xlu0 %v970_v61  ;;  %v1139_v21 = vsel %vm856_vm2, %v1134_v19, 0 }
 0x3f7   : > { %v3051_v62 = vpop.eup %3050 }
 0x3f8   : > { %v973_v63 = vsel %vm856_vm2, %v3051_v62, 0.0  ;;  %v1132_v23 = vpop.permute.xlu1 %1131 }
 0x3f9   : > { %974 = vadd.xlane.f32.xlu0 %v973_v63 }
 0x40f   : > { %1031 = vrot.lane.b32.xlu0 %v3942_v16, %s3457_s18 }
 0x413   : > { %1081 = vrot.lane.b32.xlu0 %v3932_v12, %s3459_s3  ;;  %s4324_s3 = sld [smem:[#allocation37_spill]] }
 0x482   : > { %v972_v0 = vpop.xlane.xlu0 %971 }
 0x483   : > { %3052 = vrcp.f32 %v972_v0 }
 0x486   : > { %v975_v2 = vpop.xlane.xlu0 %974 }
 0x487   : > { %3054 = vrcp.f32 %v975_v2 }
 0x48a   : > { %v1032_v3 = vpop.permute.xlu0 %1031 }
 0x48b   : > { %v1037_v6 = vsel %vm987_vm10, %v1032_v3, 0 }
 0x48c   : > { %2750 = vmatpush3.bf16.msra.mxu0 %v1037_v6  ;;  %v1306_v6 = vld [vmem:[#allocation6 + $0x4] sm:$0xf] }
 0x48d   : > { %v3053_v7 = vpop.eup %3052  ;;  %2761 = vmatprep.subr.bf16.mxu0 %v3451_v1 }
 0x48e   : > { %v978_v10 = vmul.f32 %v3053_v7, %v3049_v60  ;;  %v1082_v22 = vpop.permute.xlu0 %1081 }
 0x490   : > { %v980_v11 = vpack.c.bf16 %v978_v10, %v978_v10  ;;  %v1312_v10 = vsel %vm987_vm10, %v1306_v6, 0 }
 0x491   : > { %v3055_v14 = vpop.eup %3054 }
 0x492   : > { %v979_v18 = vmul.f32 %v3055_v14, %v3051_v62  ;;  %2746 = vmatmul.mubr.msk.bf16.vlgmr.msra.gmra.mrb[4].mxu1 %vm856_vm2, %v980_v11  ;;  %v1079_v14 = vld [vmem:[#allocation6] sm:$0xf] }
 0x493   : > { %2756 = vmatpush3.bf16.xpose.msra.mxu1 %v1089_v17  ;;  %2757 = vmatprep.mubr.msk.bf16.mxu1 %vm3452_vm0, %v3451_v1  ;;  %v1359_v19 = vsel %vm987_vm10, %v1079_v14, 0 }
 0x494   : > { %v981_v20 = vpack.c.bf16 %v979_v18, %v979_v18  ;;  %2767 = vmatprep.subr.bf16.mxu1 %v3451_v1 }
 0x496   : > { %2752 = vmatmul.mubr.msk.bf16.vlgmr.msra.gmra.mrb[8].mxu0 %vm856_vm2, %v981_v20 }
 0x497   : > { %2762 = vmatpush3.bf16.xpose.msra.mxu0 %v1139_v21  ;;  %2763 = vmatprep.mubr.msk.bf16.mxu0 %vm3452_vm0, %v3451_v1 }
 0x498   : > { %2773 = vmatprep.subr.bf16.mxu0 %v3451_v1 }
 0x49a   : > { %2758 = vmatmul.mubr.msk.bf16.vlgmr.msra.gmra.mrb[8].mxu1 %vm856_vm2, %v1082_v22 }
 0x49b   : > { %2769 = vmatprep.mubr.msk.bf16.mxu1 %vm3452_vm0, %v3451_v1 }
 0x49e   : > { %2764 = vmatmul.mubr.msk.bf16.vlgmr.msra.gmra.mrb[12].mxu0 %vm856_vm2, %v1132_v23 }
 0x49f   : > { %2775 = vmatprep.mubr.msk.bf16.mxu0 %vm3452_vm0, %v3451_v1 }
 0x565   : > { %v3996_v24 = vpop.f32.mrb[4].mxu1 }
 0x566   : > { %v2747_v25 = vpop.f32.mrb[5].mxu1 }
 0x567   : > { %v1028_v26 = vpop.f32.mrb[6].mxu1 }
 0x568   : > { %v2748_v28 = vpop.f32.mrb[7].mxu1 }
 0x569   : > { %v3998_v29 = vpop.f32.mrb[8].mxu0 }
 0x56a   : > { %v1080_v30 = vpack.c.bf16 %v3998_v29, %v3996_v24  ;;  %v2753_v31 = vpop.f32.mrb[9].mxu0 }
 0x56b   : > { %v1076_v32 = vpop.f32.mrb[10].mxu0 }
 0x56c   : > { %v2754_v33 = vpop.f32.mrb[11].mxu0 }
 0x56d   : > { %v1125_v34 = vpop.f32.mrb[8].mxu1 }
 0x56e   : > { %v1181_v35 = vmul.f32 0.35355338, %v1125_v34  ;;  %v2759_v36 = vpop.f32.mrb[9].mxu1 }
 0x56f   : > { %v1128_v38 = vpop.f32.mrb[10].mxu1 }
 0x570   : > { %v2760_v39 = vpop.f32.mrb[11].mxu1  ;;  %v1183_v40 = vadd.f32 %v1181_v35, %v3960_v37 }
 0x571   : > { %v1175_v41 = vpop.f32.mrb[12].mxu0 }
 0x572   : > { %v1182_v42 = vmul.f32 0.35355338, %v1175_v41  ;;  %v2765_v43 = vpop.f32.mrb[13].mxu0  ;;  %v1185_v45 = vsel %vm856_vm2, %v1183_v40, -inf }
 0x573   : > { %1186 = vmax.xlane.f32.xlu0 %v1185_v45  ;;  %v1178_v46 = vpop.f32.mrb[14].mxu0 }
 0x574   : > { %v2766_v47 = vpop.f32.mrb[15].mxu0  ;;  %v1184_v48 = vadd.f32 %v1182_v42, %v3963_v44 }
 0x576   : > { %v1188_v49 = vsel %vm856_vm2, %v1184_v48, -inf }
 0x577   : > { %1189 = vmax.xlane.f32.xlu1 %v1188_v49 }
 0x588   : > { %1209 = vrot.lane.b32.xlu1 %v3932_v12, %s3460_s29 }
 0x58c   : > { %1404 = vrot.lane.b32.xlu1 %v3932_v12, %s3461_s19 }
 0x590   : > { %1454 = vrot.lane.b32.xlu1 %v3942_v16, %s3461_s19 }
 0x594   : > { %1452 = vrot.lane.b32.xlu1 %v3942_v16, %s3462_s14 }
 0x600   : > { %v1187_v50 = vpop.xlane.xlu0 %1186 }
 0x601   : > { %v1191_v51 = vsub.f32 %v1183_v40, %v1187_v50 }
 0x603   : > { %v1193_v52 = vmul.f32 1.442695, %v1191_v51 }
 0x604   : > { %v1190_v53 = vpop.xlane.xlu1 %1189 }
 0x605   : > { %3056 = vpow2.f32 %v1193_v52  ;;  %v1192_v54 = vsub.f32 %v1184_v48, %v1190_v53 }
 0x607   : > { %v1195_v55 = vmul.f32 1.442695, %v1192_v54 }
 0x608   : > { %v1210_v56 = vpop.permute.xlu1 %1209 }
 0x609   : > { %3058 = vpow2.f32 %v1195_v55  ;;  %v1215_v57 = vsel %vm987_vm10, %v1210_v56, 0 }
 0x60a   : > { %2768 = vmatpush3.bf16.msra.mxu1 %v1215_v57 }
 0x60b   : > { %2779 = vmatprep.subr.bf16.mxu1 %v3451_v1 }
 0x60c   : > { %v1405_v20 = vpop.permute.xlu1 %1404 }
 0x60d   : > { %v1410_v33 = vsel %vm856_vm2, %v1405_v20, 0 }
 0x60f   : > { %v3057_v58 = vpop.eup %3056 }
 0x610   : > { %v1197_v59 = vsel %vm856_vm2, %v3057_v58, 0.0  ;;  %v1455_v21 = vpop.permute.xlu1 %1454 }
 0x611   : > { %1198 = vadd.xlane.f32.xlu0 %v1197_v59  ;;  %v1460_v22 = vsel %vm856_vm2, %v1455_v21, 0 }
 0x613   : > { %v3059_v60 = vpop.eup %3058 }
 0x614   : > { %v1200_v61 = vsel %vm856_vm2, %v3059_v60, 0.0  ;;  %v1453_v23 = vpop.permute.xlu1 %1452 }
 0x615   : > { %1201 = vadd.xlane.f32.xlu0 %v1200_v61 }
 0x62b   : > { %1257 = vrot.lane.b32.xlu0 %v3942_v16, %s3460_s29  ;;  %s4319_s29 = sld [smem:[#allocation34_spill]] }
 0x62f   : > { %1402 = vrot.lane.b32.xlu0 %v3932_v12, %s3462_s14  ;;  %s4318_s14 = sld [smem:[#allocation32_spill]] }
 0x635   : > { %v3044_v9 = vld [vmem:[%s4318_s14 + $0x10] sm:$0xff]   ;;  %v3045_v13 = vld [vmem:[%s4318_s14 + $0x18] sm:$0xff]  }
 0x69e   : > { %v1199_v62 = vpop.xlane.xlu0 %1198 }
 0x69f   : > { %3060 = vrcp.f32 %v1199_v62 }
 0x6a2   : > { %v1202_v63 = vpop.xlane.xlu0 %1201 }
 0x6a3   : > { %3062 = vrcp.f32 %v1202_v63 }
 0x6a6   : > { %v1258_v0 = vpop.permute.xlu0 %1257 }
 0x6a7   : > { %v1263_v2 = vsel %vm987_vm10, %v1258_v0, 0 }
 0x6a8   : > { %2774 = vmatpush3.bf16.msra.mxu0 %v1263_v2 }
 0x6a9   : > { %v3061_v3 = vpop.eup %3060  ;;  %2785 = vmatprep.subr.bf16.mxu0 %v3451_v1 }
 0x6aa   : > { %v1205_v7 = vmul.f32 %v3061_v3, %v3057_v58  ;;  %v1403_v38 = vpop.permute.xlu0 %1402 }
 0x6ac   : > { %v1207_v8 = vpack.c.bf16 %v1205_v7, %v1205_v7 }
 0x6ad   : > { %v3063_v11 = vpop.eup %3062 }
 0x6ae   : > { %v1206_v17 = vmul.f32 %v3063_v11, %v3059_v60  ;;  %2770 = vmatmul.mubr.msk.bf16.vlgmr.msra.gmra.mrb[12].mxu1 %vm856_vm2, %v1207_v8 }
 0x6af   : > { %2780 = vmatpush3.bf16.msra.mxu1 %v1312_v10  ;;  %2781 = vmatprep.mubr.msk.bf16.mxu1 %vm3452_vm0, %v3451_v1 }
 0x6b0   : > { %v1208_v18 = vpack.c.bf16 %v1206_v17, %v1206_v17  ;;  %2791 = vmatprep.subr.bf16.mxu1 %v3451_v1 }
 0x6b2   : > { %2776 = vmatmul.mubr.msk.bf16.vlgmr.msra.gmra.mrb[16].mxu0 %vm856_vm2, %v1208_v18 }
 0x6b3   : > { %2786 = vmatpush3.bf16.msra.mxu0 %v1359_v19  ;;  %2787 = vmatprep.mubr.msk.bf16.mxu0 %vm3452_vm0, %v3451_v1 }
 0x6b4   : > { %2797 = vmatprep.subr.bf16.mxu0 %v3451_v1 }
 0x6ba   : > { %2788 = vmatmul.mubr.msk.bf16.vlgmr.msra.gmra.mrb[20].mxu0 %vm856_vm2, %v1080_v30 }
 0x6bb   : > { %2799 = vmatprep.mubr.msk.bf16.mxu0 %vm3452_vm0, %v3451_v1 }
 0x6bc   : > { %2798 = vmatpush3.bf16.xpose.msra.mxu0 %v1460_v22 }
 0x6bd   : > { %2809 = vmatprep.subr.bf16.mxu0 %v3451_v1 }
 0x6c3   : > { %2800 = vmatmul.mubr.msk.bf16.vlgmr.msra.gmra.mrb[24].mxu0 %vm856_vm2, %v1453_v23 }
 0x6c4   : > { %2811 = vmatprep.mubr.msk.bf16.mxu0 %vm3452_vm0, %v3451_v1 }
 0x781   : > { %v1251_v25 = vpop.f32.mrb[12].mxu1 }
 0x782   : > { %v2771_v26 = vpop.f32.mrb[13].mxu1 }
 0x783   : > { %v1254_v28 = vpop.f32.mrb[14].mxu1 }
 0x784   : > { %v2772_v24 = vpop.f32.mrb[15].mxu1 }
 0x785   : > { %v1299_v29 = vpop.f32.mrb[16].mxu0 }
 0x786   : > { %v1307_v30 = vpack.c.bf16 %v1299_v29, %v1251_v25  ;;  %v2777_v31 = vpop.f32.mrb[17].mxu0 }
 0x787   : > { %v1302_v32 = vpop.f32.mrb[18].mxu0 }
 0x788   : > { %v2778_v34 = vpop.f32.mrb[19].mxu0  ;;  %2782 = vmatmul.mubr.msk.bf16.vlgmr.msra.gmra.mrb[16].mxu1 %vm856_vm2, %v1307_v30  ;;  %v1627_v32 = vld [vmem:[#allocation6 + $0x8] sm:$0xf] }
 0x789   : > { %2792 = vmatpush3.bf16.xpose.msra.mxu1 %v1410_v33  ;;  %2793 = vmatprep.mubr.msk.bf16.mxu1 %vm3452_vm0, %v3451_v1  ;;  %v1633_v33 = vsel %vm987_vm10, %v1627_v32, 0 }
 0x78a   : > { %2803 = vmatprep.subr.bf16.mxu1 %v3451_v1 }
 0x78d   : > { %v1395_v35 = vpop.f32.mrb[20].mxu0 }
 0x78e   : > { %v2789_v36 = vpop.f32.mrb[21].mxu0 }
 0x78f   : > { %v1398_v39 = vpop.f32.mrb[22].mxu0 }
 0x790   : > { %v2790_v40 = vpop.f32.mrb[23].mxu0  ;;  %2794 = vmatmul.mubr.msk.bf16.vlgmr.msra.gmra.mrb[20].mxu1 %vm856_vm2, %v1403_v38 }
 0x791   : > { %2805 = vmatprep.mubr.msk.bf16.mxu1 %vm3452_vm0, %v3451_v1 }
 0x796   : > { %v1496_v41 = vpop.f32.mrb[24].mxu0 }
 0x797   : > { %v1503_v42 = vmul.f32 0.35355338, %v1496_v41  ;;  %v2801_v43 = vpop.f32.mrb[25].mxu0 }
 0x798   : > { %v1499_v45 = vpop.f32.mrb[26].mxu0 }
 0x799   : > { %v2802_v46 = vpop.f32.mrb[27].mxu0  ;;  %v1505_v47 = vadd.f32 %v1503_v42, %v3963_v44 }
 0x79b   : > { %v1509_v48 = vsel %vm856_vm2, %v1505_v47, -inf }
 0x79c   : > { %1510 = vmax.xlane.f32.xlu1 %v1509_v48 }
 0x7ad   : > { %1530 = vrot.lane.b32.xlu1 %v3932_v12, %s3463_s2 }
 0x7b1   : > { %1680 = vrot.lane.b32.xlu1 %v3932_v12, %s3464_s4 }
 0x7b5   : > { %1730 = vrot.lane.b32.xlu1 %v3942_v16, %s3464_s4  ;;  %s2662_s4 = sshll.u32 %s3592_s23, 5  ;;  %s2415_s23 = scalar_lea.sflag [#allocation5], %s3870_s26 }
 0x7b6   : > { %s4205_s19 = scalar_lea.hbm %s4324_s3, %s2662_s4 }
 0x7b9   : > { %1728 = vrot.lane.b32.xlu1 %v3942_v16, %s3465_s24 }
 0x829   : > { %v1511_v49 = vpop.xlane.xlu1 %1510 }
 0x82a   : > { %v1513_v52 = vsub.f32 %v1505_v47, %v1511_v49 }
 0x82c   : > { %v1516_v53 = vmul.f32 1.442695, %v1513_v52 }
 0x82d   : > { %v1531_v50 = vpop.permute.xlu1 %1530 }
 0x82e   : > { %v1536_v51 = vsel %vm987_vm10, %v1531_v50, 0  ;;  %3064 = vpow2.f32 %v1516_v53 }
 0x82f   : > { %2804 = vmatpush3.bf16.msra.mxu1 %v1536_v51 }
 0x830   : > { %2815 = vmatprep.subr.bf16.mxu1 %v3451_v1 }
 0x831   : > { %v1681_v28 = vpop.permute.xlu1 %1680 }
 0x832   : > { %v1686_v29 = vsel %vm856_vm2, %v1681_v28, 0 }
 0x838   : > { %v3065_v6 = vpop.eup %3064 }
 0x839   : > { %v1521_v7 = vsel %vm856_vm2, %v3065_v6, 0.0 }
 0x85b   : > { %v1348_v54 = vpop.f32.mrb[16].mxu1 }
 0x85c   : > { %v4057_v55 = vadd.f32 %v1395_v35, %v1348_v54  ;;  %v2783_v56 = vpop.f32.mrb[17].mxu1 }
 0x85d   : > { %v1351_v57 = vpop.f32.mrb[18].mxu1 }
 0x85e   : > { %v4059_v58 = vadd.f32 %v1398_v39, %v1351_v57  ;;  %v2784_v59 = vpop.f32.mrb[19].mxu1  ;;  %v1731_v39 = vpop.permute.xlu1 %1730 }
 0x85f   : > { %v1736_v45 = vsel %vm856_vm2, %v1731_v39, 0 }
 0x862   : > { %v1729_v53 = vpop.permute.xlu1 %1728 }
 0x863   : > { %v1446_v60 = vpop.f32.mrb[20].mxu1 }
 0x864   : > { %v1502_v61 = vmul.f32 0.35355338, %v1446_v60  ;;  %v2795_v62 = vpop.f32.mrb[21].mxu1 }
 0x865   : > { %v1449_v63 = vpop.f32.mrb[22].mxu1 }
 0x866   : > { %v2796_v0 = vpop.f32.mrb[23].mxu1  ;;  %v1504_v2 = vadd.f32 %v1502_v61, %v3960_v37 }
 0x868   : > { %v1506_v3 = vsel %vm856_vm2, %v1504_v2, -inf }
 0x869   : > { %1507 = vmax.xlane.f32.xlu0 %v1506_v3 }
 0x86d   : > { %1522 = vadd.xlane.f32.xlu0 %v1521_v7 }
 0x8f6   : > { %v1508_v8 = vpop.xlane.xlu0 %1507 }
 0x8f7   : > { %v1512_v10 = vsub.f32 %v1504_v2, %v1508_v8 }
 0x8f9   : > { %v1514_v11 = vmul.f32 1.442695, %v1512_v10 }
 0x8fa   : > { %v1523_v18 = vpop.xlane.xlu0 %1522 }
 0x8fb   : > { %3066 = vpow2.f32 %v1514_v11 }
 0x8fc   : > { %3068 = vrcp.f32 %v1523_v18 }
 0x905   : > { %v3067_v14 = vpop.eup %3066 }
 0x906   : > { %v1518_v17 = vsel %vm856_vm2, %v3067_v14, 0.0  ;;  %v3069_v19 = vpop.eup %3068 }
 0x907   : > { %1519 = vadd.xlane.f32.xlu0 %v1518_v17  ;;  %v1527_v21 = vmul.f32 %v3069_v19, %v3065_v6 }
 0x909   : > { %v1529_v25 = vpack.c.bf16 %v1527_v21, %v1527_v21 }
 0x91d   : > { %1578 = vrot.lane.b32.xlu0 %v3942_v16, %s3463_s2  ;;  %s4322_s2 = sld [smem:[#allocation36_spill]] }
 0x921   : > { %1678 = vrot.lane.b32.xlu0 %v3932_v12, %s3465_s24  ;;  %s4323_s24 = sshll.u32 %s3870_s26, 1 }
 0x994   : > { %v1520_v20 = vpop.xlane.xlu0 %1519 }
 0x995   : > { %3070 = vrcp.f32 %v1520_v20 }
 0x998   : > { %v1579_v22 = vpop.permute.xlu0 %1578 }
 0x999   : > { %v1584_v23 = vsel %vm987_vm10, %v1579_v22, 0 }
 0x99a   : > { %2810 = vmatpush3.bf16.msra.mxu0 %v1584_v23 }
 0x99b   : > { %2821 = vmatprep.subr.bf16.mxu0 %v3451_v1 }
 0x99c   : > { %v1679_v31 = vpop.permute.xlu0 %1678 }
 0x99d   : > { %2812 = vmatmul.mubr.msk.bf16.vlgmr.msra.gmra.mrb[28].mxu0 %vm856_vm2, %v1529_v25 }
 0x99e   : > { %2823 = vmatprep.mubr.msk.bf16.mxu0 %vm3452_vm0, %v3451_v1 }
 0x99f   : > { %v3071_v26 = vpop.eup %3070 }
 0x9a0   : > { %v1526_v24 = vmul.f32 %v3071_v26, %v3067_v14  ;;  %v1903_v26 = vld [vmem:[#allocation6 + $0xc] sm:$0xf] }
 0x9a1   : > { %v1909_v28 = vsel %vm987_vm10, %v1903_v26, 0 }
 0x9a2   : > { %v1528_v30 = vpack.c.bf16 %v1526_v24, %v1526_v24 }
 0x9a3   : > { %2822 = vmatpush3.bf16.xpose.msra.mxu0 %v1686_v29 }
 0x9a4   : > { %2806 = vmatmul.mubr.msk.bf16.vlgmr.msra.gmra.mrb[24].mxu1 %vm856_vm2, %v1528_v30  ;;  %2833 = vmatprep.subr.bf16.mxu0 %v3451_v1 }
 0x9a5   : > { %2817 = vmatprep.mubr.msk.bf16.mxu1 %vm3452_vm0, %v3451_v1  ;;  %2816 = vmatpush3.bf16.msra.mxu1 %v1633_v33 }
 0x9a6   : > { %2827 = vmatprep.subr.bf16.mxu1 %v3451_v1 }
 0x9aa   : > { %2824 = vmatmul.mubr.msk.bf16.vlgmr.msra.gmra.mrb[32].mxu0 %vm856_vm2, %v1679_v31 }
 0x9ab   : > { %2835 = vmatprep.mubr.msk.bf16.mxu0 %vm3452_vm0, %v3451_v1 }
 0xa70   : > { %v1620_v34 = vpop.f32.mrb[28].mxu0 }
 0xa71   : > { %v2813_v35 = vpop.f32.mrb[29].mxu0 }
 0xa72   : > { %v1623_v36 = vpop.f32.mrb[30].mxu0 }
 0xa73   : > { %v2814_v38 = vpop.f32.mrb[31].mxu0 }
 0xa77   : > { %v1572_v40 = vpop.f32.mrb[24].mxu1 }
 0xa78   : > { %v1628_v41 = vpack.c.bf16 %v1620_v34, %v1572_v40  ;;  %v2807_v42 = vpop.f32.mrb[25].mxu1 }
 0xa79   : > { %v1575_v43 = vpop.f32.mrb[26].mxu1 }
 0xa7a   : > { %v2808_v46 = vpop.f32.mrb[27].mxu1  ;;  %2818 = vmatmul.mubr.msk.bf16.vlgmr.msra.gmra.mrb[28].mxu1 %vm856_vm2, %v1628_v41 }
 0xa7b   : > { %2828 = vmatpush3.bf16.xpose.msra.mxu1 %v1736_v45  ;;  %2829 = vmatprep.mubr.msk.bf16.mxu1 %vm3452_vm0, %v3451_v1  ;;  %v2637_v45 = vld [vmem:[#allocation8] ss:$0 sm:$0xff] }
 0xa7c   : > { %2839 = vmatprep.subr.bf16.mxu1 %v3451_v1 }
 0xa7d   : > { %v1722_v47 = vpop.f32.mrb[32].mxu0 }
 0xa7e   : > { %v1778_v48 = vmul.f32 0.35355338, %v1722_v47  ;;  %v2825_v49 = vpop.f32.mrb[33].mxu0 }
 0xa7f   : > { %v1725_v50 = vpop.f32.mrb[34].mxu0 }
 0xa80   : > { %v2826_v51 = vpop.f32.mrb[35].mxu0  ;;  %v1780_v52 = vadd.f32 %v1778_v48, %v3960_v37 }
 0xa82   : > { %2830 = vmatmul.mubr.msk.bf16.vlgmr.msra.gmra.mrb[32].mxu1 %vm856_vm2, %v1729_v53  ;;  %v1782_v54 = vsel %vm856_vm2, %v1780_v52, -inf }
 0xa83   : > { %1783 = vmax.xlane.f32.xlu0 %v1782_v54  ;;  %2841 = vmatprep.mubr.msk.bf16.mxu1 %vm3452_vm0, %v3451_v1 }
 0xb10   : > { %v1784_v56 = vpop.xlane.xlu0 %1783 }
 0xb11   : > { %v1788_v57 = vsub.f32 %v1780_v52, %v1784_v56 }
 0xb13   : > { %v1790_v59 = vmul.f32 1.442695, %v1788_v57 }
 0xb15   : > { %3072 = vpow2.f32 %v1790_v59 }
 0xb1f   : > { %v3073_v60 = vpop.eup %3072 }
 0xb20   : > { %v1794_v61 = vsel %vm856_vm2, %v3073_v60, 0.0 }
 0xb21   : > { %1795 = vadd.xlane.f32.xlu0 %v1794_v61 }
 0xb4d   : > { %v1669_v62 = vpop.f32.mrb[28].mxu1 }
 0xb4e   : > { %v1676_v37 = vadd.f32 %v1669_v62, %v4057_v55  ;;  %v2819_v63 = vpop.f32.mrb[29].mxu1 }
 0xb4f   : > { %v1672_v0 = vpop.f32.mrb[30].mxu1 }
 0xb50   : > { %v4097_v2 = vadd.f32 %v1672_v0, %v4059_v58  ;;  %v2820_v3 = vpop.f32.mrb[31].mxu1 }
 0xb55   : > { %v1772_v6 = vpop.f32.mrb[32].mxu1 }
 0xb56   : > { %v1779_v7 = vmul.f32 0.35355338, %v1772_v6  ;;  %v2831_v8 = vpop.f32.mrb[33].mxu1  ;;  %v3039_v6 = vld [vmem:[%s4257_s8 + $0x8] sm:$0xff]  }
 0xb57   : > { %v1775_v10 = vpop.f32.mrb[34].mxu1 }
 0xb58   : > { %v2832_v11 = vpop.f32.mrb[35].mxu1  ;;  %v1781_v14 = vadd.f32 %v1779_v7, %v3963_v44 }
 0xb5a   : > { %v1785_v17 = vsel %vm856_vm2, %v1781_v14, -inf }
 0xb5b   : > { %1786 = vmax.xlane.f32.xlu1 %v1785_v17 }
 0xb6c   : > { %1806 = vrot.lane.b32.xlu1 %v3932_v12, %s3466_s17 }
 0xbae   : > { %v1796_v55 = vpop.xlane.xlu0 %1795 }
 0xbaf   : > { %3074 = vrcp.f32 %v1796_v55 }
 0xbb9   : > { %v3075_v18 = vpop.eup %3074 }
 0xbba   : > { %v1802_v20 = vmul.f32 %v3075_v18, %v3073_v60  ;;  %v2638_v18 = vld [vmem:[#allocation9] ss:$0 sm:$0xff] }
 0xbbc   : > { %v1804_v25 = vpack.c.bf16 %v1802_v20, %v1802_v20 }
 0xbe8   : > { %v1787_v19 = vpop.xlane.xlu1 %1786 }
 0xbe9   : > { %v1789_v58 = vsub.f32 %v1781_v14, %v1787_v19 }
 0xbeb   : > { %v1792_v21 = vmul.f32 1.442695, %v1789_v58 }
 0xbec   : > { %v1807_v22 = vpop.permute.xlu1 %1806 }
 0xbed   : > { %3076 = vpow2.f32 %v1792_v21  ;;  %v1812_v23 = vsel %vm987_vm10, %v1807_v22, 0  ;;  %v2639_v22 = vld [vmem:[#allocation11] ss:$0 sm:$0xff] }
 0xbee   : > { %2834 = vmatpush3.bf16.msra.mxu0 %v1812_v23 }
 0xbef   : > { %2845 = vmatprep.subr.bf16.mxu0 %v3451_v1 }
 0xbf1   : > { %2836 = vmatmul.mubr.msk.bf16.vlgmr.msra.gmra.mrb[36].mxu0 %vm856_vm2, %v1804_v25 }
 0xbf2   : > { %2847 = vmatprep.mubr.msk.bf16.mxu0 %vm3452_vm0, %v3451_v1  ;;  %2846 = vmatpush3.bf16.msra.mxu0 %v1909_v28  ;;  %v3041_v28 = vld [vmem:[#allocation17 + $0x8] sm:$0xff]  }
 0xbf3   : > { %2859 = vmatprep.subr.bf16.mxu0 %v3451_v1 }
 0xbf7   : > { %v3077_v12 = vpop.eup %3076 }
 0xbf8   : > { %v1797_v44 = vsel %vm856_vm2, %v3077_v12, 0.0 }
 0xbf9   : > { %1798 = vadd.xlane.f32.xlu0 %v1797_v44  ;;  %v3040_v44 = vld [vmem:[#allocation17] sm:$0xff]  }
 0xc0f   : > { %1854 = vrot.lane.b32.xlu0 %v3942_v16, %s3466_s17  ;;  %s4320_s17 = sld [smem:[#allocation33_spill]] }
 0xc86   : > { %v1799_v24 = vpop.xlane.xlu0 %1798 }
 0xc87   : > { %3078 = vrcp.f32 %v1799_v24  ;;  %v3042_v24 = vld [vmem:[%s4318_s14] sm:$0xff]  }
 0xc8a   : > { %v1855_v29 = vpop.permute.xlu0 %1854 }
 0xc8b   : > { %v1860_v30 = vsel %vm987_vm10, %v1855_v29, 0  ;;  %v3043_v29 = vld [vmem:[%s4318_s14 + $0x8] sm:$0xff]  }
 0xc8c   : > { %2840 = vmatpush3.bf16.msra.mxu1 %v1860_v30 }
 0xc8d   : > { %2851 = vmatprep.subr.bf16.mxu1 %v3451_v1 }
 0xc91   : > { %v3079_v31 = vpop.eup %3078 }
 0xc92   : > { %v1803_v32 = vmul.f32 %v3079_v31, %v3077_v12 }
 0xc94   : > { %v1805_v33 = vpack.c.bf16 %v1803_v32, %v1803_v32 }
 0xc96   : > { %2842 = vmatmul.mubr.msk.bf16.vlgmr.msra.gmra.mrb[36].mxu1 %vm856_vm2, %v1805_v33 }
 0xc97   : > { %2855 = vmatprep.mubr.msk.bf16.mxu1 %vm3452_vm0, %v3451_v1 }
 0xcc4   : > { %v1848_v16 = vpop.f32.mrb[36].mxu0 }
 0xcc5   : > { %v2837_v34 = vpop.f32.mrb[37].mxu0 }
 0xcc6   : > { %v1851_v35 = vpop.f32.mrb[38].mxu0 }
 0xcc7   : > { %v2838_v36 = vpop.f32.mrb[39].mxu0 }
 0xd69   : > { %v1896_v38 = vpop.f32.mrb[36].mxu1 }
 0xd6a   : > { %v1904_v39 = vpack.c.bf16 %v1896_v38, %v1848_v16  ;;  %v2843_v40 = vpop.f32.mrb[37].mxu1 }
 0xd6b   : > { %v1899_v41 = vpop.f32.mrb[38].mxu1 }
 0xd6c   : > { %v2844_v42 = vpop.f32.mrb[39].mxu1  ;;  %2848 = vmatmul.mubr.msk.bf16.vlgmr.msra.gmra.mrb[40].mxu0 %vm856_vm2, %v1904_v39 }
 0xd6d   : > { %2867 = vmatprep.mubr.msk.bf16.mxu0 %vm3452_vm0, %v3451_v1  ;;  %2860 = vmatpush3.bf16.msra.mxu0 %v3042_v24 }
 0xd6e   : > { %2861 = vmatprep.subr.bf16.mxu0 %v3451_v1 }
 0xd71   : > { %2862 = vmatpush3.bf16.msra.mxu0 %v3043_v29 }
 0xd72   : > { %2863 = vmatprep.subr.bf16.mxu0 %v3451_v1 }
 0xd75   : > { %2864 = vmatpush3.bf16.msra.mxu0 %v3044_v9  ;;  %v2650_v9 = vld [vmem:[#allocation15] ss:$0 sm:$0xff] }
 0xd76   : > { %2865 = vmatprep.subr.bf16.mxu0 %v3451_v1 }
 0xd79   : > { %2866 = vmatpush3.bf16.msra.mxu0 %v3045_v13 }
 0xe3f   : > { %v1945_v43 = vpop.f32.mrb[40].mxu0 }
 0xe40   : > { %v1952_v46 = vadd.f32 %v1945_v43, %v1676_v37  ;;  %v2849_v47 = vpop.f32.mrb[41].mxu0 }
 0xe41   : > { %v1948_v48 = vpop.f32.mrb[42].mxu0 }
 0xe42   : > { %v1961_v49 = vadd.f32 %v2637_v45, %v1952_v46  ;;  %v1953_v50 = vadd.f32 %v1948_v48, %v4097_v2  ;;  %v2850_v51 = vpop.f32.mrb[43].mxu0 }
 0xe44   : > { %v1962_v52 = vadd.f32 %v2637_v45, %v1953_v50  ;;  %v1963_v53 = vadd.f32 %v1961_v49, %v3914_v4 }
 0xe46   : > { %v1967_v54 = vsel %vm777_vm1, %v1963_v53, 0.0  ;;  %v1964_v56 = vadd.f32 %v1962_v52, %v3916_v5  ;;  %v3038_v5 = vld [vmem:[%s4257_s8] sm:$0xff]  }
 0xe47   : > { %1968 = vadd.xlane.f32.xlu1 %v1967_v54  ;;  %2852 = vmatpush3.bf16.msra.mxu1 %v3038_v5 }
 0xe48   : > { %v1970_v57 = vsel %vm777_vm1, %v1964_v56, 0.0  ;;  %2853 = vmatprep.subr.bf16.mxu1 %v3451_v1 }
 0xe49   : > { %1971 = vadd.xlane.f32.xlu0 %v1970_v57 }
 0xe4b   : > { %2854 = vmatpush3.bf16.msra.mxu1 %v3039_v6 }
 0xe4c   : > { %2871 = vmatprep.subr.bf16.mxu1 %v3451_v1 }
 0xed4   : > { %v1969_v59 = vpop.xlane.xlu1 %1968 }
 0xed5   : > { %v1974_v60 = vmul.f32 0.03125, %v1969_v59 }
 0xed6   : > { %v1972_v61 = vpop.xlane.xlu0 %1971 }
 0xed7   : > { %v1976_v62 = vsub.f32 %v1963_v53, %v1974_v60  ;;  %v1975_v37 = vmul.f32 0.03125, %v1972_v61 }
 0xed9   : > { %v1977_v63 = vsub.f32 %v1964_v56, %v1975_v37  ;;  %v1978_v0 = vmul.f32 %v1976_v62, %v1976_v62 }
 0xedb   : > { %v1980_v2 = vsel %vm777_vm1, %v1978_v0, 0.0  ;;  %v1979_v3 = vmul.f32 %v1977_v63, %v1977_v63 }
 0xedc   : > { %1981 = vadd.xlane.f32.xlu1 %v1980_v2 }
 0xedd   : > { %v1983_v4 = vsel %vm777_vm1, %v1979_v3, 0.0 }
 0xede   : > { %1984 = vadd.xlane.f32.xlu0 %v1983_v4 }
 0xf69   : > { %v1982_v7 = vpop.xlane.xlu1 %1981 }
 0xf6a   : > { %v1986_v8 = vmul.f32 0.03125, %v1982_v7 }
 0xf6b   : > { %v1985_v10 = vpop.xlane.xlu0 %1984 }
 0xf6c   : > { %v1988_v11 = vadd.f32 1e-05, %v1986_v8  ;;  %v1987_v14 = vmul.f32 0.03125, %v1985_v10 }
 0xf6e   : > { %3080 = vrsqrt.f32 %v1988_v11  ;;  %v1989_v17 = vadd.f32 1e-05, %v1987_v14 }
 0xf70   : > { %3082 = vrsqrt.f32 %v1989_v17 }
 0xf78   : > { %v3081_v55 = vpop.eup %3080 }
 0xf79   : > { %v1992_v19 = vmul.f32 %v3081_v55, %v1976_v62  ;;  %v2644_v62 = vld [vmem:[#allocation14] ss:$0 sm:$0xff] }
 0xf7a   : > { %v3083_v58 = vpop.eup %3082 }
 0xf7b   : > { %v2000_v20 = vmul.f32 %v2638_v18, %v1992_v19  ;;  %v1993_v21 = vmul.f32 %v3083_v58, %v1977_v63 }
 0xf7d   : > { %v2001_v23 = vmul.f32 %v2638_v18, %v1993_v21  ;;  %v4134_v25 = vadd.f32 %v2639_v22, %v2000_v20 }
 0xf7f   : > { %v4136_v12 = vadd.f32 %v2639_v22, %v2001_v23  ;;  %v3046_v22 = vld [vmem:[%s4319_s29] sm:$0xff]   ;;  %v3047_v23 = vld [vmem:[%s4319_s29 + $0x8] sm:$0xff]  }
 0xf81   : > { %v2014_v26 = vpack.c.bf16 %v4136_v12, %v4134_v25 }
 0xf83   : > { %2856 = vmatmul.mubr.msk.bf16.vlgmr.msra.gmra.mrb[40].mxu1 %vm777_vm1, %v2014_v26 }
 0xf84   : > { %2872 = vmatpush3.bf16.msra.mxu1 %v3040_v44  ;;  %2875 = vmatprep.mubr.msk.bf16.mxu1 %vm3452_vm0, %v3451_v1 }
 0xf85   : > { %2873 = vmatprep.subr.bf16.mxu1 %v3451_v1 }
 0xf88   : > { %2874 = vmatpush3.bf16.msra.mxu1 %v3041_v28 }
 0xf89   : > { %2879 = vmatprep.subr.bf16.mxu1 %v3451_v1 }
 0xf8b   : > { %2876 = vmatmul.mubr.msk.bf16.vlgmr.msra.gmra.mrb[44].mxu1 %vm777_vm1, %v2236_v15  ;;  %v2640_v15 = vld [vmem:[#allocation12] ss:$0 sm:$0xff] }
 0xf8c   : > { %2883 = vmatprep.mubr.msk.bf16.mxu1 %vm3452_vm0, %v3451_v1  ;;  %2880 = vmatpush3.bf16.msra.mxu1 %v3046_v22 }
 0xf8d   : > { %2881 = vmatprep.subr.bf16.mxu1 %v3451_v1 }
 0xf90   : > { %2882 = vmatpush3.bf16.msra.mxu1 %v3047_v23 }
0x1056   : > { %v2071_v30 = vpop.f32.mrb[40].mxu1 }
0x1057   : > { %v2072_v31 = vadd.f32 %v2640_v15, %v2071_v30  ;;  %v2857_v32 = vpop.f32.mrb[41].mxu1 }
0x1058   : > { %v2074_v33 = vpop.f32.mrb[42].mxu1  ;;  %v2651_v32 = vld [vmem:[%s4320_s17] ss:$0 sm:$0xff]  ;;  %s742_s17 = scalar_lea.vmem [#allocation18], %s4323_s24  ;;  %s3467_s24 = smov [#allocation18]  }
0x1059   : > { %v2078_v16 = vmul.f32 %v2072_v31, %v2072_v31  ;;  %v2075_v34 = vadd.f32 %v2640_v15, %v2074_v33  ;;  %v2858_v35 = vpop.f32.mrb[43].mxu1  ;;  %s2428_s30 = sshll.u32 %s742_s17, 4  ;;  %s3358_s5 = sshll.u32 %s3467_s24, 4  ;;  %s4207_s30 = int_to_ptr.vmem [resolvable:$true] %s2428_s30  ;;  %s3359_s5 = int_to_ptr.vmem [resolvable:$false] %s3358_s5 }
0x105a   : > { %s3360_s6 = scalar_lea.vmem %s3359_s5, 64  ;;  %p3361_p8 = scmp.lt.s32.totalorder %s4207_s30, %s3359_s5 }
0x105b   : > { %v2080_v36 = vmul.f32 %v2078_v16, %v2072_v31  ;;  %v2079_v38 = vmul.f32 %v2075_v34, %v2075_v34 }
0x105d   : > { %v2082_v39 = vmul.f32 0.044715, %v2080_v36  ;;  %v2081_v40 = vmul.f32 %v2079_v38, %v2075_v34  ;;  %v2658_v36 = vld [vmem:[%s4321_s27] ss:$0 sm:$0xff] }
0x105e   : > { %v4166_v41 = vpop.f32.mrb[44].mxu1 }
0x105f   : > { %v2084_v42 = vadd.f32 %v2082_v39, %v2072_v31  ;;  %v2083_v43 = vmul.f32 0.044715, %v2081_v40  ;;  %v2877_v45 = vpop.f32.mrb[45].mxu1 }
0x1060   : > { %v4168_v46 = vpop.f32.mrb[46].mxu1 }
0x1061   : > { %v2086_v47 = vmul.f32 0.7978846, %v2084_v42  ;;  %v2085_v48 = vadd.f32 %v2083_v43, %v2075_v34  ;;  %v2878_v49 = vpop.f32.mrb[47].mxu1 }
0x1063   : > { %3084 = vtanh.f32 %v2086_v47  ;;  %v2087_v50 = vmul.f32 0.7978846, %v2085_v48  ;;  %v2659_v47 = vld [vmem:[%s4322_s2] ss:$0 sm:$0xff]  ;;  %s3354_s2 = scalar_lea.vmem %s4207_s30, 32 }
0x1064   : > { %p3355_p13 = scmp.ne.s32.totalorder %s4207_s30, %s3354_s2  ;;  %p3362_p4 = scmp.lt.s32.totalorder %s3360_s6, %s3354_s2 }
0x1065   : > { %3086 = vtanh.f32 %v2087_v50 }
0x1066   : > { %p3356_p3 = pnand %p3355_p13, %p4325_p1  ;;  %p3363_p10 = por %p3362_p4, %p3361_p8 }
0x1068   : > { %p3357_p2 = pneg %p3356_p3 }
0x106a   : > { %p3364_p11 = pnand %p3363_p10, %p3357_p2 }
0x106d   : > { %v3085_v51 = vpop.eup %3084 }
0x106e   : > { %v2090_v52 = vadd.f32 1.0, %v3085_v51 }
0x106f   : > { %v3087_v53 = vpop.eup %3086 }
0x1070   : > { %v2092_v54 = vmul.f32 0.5, %v2090_v52  ;;  %v2091_v56 = vadd.f32 1.0, %v3087_v53 }
0x1072   : > { %v2093_v57 = vmul.f32 0.5, %v2091_v56  ;;  %v2094_v59 = vmul.f32 %v2092_v54, %v2072_v31  ;;  %v2660_v54 = vld [vmem:[#allocation2] ss:$0 sm:$0xff] }
0x1074   : > { %v2095_v60 = vmul.f32 %v2093_v57, %v2075_v34 }
0x1076   : > { %v2104_v61 = vpack.c.bf16 %v2095_v60, %v2094_v59 }
0x1078   : > { %2868 = vmatmul.mubr.msk.bf16.vlgmr.msra.gmra.mrb[44].mxu0 %vm2136_vm11, %v2104_v61 }
0x114b   : > { %v2174_v37 = vpop.f32.mrb[44].mxu0 }
0x114c   : > { %v2175_v63 = vadd.f32 %v2644_v62, %v2174_v37  ;;  %v2869_v0 = vpop.f32.mrb[45].mxu0 }
0x114d   : > { %v2177_v2 = vpop.f32.mrb[46].mxu0 }
0x114e   : > { %v2178_v3 = vadd.f32 %v2644_v62, %v2177_v2  ;;  %v2870_v4 = vpop.f32.mrb[47].mxu0  ;;  %v2181_v5 = vadd.f32 %v2175_v63, %v4134_v25 }
0x1150   : > { %v2185_v6 = vsel %vm777_vm1, %v2181_v5, 0.0  ;;  %v2182_v7 = vadd.f32 %v2178_v3, %v4136_v12 }
0x1151   : > { %2186 = vadd.xlane.f32.xlu1 %v2185_v6 }
0x1152   : > { %v2188_v8 = vsel %vm777_vm1, %v2182_v7, 0.0 }
0x1153   : > { %2189 = vadd.xlane.f32.xlu0 %v2188_v8 }
0x11de   : > { %v2187_v10 = vpop.xlane.xlu1 %2186 }
0x11df   : > { %v2191_v11 = vmul.f32 0.03125, %v2187_v10 }
0x11e0   : > { %v2190_v14 = vpop.xlane.xlu0 %2189 }
0x11e1   : > { %v2193_v17 = vsub.f32 %v2181_v5, %v2191_v11  ;;  %v2192_v55 = vmul.f32 0.03125, %v2190_v14 }
0x11e3   : > { %v2194_v18 = vsub.f32 %v2182_v7, %v2192_v55  ;;  %v2195_v19 = vmul.f32 %v2193_v17, %v2193_v17 }
0x11e5   : > { %v2197_v58 = vsel %vm777_vm1, %v2195_v19, 0.0  ;;  %v2196_v20 = vmul.f32 %v2194_v18, %v2194_v18 }
0x11e6   : > { %2198 = vadd.xlane.f32.xlu1 %v2197_v58 }
0x11e7   : > { %v2200_v21 = vsel %vm777_vm1, %v2196_v20, 0.0 }
0x11e8   : > { %2201 = vadd.xlane.f32.xlu0 %v2200_v21 }
0x1273   : > { %v2199_v25 = vpop.xlane.xlu1 %2198 }
0x1274   : > { %v2203_v12 = vmul.f32 0.03125, %v2199_v25 }
0x1275   : > { %v2202_v44 = vpop.xlane.xlu0 %2201 }
0x1276   : > { %v2205_v26 = vadd.f32 1e-05, %v2203_v12  ;;  %v2204_v28 = vmul.f32 0.03125, %v2202_v44 }
0x1278   : > { %3088 = vrsqrt.f32 %v2205_v26  ;;  %v2206_v24 = vadd.f32 1e-05, %v2204_v28 }
0x127a   : > { %3090 = vrsqrt.f32 %v2206_v24 }
0x1282   : > { %v3089_v29 = vpop.eup %3088 }
0x1283   : > { %v2209_v13 = vmul.f32 %v3089_v29, %v2193_v17 }
0x1284   : > { %v3091_v15 = vpop.eup %3090 }
0x1285   : > { %v2217_v30 = vmul.f32 %v2650_v9, %v2209_v13  ;;  %v2210_v31 = vmul.f32 %v3091_v15, %v2194_v18 }
0x1287   : > { %v2218_v1 = vmul.f32 %v2650_v9, %v2210_v31  ;;  %v2225_v33 = vadd.f32 %v2651_v32, %v2217_v30 }
0x1289   : > { %v2226_v16 = vadd.f32 %v2651_v32, %v2218_v1 }
0x128b   : > { %v2231_v34 = vpack.c.bf16 %v2226_v16, %v2225_v33 }
0x128d   : > { %2884 = vmatmul.mubr.msk.bf16.vlgmr.msra.gmra.mrb[48].mxu1 %vm777_vm1, %v2231_v34 }
0x1360   : > { %v2342_v35 = vpop.f32.mrb[48].mxu1 }
0x1361   : > { %v2343_v38 = vadd.f32 %v2342_v35, %v4166_v41  ;;  %v2885_v39 = vpop.f32.mrb[49].mxu1 }
0x1362   : > { %v2345_v40 = vpop.f32.mrb[50].mxu1 }
0x1363   : > { %v2356_v42 = vadd.f32 %v2658_v36, %v2343_v38  ;;  %v2346_v43 = vadd.f32 %v2345_v40, %v4168_v46  ;;  %v2886_v45 = vpop.f32.mrb[51].mxu1 }
0x1365   : > { %v2358_v48 = vmax.f32 %v2356_v42, 0.0  ;;  %v2357_v49 = vadd.f32 %v2658_v36, %v2346_v43 }
0x1367   : > { %v2359_v50 = vmax.f32 %v2357_v49, 0.0  ;;  %v2367_v51 = vmul.f32 %v2659_v47, %v2358_v48 }
0x1369   : > { %v2369_v52 = vsel %vm777_vm1, %v2367_v51, 0.0  ;;  %v2368_v53 = vmul.f32 %v2659_v47, %v2359_v50 }
0x136a   : > { %2370 = vadd.xlane.f32.xlu1 %v2369_v52 }
0x136b   : > { %v2372_v41 = vsel %vm777_vm1, %v2368_v53, 0.0 }
0x136c   : > { %2373 = vadd.xlane.f32.xlu0 %v2372_v41 }
0x137b   : > { %2382 = vperm.xlu1 %3034, %v2660_v54  }
0x13f7   : > { %v2371_v56 = vpop.xlane.xlu1 %2370 }
0x13f9   : > { %v2374_v46 = vpop.xlane.xlu0 %2373 }
0x13fb   : > { %v2383_v57 = vpop.permute.xlu1 %2382 }
0x13fc   : > { %v2385_v59 = vadd.f32 %v2383_v57, %v2371_v56  ;;  %v2386_v60 = vadd.f32 %v2383_v57, %v2374_v46 }
0x13fe   : > { %v2387_v61 = vsub.f32 0.0, %v2385_v59  ;;  %v2388_v62 = vsub.f32 0.0, %v2386_v60 }
0x1400   : > { %v2389_v37 = vmul.f32 1.442695, %v2387_v61  ;;  %v2391_v63 = vmul.f32 1.442695, %v2388_v62 }
0x1402   : > { %3092 = vpow2.f32 %v2389_v37 }
0x1403   : > { %3094 = vpow2.f32 %v2391_v63 }
0x140c   : > { %v3093_v0 = vpop.eup %3092 }
0x140d   : > { %v3095_v2 = vpop.eup %3094  ;;  %v2393_v3 = vadd.f32 1.0, %v3093_v0 }
0x140e   : > { %v2394_v4 = vadd.f32 1.0, %v3095_v2 }
0x140f   : > { %3096 = vrcp.f32 %v2393_v3 }
0x1410   : > { %3098 = vrcp.f32 %v2394_v4 }
0x1419   : > { %v3097_v5 = vpop.eup %3096 }
0x141a   : > { %v3099_v6 = vpop.eup %3098  ;;  %v2404_v7 = vrot.slane %v3097_v5, %v3956_v27 }
0x141b   : > { %v2408_v8 = vrot.slane %v3099_v6, %v3956_v27 }
0x141d   : > { %v2410_v10 = vsel %vm2409_vm12, %v2408_v8, %v2404_v7 }
0x141e   : > { %2413 = vst.msk [vmem:[%s742_s17] sm:$0x3] %vm2412_vm13, %v2410_v10 }
0x141f   : > { %3367 = shalt.err (!%p3364_p11)
}
0x1420   : > { %s3368_s26 = scalar_lea.hbm %s4205_s19, 32  ;;  %s3372_s18 = scalar_lea.hbm %s4324_s3, 64 }
0x1421   : > { %p3369_p0 = scmp.ne.s32.totalorder %s4205_s19, %s3368_s26  ;;  %p3373_p6 = scmp.lt.u32.totalorder %s4205_s19, %s4324_s3 }
0x1422   : > { %p3374_p9 = scmp.lt.u32.totalorder %s3372_s18, %s3368_s26  ;;  %p3376_p13 = scmp.lt.u32.totalorder %s3368_s26, %s4205_s19 }
0x1423   : > { %p3370_p5 = pnand %p3369_p0, %p4325_p1 }
0x1424   : > { %p3375_p12 = por %p3374_p9, %p3373_p6 }
0x1425   : > { %p3371_p7 = pneg %p3370_p5 }
0x1426   : > { %p3377_p3 = por %p3376_p13, %p3375_p12 }
0x1428   : > { %p3378_p2 = pnand %p3377_p3, %p3371_p7 }
0x142a   : > { %3381 = shalt.err (!%p3378_p2)
}
0x142b   : > { %2921 = dma.vmem_to_hbm [thread:$0]  (%p4325_p1), %s4207_s30, 32, %s4205_s19, %s2415_s23  }
0x142c PF: > { %s2440_s6 = sand.u32 1, %s3424_s20   ;;  %p4326_p8 = scmp.ne.s32.totalorder %s4303_s0, 0 }
0x142d   : > { %p4327_p4 = scmp.ge.s32.totalorder %s3436_s22, 2  ;;  %s2441_s2 = scalar_lea.sflag [#allocation5], %s2440_s6 }
0x142f   : > { %p2953_p10 = pnand %p4327_p4, %p4326_p8 }
0x1431   : > { %3419 = dma.done.wait (!%p2953_p10), %s2441_s2, 32  }
0x1432   : > { %3421 = vsyncadd (!%p2953_p10), %s2441_s2, 4294967264  ;;  %p38_p11 = scmp.ge.s32.totalorder %s3791_s25, 4   ;;  %s4328_s20 = smov %s3428_s21 }
0x1433   : > { %s4329_s21 = smov %s3432_s1  ;;  %s4330_s1 = smov %s3802_s13 }
0x1434   : > { %s4331_s22 = smov %s3791_s25  ;;  %40 = sbr.rel (!%p38_p11) target bundleno = 23 (0x17), region = 179 }
0x143b   :  { %2446 = vsyncpa [#allocation4], 1 }
0x143c   :  { %2448 = vsyncpa [#allocation4 + $0x1], 1 }
0x143d   :  { %2449 = vsyncpa [#allocation7], 1 }
0x143e   :  { %2450 = vsyncpa [#allocation10], 1 }
0x143f   :  { %2451 = vsyncpa [#allocation13], 1 }
0x1440   :  { %2452 = vsyncpa [#allocation16], 1 }
0x1441   :  { %2453 = vsyncpa [#allocation5], 1 }
0x1442   :  { %2455 = vsyncpa [#allocation5 + $0x1], 1 }

</bundles_post_ra>
